<compile_context>
chip_gen: v5e
topology: v5e:2x2
jax: 0.10.0
libtpu: 0.0.40
codegen_flags: <defaults>
</compile_context>

<pallas_src>
import functools

import jax
import jax.numpy as jnp
from jax.experimental import pallas as pl
from jax.experimental.pallas import tpu as pltpu

EPS = 1e-5
COMPUTE_DTYPE = jnp.bfloat16   # MXU-native; accumulation in f32


def _round_up(x, m):
    return (x + m - 1) // m * m


# ----------------------------- Pallas kernel ------------------------------- #

def _double_conv_kernel(x_ref, w1_ref, b1_ref, w2_ref, b2_ref, wr_ref, br_ref,
                        o_ref, y1_ref):
    # x_ref : (TH+4, W+2, Cin_p)   bf16  input row-chunk (2-row halo, 1-col zero pad)
    # w1_ref: (9, Cin_p, Cout_p)   bf16  conv1 weights (BN1 folded), taps (kh,kw) row-major
    # b1_ref: (1, Cout_p)          f32
    # w2_ref: (9, Cout_p, Cout_p)  bf16  conv2 weights (BN2 folded)
    # b2_ref: (1, Cout_p)          f32
    # wr_ref: (Cin_p, Cout_p)      bf16  1x1 residual conv (BN folded) or identity
    # br_ref: (1, Cout_p)          f32
    # o_ref : (TH, W, Cout_p)      f32   output row tile
    # y1_ref: (TH+2, W+2, Cout_p)  bf16  VMEM scratch: zero-padded conv1 output
    TH, W, cout_p = o_ref.shape
    cin_p = x_ref.shape[-1]
    HP = TH + 2                          # conv1 is evaluated on a 1-row halo each side
    t = pl.program_id(1)
    n_t = pl.num_programs(1)

    # ---- conv1 + BN1 + ReLU over the (TH+2)-row halo extent (9 shifted matmuls) ----
    acc1 = jnp.zeros((HP * W, cout_p), jnp.float32)
    for di in range(3):
        for dj in range(3):
            patch = x_ref[di:di + HP, dj:dj + W, :].reshape(HP * W, cin_p)
            acc1 = acc1 + jnp.dot(patch, w1_ref[di * 3 + dj],
                                  preferred_element_type=jnp.float32)
    y1 = jnp.maximum(acc1 + b1_ref[...], 0.0).astype(y1_ref.dtype)

    # Build zero-padded y1 in VMEM: cols 0 / W+1 are conv2's zero padding; halo rows
    # that fall outside the image (first/last row tile) are zeroed explicitly.
    y1_ref[...] = jnp.zeros(y1_ref.shape, y1_ref.dtype)
    y1_ref[:, 1:W + 1, :] = y1.reshape(HP, W, cout_p)

    @pl.when(t == 0)
    def _():
        y1_ref[0, :, :] = jnp.zeros((W + 2, cout_p), y1_ref.dtype)

    @pl.when(t == n_t - 1)
    def _():
        y1_ref[HP - 1, :, :] = jnp.zeros((W + 2, cout_p), y1_ref.dtype)

    # ---- conv2 + BN2 + ReLU (taps from the VMEM-resident y1, never HBM) -----------
    acc2 = jnp.zeros((TH * W, cout_p), jnp.float32)
    for di in range(3):
        for dj in range(3):
            patch = y1_ref[di:di + TH, dj:dj + W, :].reshape(TH * W, cout_p)
            acc2 = acc2 + jnp.dot(patch, w2_ref[di * 3 + dj],
                                  preferred_element_type=jnp.float32)
    main = jnp.maximum(acc2 + b2_ref[...], 0.0)

    # ---- residual branch: 1x1 conv (+folded BN) on the original input ------------
    xc = x_ref[2:2 + TH, 1:1 + W, :].reshape(TH * W, cin_p)
    res = jnp.dot(xc, wr_ref[...], preferred_element_type=jnp.float32) + br_ref[...]

    o_ref[...] = (main + res).reshape(TH, W, cout_p).astype(o_ref.dtype)


# ------------------------------- JAX glue ----------------------------------- #

def _fold_bn(gamma, beta, mean, var):
    s = gamma / jnp.sqrt(var + EPS)
    t = beta - s * mean
    return s, t   # y = s * z + t


def _pick_row_tile(H, W, cin_p, cout_p, budget_bytes=4 << 20):
    """Largest divisor of H whose fused-tile VMEM footprint stays under budget."""
    best = 1
    for th in range(1, H + 1):
        if H % th:
            continue
        x_tile = (th + 4) * (W + 2) * cin_p * 2        # bf16 input chunk
        y1_tile = (th + 2) * (W + 2) * cout_p * 2      # bf16 scratch
        out_tile = th * W * cout_p * 4                 # f32 output tile
        if 2 * x_tile + y1_tile + 2 * out_tile <= budget_bytes:
            best = th
    return best


def double_conv_forward(x_nchw, params, *, row_tile=None):
    """Matches double_conv.forward (eval-mode BN). NCHW in / NCHW out."""
    N, Cin, H, W = x_nchw.shape
    Cout = params["w1"].shape[0]
    cin_p = _round_up(Cin, 128)     # lane-dense channel padding
    cout_p = _round_up(Cout, 128)

    if row_tile is None or H % row_tile != 0:
        row_tile = _pick_row_tile(H, W, cin_p, cout_p)
    TH = row_tile
    n_t = H // TH

    x = jnp.transpose(x_nchw, (0, 2, 3, 1)).astype(jnp.float32)   # NHWC

    # ---- fold BN into conv weights; pad channels; cast weights to bf16 ----------
    s1, t1 = _fold_bn(params["bn1_gamma"], params["bn1_beta"],
                      params["bn1_mean"], params["bn1_var"])
    w1 = params["w1"].transpose(2, 3, 1, 0).reshape(9, Cin, Cout) * s1[None, None, :]
    b1 = s1 * params["b1"] + t1

    s2, t2 = _fold_bn(params["bn2_gamma"], params["bn2_beta"],
                      params["bn2_mean"], params["bn2_var"])
    w2 = params["w2"].transpose(2, 3, 1, 0).reshape(9, Cout, Cout) * s2[None, None, :]
    b2 = s2 * params["b2"] + t2

    if Cin != Cout:
        sc, tc = _fold_bn(params["bnc_gamma"], params["bnc_beta"],
                          params["bnc_mean"], params["bnc_var"])
        wr = params["wc"][:, :, 0, 0].T * sc[None, :]   # (Cin, Cout); 1x1 conv has no bias
        br = tc
    else:
        wr = jnp.eye(Cin, dtype=jnp.float32)            # identity residual as a matmul
        br = jnp.zeros((Cout,), jnp.float32)

    def pad_w(w, r, c):
        out = jnp.zeros(w.shape[:-2] + (r, c), jnp.float32)
        return out.at[..., :w.shape[-2], :w.shape[-1]].set(w).astype(COMPUTE_DTYPE)

    def pad_b(b):
        return jnp.zeros((1, cout_p), jnp.float32).at[0, :Cout].set(b)

    w1p = pad_w(w1, cin_p, cout_p)
    w2p = pad_w(w2, cout_p, cout_p)
    wrp = pad_w(wr, cin_p, cout_p)
    b1p, b2p, brp = pad_b(b1), pad_b(b2), pad_b(br)

    # ---- overlapping row-chunks of the padded input (halo duplicated in HBM,
    #      so per-tile BlockSpec blocks never overlap) -----------------------------
    x_pad = jnp.pad(x, ((0, 0), (2, 2), (1, 1), (0, cin_p - Cin)))
    x_chunks = jnp.stack(
        [x_pad[:, t * TH:t * TH + TH + 4] for t in range(n_t)],
        axis=1).astype(COMPUTE_DTYPE)                   # (N, n_t, TH+4, W+2, cin_p)

    out = pl.pallas_call(
        _double_conv_kernel,
        out_shape=jax.ShapeDtypeStruct((N, H, W, cout_p), jnp.float32),
        grid_spec=pltpu.PrefetchScalarGridSpec(
            num_scalar_prefetch=0,
            grid=(N, n_t),
            in_specs=[
                pl.BlockSpec((None, None, TH + 4, W + 2, cin_p),
                             lambda n, t: (n, t, 0, 0, 0)),
                pl.BlockSpec((9, cin_p, cout_p), lambda n, t: (0, 0, 0)),
                pl.BlockSpec((1, cout_p), lambda n, t: (0, 0)),
                pl.BlockSpec((9, cout_p, cout_p), lambda n, t: (0, 0, 0)),
                pl.BlockSpec((1, cout_p), lambda n, t: (0, 0)),
                pl.BlockSpec((cin_p, cout_p), lambda n, t: (0, 0)),
                pl.BlockSpec((1, cout_p), lambda n, t: (0, 0)),
            ],
            out_specs=pl.BlockSpec((None, TH, W, cout_p), lambda n, t: (n, t, 0, 0)),
            scratch_shapes=[pltpu.VMEM((TH + 2, W + 2, cout_p), COMPUTE_DTYPE)],
        ),
        compiler_params=pltpu.CompilerParams(
            dimension_semantics=("parallel", "parallel"),
            vmem_limit_bytes=48 * 1024 * 1024),
    )(x_chunks, w1p, b1p, w2p, b2p, wrp, brp)

    out = out[..., :Cout]                               # drop channel padding
    return jnp.transpose(out, (0, 3, 1, 2))             # back to NCHW


# ------------------------------ reference ----------------------------------- #

def _reference(x, params):
    def conv(x, w, b=None, pad=1):
        y = jax.lax.conv_general_dilated(
            x, w, window_strides=(1, 1), padding=[(pad, pad), (pad, pad)],
            dimension_numbers=("NCHW", "OIHW", "NCHW"))
        if b is not None:
            y = y + b[None, :, None, None]
        return y

    def bn(x, g, bta, m, v):
        return (x - m[None, :, None, None]) / jnp.sqrt(v[None, :, None, None] + EPS) \
               * g[None, :, None, None] + bta[None, :, None, None]

    residual = x
    y = jax.nn.relu(bn(conv(x, params["w1"], params["b1"]),
                       params["bn1_gamma"], params["bn1_beta"],
                       params["bn1_mean"], params["bn1_var"]))
    y = jax.nn.relu(bn(conv(y, params["w2"], params["b2"]),
                       params["bn2_gamma"], params["bn2_beta"],
                       params["bn2_mean"], params["bn2_var"]))
    if residual.shape[1] != y.shape[1]:
        residual = bn(conv(residual, params["wc"], None, pad=0),
                      params["bnc_gamma"], params["bnc_beta"],
                      params["bnc_mean"], params["bnc_var"])
    return y + residual


# ------------------------------- main ---------------------------------------- #

def _init_params(key, in_ch, out_ch):
    ks = jax.random.split(key, 12)
    f32 = jnp.float32
    return {
        "w1": 0.1 * jax.random.normal(ks[0], (out_ch, in_ch, 3, 3), f32),
        "b1": 0.1 * jax.random.normal(ks[1], (out_ch,), f32),
        "bn1_gamma": 1.0 + 0.1 * jax.random.normal(ks[2], (out_ch,), f32),
        "bn1_beta": 0.1 * jax.random.normal(ks[3], (out_ch,), f32),
        "bn1_mean": 0.1 * jax.random.normal(ks[4], (out_ch,), f32),
        "bn1_var": 1.0 + 0.1 * jnp.abs(jax.random.normal(ks[5], (out_ch,), f32)),
        "w2": 0.1 * jax.random.normal(ks[6], (out_ch, out_ch, 3, 3), f32),
        "b2": 0.1 * jax.random.normal(ks[7], (out_ch,), f32),
        "bn2_gamma": 1.0 + 0.1 * jax.random.normal(ks[8], (out_ch,), f32),
        "bn2_beta": 0.1 * jax.random.normal(ks[9], (out_ch,), f32),
        "bn2_mean": 0.1 * jax.random.normal(ks[10], (out_ch,), f32),
        "bn2_var": 1.0 + 0.1 * jnp.abs(jax.random.normal(ks[11], (out_ch,), f32)),
        "wc": 0.1 * jax.random.normal(jax.random.fold_in(key, 100),
                                      (out_ch, in_ch, 1, 1), f32),
        "bnc_gamma": 1.0 + 0.1 * jax.random.normal(jax.random.fold_in(key, 101), (out_ch,), f32),
        "bnc_beta": 0.1 * jax.random.normal(jax.random.fold_in(key, 102), (out_ch,), f32),
        "bnc_mean": 0.1 * jax.random.normal(jax.random.fold_in(key, 103), (out_ch,), f32),
        "bnc_var": 1.0 + 0.1 * jnp.abs(jax.random.normal(jax.random.fold_in(key, 104), (out_ch,), f32)),
    }


if __name__ == "__main__":
    key = jax.random.PRNGKey(0)
    N, in_ch, out_ch, H, W = 2, 4, 8, 16, 16

    x = jax.random.normal(jax.random.fold_in(key, 0), (N, in_ch, H, W), jnp.float32)
    params = _init_params(jax.random.fold_in(key, 1), in_ch, out_ch)

    # row_tile=8 -> grid (N=2, row_tiles=2): exercises the halo / boundary-mask paths.
    fwd = jax.jit(functools.partial(double_conv_forward, row_tile=8))
    out = jax.block_until_ready(fwd(x, params))

    ref = _reference(x, params)
    assert out.shape == (N, out_ch, H, W), out.shape
    # bf16 activations/weights on the MXU (f32 accumulation) -> looser tolerance than f32.
    assert jnp.allclose(out, ref, rtol=5e-2, atol=5e-2), \
        f"max abs err {jnp.max(jnp.abs(out - ref))}"
    print("KERNEL_OK")
</pallas_src>

<mosaic_0001>
module attributes {stable_mosaic.version = 11 : i64} {
  func.func @_double_conv_kernel(%arg0: i32, %arg1: i32, %arg2: memref<1x1x12x18x128xbf16, #tpu.memory_space<vmem>>, %arg3: memref<9x128x128xbf16, #tpu.memory_space<vmem>>, %arg4: memref<1x128xf32, #tpu.memory_space<vmem>>, %arg5: memref<9x128x128xbf16, #tpu.memory_space<vmem>>, %arg6: memref<1x128xf32, #tpu.memory_space<vmem>>, %arg7: memref<128x128xbf16, #tpu.memory_space<vmem>>, %arg8: memref<1x128xf32, #tpu.memory_space<vmem>>, %arg9: memref<1x8x16x128xf32, #tpu.memory_space<vmem>>, %arg10: memref<10x18x128xbf16, #tpu.memory_space<vmem>>) attributes {dimension_semantics = [#tpu.dimension_semantics<parallel>, #tpu.dimension_semantics<parallel>], iteration_bounds = array<i64: 2, 2>, scalar_prefetch = 0 : i64, scratch_operands = 1 : i64, tpu.core_type = #tpu.core_type<tc>, window_params = [{transform_indices = @transform_0, window_bounds = array<i64: 1, 1, 12, 18, 128>}, {pipeline_mode = #tpu.pipeline_mode<synchronous>, transform_indices = @transform_1, window_bounds = array<i64: 9, 128, 128>}, {pipeline_mode = #tpu.pipeline_mode<synchronous>, transform_indices = @transform_2, window_bounds = array<i64: 1, 128>}, {pipeline_mode = #tpu.pipeline_mode<synchronous>, transform_indices = @transform_3, window_bounds = array<i64: 9, 128, 128>}, {pipeline_mode = #tpu.pipeline_mode<synchronous>, transform_indices = @transform_4, window_bounds = array<i64: 1, 128>}, {pipeline_mode = #tpu.pipeline_mode<synchronous>, transform_indices = @transform_5, window_bounds = array<i64: 128, 128>}, {pipeline_mode = #tpu.pipeline_mode<synchronous>, transform_indices = @transform_6, window_bounds = array<i64: 1, 128>}, {transform_indices = @transform_7, window_bounds = array<i64: 1, 8, 16, 128>}]} {
    %cst = arith.constant 0.000000e+00 : f32
    %0 = vector.broadcast %cst : f32 to vector<160x128xf32>
    %c0 = arith.constant 0 : index
    %c0_0 = arith.constant 0 : index
    %c0_1 = arith.constant 0 : index
    %c0_2 = arith.constant 0 : index
    %c0_3 = arith.constant 0 : index
    %1 = vector.load %arg2[%c0, %c0_0, %c0_1, %c0_2, %c0_3] : memref<1x1x12x18x128xbf16, #tpu.memory_space<vmem>>, vector<1x1x10x16x128xbf16>
    %2 = vector.shape_cast %1 : vector<1x1x10x16x128xbf16> to vector<10x16x128xbf16>
    %3 = vector.shape_cast %2 : vector<10x16x128xbf16> to vector<160x128xbf16>
    %c0_4 = arith.constant 0 : index
    %c0_5 = arith.constant 0 : index
    %c0_6 = arith.constant 0 : index
    %4 = vector.load %arg3[%c0_4, %c0_5, %c0_6] : memref<9x128x128xbf16, #tpu.memory_space<vmem>>, vector<1x128x128xbf16>
    %5 = vector.shape_cast %4 : vector<1x128x128xbf16> to vector<128x128xbf16>
    %cst_7 = arith.constant dense<0.000000e+00> : vector<160x128xf32>
    %6 = tpu.matmul %3, %5, %cst_7 {dimension_numbers = #tpu.dot_dimension_numbers<[1], [0], [0], [1], [0, 0, 1, 1], [], []>} : vector<160x128xbf16>, vector<128x128xbf16>, vector<160x128xf32> -> vector<160x128xf32>
    %7 = arith.addf %0, %6 : vector<160x128xf32>
    %c0_8 = arith.constant 0 : index
    %c0_9 = arith.constant 0 : index
    %c0_10 = arith.constant 0 : index
    %c1 = arith.constant 1 : index
    %c0_11 = arith.constant 0 : index
    %8 = vector.load %arg2[%c0_8, %c0_9, %c0_10, %c1, %c0_11] : memref<1x1x12x18x128xbf16, #tpu.memory_space<vmem>>, vector<1x1x10x16x128xbf16>
    %9 = vector.shape_cast %8 : vector<1x1x10x16x128xbf16> to vector<10x16x128xbf16>
    %10 = vector.shape_cast %9 : vector<10x16x128xbf16> to vector<160x128xbf16>
    %c1_12 = arith.constant 1 : index
    %c0_13 = arith.constant 0 : index
    %c0_14 = arith.constant 0 : index
    %11 = vector.load %arg3[%c1_12, %c0_13, %c0_14] : memref<9x128x128xbf16, #tpu.memory_space<vmem>>, vector<1x128x128xbf16>
    %12 = vector.shape_cast %11 : vector<1x128x128xbf16> to vector<128x128xbf16>
    %cst_15 = arith.constant dense<0.000000e+00> : vector<160x128xf32>
    %13 = tpu.matmul %10, %12, %cst_15 {dimension_numbers = #tpu.dot_dimension_numbers<[1], [0], [0], [1], [0, 0, 1, 1], [], []>} : vector<160x128xbf16>, vector<128x128xbf16>, vector<160x128xf32> -> vector<160x128xf32>
    %14 = arith.addf %7, %13 : vector<160x128xf32>
    %c0_16 = arith.constant 0 : index
    %c0_17 = arith.constant 0 : index
    %c0_18 = arith.constant 0 : index
    %c2 = arith.constant 2 : index
    %c0_19 = arith.constant 0 : index
    %15 = vector.load %arg2[%c0_16, %c0_17, %c0_18, %c2, %c0_19] : memref<1x1x12x18x128xbf16, #tpu.memory_space<vmem>>, vector<1x1x10x16x128xbf16>
    %16 = vector.shape_cast %15 : vector<1x1x10x16x128xbf16> to vector<10x16x128xbf16>
    %17 = vector.shape_cast %16 : vector<10x16x128xbf16> to vector<160x128xbf16>
    %c2_20 = arith.constant 2 : index
    %c0_21 = arith.constant 0 : index
    %c0_22 = arith.constant 0 : index
    %18 = vector.load %arg3[%c2_20, %c0_21, %c0_22] : memref<9x128x128xbf16, #tpu.memory_space<vmem>>, vector<1x128x128xbf16>
    %19 = vector.shape_cast %18 : vector<1x128x128xbf16> to vector<128x128xbf16>
    %cst_23 = arith.constant dense<0.000000e+00> : vector<160x128xf32>
    %20 = tpu.matmul %17, %19, %cst_23 {dimension_numbers = #tpu.dot_dimension_numbers<[1], [0], [0], [1], [0, 0, 1, 1], [], []>} : vector<160x128xbf16>, vector<128x128xbf16>, vector<160x128xf32> -> vector<160x128xf32>
    %21 = arith.addf %14, %20 : vector<160x128xf32>
    %c0_24 = arith.constant 0 : index
    %c0_25 = arith.constant 0 : index
    %c1_26 = arith.constant 1 : index
    %c0_27 = arith.constant 0 : index
    %c0_28 = arith.constant 0 : index
    %22 = vector.load %arg2[%c0_24, %c0_25, %c1_26, %c0_27, %c0_28] : memref<1x1x12x18x128xbf16, #tpu.memory_space<vmem>>, vector<1x1x10x16x128xbf16>
    %23 = vector.shape_cast %22 : vector<1x1x10x16x128xbf16> to vector<10x16x128xbf16>
    %24 = vector.shape_cast %23 : vector<10x16x128xbf16> to vector<160x128xbf16>
    %c3 = arith.constant 3 : index
    %c0_29 = arith.constant 0 : index
    %c0_30 = arith.constant 0 : index
    %25 = vector.load %arg3[%c3, %c0_29, %c0_30] : memref<9x128x128xbf16, #tpu.memory_space<vmem>>, vector<1x128x128xbf16>
    %26 = vector.shape_cast %25 : vector<1x128x128xbf16> to vector<128x128xbf16>
    %cst_31 = arith.constant dense<0.000000e+00> : vector<160x128xf32>
    %27 = tpu.matmul %24, %26, %cst_31 {dimension_numbers = #tpu.dot_dimension_numbers<[1], [0], [0], [1], [0, 0, 1, 1], [], []>} : vector<160x128xbf16>, vector<128x128xbf16>, vector<160x128xf32> -> vector<160x128xf32>
    %28 = arith.addf %21, %27 : vector<160x128xf32>
    %c0_32 = arith.constant 0 : index
    %c0_33 = arith.constant 0 : index
    %c1_34 = arith.constant 1 : index
    %c1_35 = arith.constant 1 : index
    %c0_36 = arith.constant 0 : index
    %29 = vector.load %arg2[%c0_32, %c0_33, %c1_34, %c1_35, %c0_36] : memref<1x1x12x18x128xbf16, #tpu.memory_space<vmem>>, vector<1x1x10x16x128xbf16>
    %30 = vector.shape_cast %29 : vector<1x1x10x16x128xbf16> to vector<10x16x128xbf16>
    %31 = vector.shape_cast %30 : vector<10x16x128xbf16> to vector<160x128xbf16>
    %c4 = arith.constant 4 : index
    %c0_37 = arith.constant 0 : index
    %c0_38 = arith.constant 0 : index
    %32 = vector.load %arg3[%c4, %c0_37, %c0_38] : memref<9x128x128xbf16, #tpu.memory_space<vmem>>, vector<1x128x128xbf16>
    %33 = vector.shape_cast %32 : vector<1x128x128xbf16> to vector<128x128xbf16>
    %cst_39 = arith.constant dense<0.000000e+00> : vector<160x128xf32>
    %34 = tpu.matmul %31, %33, %cst_39 {dimension_numbers = #tpu.dot_dimension_numbers<[1], [0], [0], [1], [0, 0, 1, 1], [], []>} : vector<160x128xbf16>, vector<128x128xbf16>, vector<160x128xf32> -> vector<160x128xf32>
    %35 = arith.addf %28, %34 : vector<160x128xf32>
    %c0_40 = arith.constant 0 : index
    %c0_41 = arith.constant 0 : index
    %c1_42 = arith.constant 1 : index
    %c2_43 = arith.constant 2 : index
    %c0_44 = arith.constant 0 : index
    %36 = vector.load %arg2[%c0_40, %c0_41, %c1_42, %c2_43, %c0_44] : memref<1x1x12x18x128xbf16, #tpu.memory_space<vmem>>, vector<1x1x10x16x128xbf16>
    %37 = vector.shape_cast %36 : vector<1x1x10x16x128xbf16> to vector<10x16x128xbf16>
    %38 = vector.shape_cast %37 : vector<10x16x128xbf16> to vector<160x128xbf16>
    %c5 = arith.constant 5 : index
    %c0_45 = arith.constant 0 : index
    %c0_46 = arith.constant 0 : index
    %39 = vector.load %arg3[%c5, %c0_45, %c0_46] : memref<9x128x128xbf16, #tpu.memory_space<vmem>>, vector<1x128x128xbf16>
    %40 = vector.shape_cast %39 : vector<1x128x128xbf16> to vector<128x128xbf16>
    %cst_47 = arith.constant dense<0.000000e+00> : vector<160x128xf32>
    %41 = tpu.matmul %38, %40, %cst_47 {dimension_numbers = #tpu.dot_dimension_numbers<[1], [0], [0], [1], [0, 0, 1, 1], [], []>} : vector<160x128xbf16>, vector<128x128xbf16>, vector<160x128xf32> -> vector<160x128xf32>
    %42 = arith.addf %35, %41 : vector<160x128xf32>
    %c0_48 = arith.constant 0 : index
    %c0_49 = arith.constant 0 : index
    %c2_50 = arith.constant 2 : index
    %c0_51 = arith.constant 0 : index
    %c0_52 = arith.constant 0 : index
    %43 = vector.load %arg2[%c0_48, %c0_49, %c2_50, %c0_51, %c0_52] : memref<1x1x12x18x128xbf16, #tpu.memory_space<vmem>>, vector<1x1x10x16x128xbf16>
    %44 = vector.shape_cast %43 : vector<1x1x10x16x128xbf16> to vector<10x16x128xbf16>
    %45 = vector.shape_cast %44 : vector<10x16x128xbf16> to vector<160x128xbf16>
    %c6 = arith.constant 6 : index
    %c0_53 = arith.constant 0 : index
    %c0_54 = arith.constant 0 : index
    %46 = vector.load %arg3[%c6, %c0_53, %c0_54] : memref<9x128x128xbf16, #tpu.memory_space<vmem>>, vector<1x128x128xbf16>
    %47 = vector.shape_cast %46 : vector<1x128x128xbf16> to vector<128x128xbf16>
    %cst_55 = arith.constant dense<0.000000e+00> : vector<160x128xf32>
    %48 = tpu.matmul %45, %47, %cst_55 {dimension_numbers = #tpu.dot_dimension_numbers<[1], [0], [0], [1], [0, 0, 1, 1], [], []>} : vector<160x128xbf16>, vector<128x128xbf16>, vector<160x128xf32> -> vector<160x128xf32>
    %49 = arith.addf %42, %48 : vector<160x128xf32>
    %c0_56 = arith.constant 0 : index
    %c0_57 = arith.constant 0 : index
    %c2_58 = arith.constant 2 : index
    %c1_59 = arith.constant 1 : index
    %c0_60 = arith.constant 0 : index
    %50 = vector.load %arg2[%c0_56, %c0_57, %c2_58, %c1_59, %c0_60] : memref<1x1x12x18x128xbf16, #tpu.memory_space<vmem>>, vector<1x1x10x16x128xbf16>
    %51 = vector.shape_cast %50 : vector<1x1x10x16x128xbf16> to vector<10x16x128xbf16>
    %52 = vector.shape_cast %51 : vector<10x16x128xbf16> to vector<160x128xbf16>
    %c7 = arith.constant 7 : index
    %c0_61 = arith.constant 0 : index
    %c0_62 = arith.constant 0 : index
    %53 = vector.load %arg3[%c7, %c0_61, %c0_62] : memref<9x128x128xbf16, #tpu.memory_space<vmem>>, vector<1x128x128xbf16>
    %54 = vector.shape_cast %53 : vector<1x128x128xbf16> to vector<128x128xbf16>
    %cst_63 = arith.constant dense<0.000000e+00> : vector<160x128xf32>
    %55 = tpu.matmul %52, %54, %cst_63 {dimension_numbers = #tpu.dot_dimension_numbers<[1], [0], [0], [1], [0, 0, 1, 1], [], []>} : vector<160x128xbf16>, vector<128x128xbf16>, vector<160x128xf32> -> vector<160x128xf32>
    %56 = arith.addf %49, %55 : vector<160x128xf32>
    %c0_64 = arith.constant 0 : index
    %c0_65 = arith.constant 0 : index
    %c2_66 = arith.constant 2 : index
    %c2_67 = arith.constant 2 : index
    %c0_68 = arith.constant 0 : index
    %57 = vector.load %arg2[%c0_64, %c0_65, %c2_66, %c2_67, %c0_68] : memref<1x1x12x18x128xbf16, #tpu.memory_space<vmem>>, vector<1x1x10x16x128xbf16>
    %58 = vector.shape_cast %57 : vector<1x1x10x16x128xbf16> to vector<10x16x128xbf16>
    %59 = vector.shape_cast %58 : vector<10x16x128xbf16> to vector<160x128xbf16>
    %c8 = arith.constant 8 : index
    %c0_69 = arith.constant 0 : index
    %c0_70 = arith.constant 0 : index
    %60 = vector.load %arg3[%c8, %c0_69, %c0_70] : memref<9x128x128xbf16, #tpu.memory_space<vmem>>, vector<1x128x128xbf16>
    %61 = vector.shape_cast %60 : vector<1x128x128xbf16> to vector<128x128xbf16>
    %cst_71 = arith.constant dense<0.000000e+00> : vector<160x128xf32>
    %62 = tpu.matmul %59, %61, %cst_71 {dimension_numbers = #tpu.dot_dimension_numbers<[1], [0], [0], [1], [0, 0, 1, 1], [], []>} : vector<160x128xbf16>, vector<128x128xbf16>, vector<160x128xf32> -> vector<160x128xf32>
    %63 = arith.addf %56, %62 : vector<160x128xf32>
    %c0_72 = arith.constant 0 : index
    %c0_73 = arith.constant 0 : index
    %64 = vector.load %arg4[%c0_72, %c0_73] : memref<1x128xf32, #tpu.memory_space<vmem>>, vector<1x128xf32>
    %65 = vector.broadcast %64 : vector<1x128xf32> to vector<160x128xf32>
    %66 = arith.addf %63, %65 : vector<160x128xf32>
    %cst_74 = arith.constant 0.000000e+00 : f32
    %67 = vector.broadcast %cst_74 : f32 to vector<160x128xf32>
    %68 = arith.maximumf %66, %67 : vector<160x128xf32>
    %69 = arith.truncf %68 : vector<160x128xf32> to vector<160x128xbf16>
    %cst_75 = arith.constant 0.000000e+00 : bf16
    %70 = vector.broadcast %cst_75 : bf16 to vector<10x18x128xbf16>
    %c0_76 = arith.constant 0 : index
    %c0_77 = arith.constant 0 : index
    %c0_78 = arith.constant 0 : index
    %71 = vector.load %arg10[%c0_76, %c0_77, %c0_78] : memref<10x18x128xbf16, #tpu.memory_space<vmem>>, vector<10x18x128xbf16>
    tpu.vector_store %arg10[%c0_76, %c0_77, %c0_78], %70 {strides = array<i32>} : memref<10x18x128xbf16, #tpu.memory_space<vmem>>, vector<10x18x128xbf16>,
    %72 = vector.shape_cast %69 : vector<160x128xbf16> to vector<10x16x128xbf16>
    %c0_79 = arith.constant 0 : index
    %c1_80 = arith.constant 1 : index
    %c0_81 = arith.constant 0 : index
    %73 = vector.load %arg10[%c0_79, %c1_80, %c0_81] : memref<10x18x128xbf16, #tpu.memory_space<vmem>>, vector<10x16x128xbf16>
    tpu.vector_store %arg10[%c0_79, %c1_80, %c0_81], %72 {strides = array<i32>} : memref<10x18x128xbf16, #tpu.memory_space<vmem>>, vector<10x16x128xbf16>,
    %c0_i32 = arith.constant 0 : i32
    %74 = arith.cmpi eq, %arg1, %c0_i32 : i32
    %75 = arith.extui %74 : i1 to i32
    %c0_i32_82 = arith.constant 0 : i32
    %76 = arith.cmpi ne, %75, %c0_i32_82 : i32
    scf.if %76 {
      %cst_165 = arith.constant 0.000000e+00 : bf16
      %153 = vector.broadcast %cst_165 : bf16 to vector<18x128xbf16>
      %c0_166 = arith.constant 0 : index
      %c0_167 = arith.constant 0 : index
      %c0_168 = arith.constant 0 : index
      %154 = vector.load %arg10[%c0_166, %c0_167, %c0_168] : memref<10x18x128xbf16, #tpu.memory_space<vmem>>, vector<1x18x128xbf16>
      %155 = vector.shape_cast %154 : vector<1x18x128xbf16> to vector<18x128xbf16>
      %156 = vector.shape_cast %153 : vector<18x128xbf16> to vector<1x18x128xbf16>
      tpu.vector_store %arg10[%c0_166, %c0_167, %c0_168], %156 {strides = array<i32>} : memref<10x18x128xbf16, #tpu.memory_space<vmem>>, vector<1x18x128xbf16>,
    } else {
    }
    %c1_i32 = arith.constant 1 : i32
    %77 = arith.cmpi eq, %arg1, %c1_i32 : i32
    %78 = arith.extui %77 : i1 to i32
    %c0_i32_83 = arith.constant 0 : i32
    %79 = arith.cmpi ne, %78, %c0_i32_83 : i32
    scf.if %79 {
      %cst_165 = arith.constant 0.000000e+00 : bf16
      %153 = vector.broadcast %cst_165 : bf16 to vector<18x128xbf16>
      %c9 = arith.constant 9 : index
      %c0_166 = arith.constant 0 : index
      %c0_167 = arith.constant 0 : index
      %154 = vector.load %arg10[%c9, %c0_166, %c0_167] : memref<10x18x128xbf16, #tpu.memory_space<vmem>>, vector<1x18x128xbf16>
      %155 = vector.shape_cast %154 : vector<1x18x128xbf16> to vector<18x128xbf16>
      %156 = vector.shape_cast %153 : vector<18x128xbf16> to vector<1x18x128xbf16>
      tpu.vector_store %arg10[%c9, %c0_166, %c0_167], %156 {strides = array<i32>} : memref<10x18x128xbf16, #tpu.memory_space<vmem>>, vector<1x18x128xbf16>,
    } else {
    }
    %cst_84 = arith.constant 0.000000e+00 : f32
    %80 = vector.broadcast %cst_84 : f32 to vector<128x128xf32>
    %c0_85 = arith.constant 0 : index
    %c0_86 = arith.constant 0 : index
    %c0_87 = arith.constant 0 : index
    %81 = vector.load %arg10[%c0_85, %c0_86, %c0_87] : memref<10x18x128xbf16, #tpu.memory_space<vmem>>, vector<8x16x128xbf16>
    %82 = vector.shape_cast %81 : vector<8x16x128xbf16> to vector<128x128xbf16>
    %c0_88 = arith.constant 0 : index
    %c0_89 = arith.constant 0 : index
    %c0_90 = arith.constant 0 : index
    %83 = vector.load %arg5[%c0_88, %c0_89, %c0_90] : memref<9x128x128xbf16, #tpu.memory_space<vmem>>, vector<1x128x128xbf16>
    %84 = vector.shape_cast %83 : vector<1x128x128xbf16> to vector<128x128xbf16>
    %cst_91 = arith.constant dense<0.000000e+00> : vector<128x128xf32>
    %85 = tpu.matmul %82, %84, %cst_91 {dimension_numbers = #tpu.dot_dimension_numbers<[1], [0], [0], [1], [0, 0, 1, 1], [], []>} : vector<128x128xbf16>, vector<128x128xbf16>, vector<128x128xf32> -> vector<128x128xf32>
    %86 = arith.addf %80, %85 : vector<128x128xf32>
    %c0_92 = arith.constant 0 : index
    %c1_93 = arith.constant 1 : index
    %c0_94 = arith.constant 0 : index
    %87 = vector.load %arg10[%c0_92, %c1_93, %c0_94] : memref<10x18x128xbf16, #tpu.memory_space<vmem>>, vector<8x16x128xbf16>
    %88 = vector.shape_cast %87 : vector<8x16x128xbf16> to vector<128x128xbf16>
    %c1_95 = arith.constant 1 : index
    %c0_96 = arith.constant 0 : index
    %c0_97 = arith.constant 0 : index
    %89 = vector.load %arg5[%c1_95, %c0_96, %c0_97] : memref<9x128x128xbf16, #tpu.memory_space<vmem>>, vector<1x128x128xbf16>
    %90 = vector.shape_cast %89 : vector<1x128x128xbf16> to vector<128x128xbf16>
    %cst_98 = arith.constant dense<0.000000e+00> : vector<128x128xf32>
    %91 = tpu.matmul %88, %90, %cst_98 {dimension_numbers = #tpu.dot_dimension_numbers<[1], [0], [0], [1], [0, 0, 1, 1], [], []>} : vector<128x128xbf16>, vector<128x128xbf16>, vector<128x128xf32> -> vector<128x128xf32>
    %92 = arith.addf %86, %91 : vector<128x128xf32>
    %c0_99 = arith.constant 0 : index
    %c2_100 = arith.constant 2 : index
    %c0_101 = arith.constant 0 : index
    %93 = vector.load %arg10[%c0_99, %c2_100, %c0_101] : memref<10x18x128xbf16, #tpu.memory_space<vmem>>, vector<8x16x128xbf16>
    %94 = vector.shape_cast %93 : vector<8x16x128xbf16> to vector<128x128xbf16>
    %c2_102 = arith.constant 2 : index
    %c0_103 = arith.constant 0 : index
    %c0_104 = arith.constant 0 : index
    %95 = vector.load %arg5[%c2_102, %c0_103, %c0_104] : memref<9x128x128xbf16, #tpu.memory_space<vmem>>, vector<1x128x128xbf16>
    %96 = vector.shape_cast %95 : vector<1x128x128xbf16> to vector<128x128xbf16>
    %cst_105 = arith.constant dense<0.000000e+00> : vector<128x128xf32>
    %97 = tpu.matmul %94, %96, %cst_105 {dimension_numbers = #tpu.dot_dimension_numbers<[1], [0], [0], [1], [0, 0, 1, 1], [], []>} : vector<128x128xbf16>, vector<128x128xbf16>, vector<128x128xf32> -> vector<128x128xf32>
    %98 = arith.addf %92, %97 : vector<128x128xf32>
    %c1_106 = arith.constant 1 : index
    %c0_107 = arith.constant 0 : index
    %c0_108 = arith.constant 0 : index
    %99 = vector.load %arg10[%c1_106, %c0_107, %c0_108] : memref<10x18x128xbf16, #tpu.memory_space<vmem>>, vector<8x16x128xbf16>
    %100 = vector.shape_cast %99 : vector<8x16x128xbf16> to vector<128x128xbf16>
    %c3_109 = arith.constant 3 : index
    %c0_110 = arith.constant 0 : index
    %c0_111 = arith.constant 0 : index
    %101 = vector.load %arg5[%c3_109, %c0_110, %c0_111] : memref<9x128x128xbf16, #tpu.memory_space<vmem>>, vector<1x128x128xbf16>
    %102 = vector.shape_cast %101 : vector<1x128x128xbf16> to vector<128x128xbf16>
    %cst_112 = arith.constant dense<0.000000e+00> : vector<128x128xf32>
    %103 = tpu.matmul %100, %102, %cst_112 {dimension_numbers = #tpu.dot_dimension_numbers<[1], [0], [0], [1], [0, 0, 1, 1], [], []>} : vector<128x128xbf16>, vector<128x128xbf16>, vector<128x128xf32> -> vector<128x128xf32>
    %104 = arith.addf %98, %103 : vector<128x128xf32>
    %c1_113 = arith.constant 1 : index
    %c1_114 = arith.constant 1 : index
    %c0_115 = arith.constant 0 : index
    %105 = vector.load %arg10[%c1_113, %c1_114, %c0_115] : memref<10x18x128xbf16, #tpu.memory_space<vmem>>, vector<8x16x128xbf16>
    %106 = vector.shape_cast %105 : vector<8x16x128xbf16> to vector<128x128xbf16>
    %c4_116 = arith.constant 4 : index
    %c0_117 = arith.constant 0 : index
    %c0_118 = arith.constant 0 : index
    %107 = vector.load %arg5[%c4_116, %c0_117, %c0_118] : memref<9x128x128xbf16, #tpu.memory_space<vmem>>, vector<1x128x128xbf16>
    %108 = vector.shape_cast %107 : vector<1x128x128xbf16> to vector<128x128xbf16>
    %cst_119 = arith.constant dense<0.000000e+00> : vector<128x128xf32>
    %109 = tpu.matmul %106, %108, %cst_119 {dimension_numbers = #tpu.dot_dimension_numbers<[1], [0], [0], [1], [0, 0, 1, 1], [], []>} : vector<128x128xbf16>, vector<128x128xbf16>, vector<128x128xf32> -> vector<128x128xf32>
    %110 = arith.addf %104, %109 : vector<128x128xf32>
    %c1_120 = arith.constant 1 : index
    %c2_121 = arith.constant 2 : index
    %c0_122 = arith.constant 0 : index
    %111 = vector.load %arg10[%c1_120, %c2_121, %c0_122] : memref<10x18x128xbf16, #tpu.memory_space<vmem>>, vector<8x16x128xbf16>
    %112 = vector.shape_cast %111 : vector<8x16x128xbf16> to vector<128x128xbf16>
    %c5_123 = arith.constant 5 : index
    %c0_124 = arith.constant 0 : index
    %c0_125 = arith.constant 0 : index
    %113 = vector.load %arg5[%c5_123, %c0_124, %c0_125] : memref<9x128x128xbf16, #tpu.memory_space<vmem>>, vector<1x128x128xbf16>
    %114 = vector.shape_cast %113 : vector<1x128x128xbf16> to vector<128x128xbf16>
    %cst_126 = arith.constant dense<0.000000e+00> : vector<128x128xf32>
    %115 = tpu.matmul %112, %114, %cst_126 {dimension_numbers = #tpu.dot_dimension_numbers<[1], [0], [0], [1], [0, 0, 1, 1], [], []>} : vector<128x128xbf16>, vector<128x128xbf16>, vector<128x128xf32> -> vector<128x128xf32>
    %116 = arith.addf %110, %115 : vector<128x128xf32>
    %c2_127 = arith.constant 2 : index
    %c0_128 = arith.constant 0 : index
    %c0_129 = arith.constant 0 : index
    %117 = vector.load %arg10[%c2_127, %c0_128, %c0_129] : memref<10x18x128xbf16, #tpu.memory_space<vmem>>, vector<8x16x128xbf16>
    %118 = vector.shape_cast %117 : vector<8x16x128xbf16> to vector<128x128xbf16>
    %c6_130 = arith.constant 6 : index
    %c0_131 = arith.constant 0 : index
    %c0_132 = arith.constant 0 : index
    %119 = vector.load %arg5[%c6_130, %c0_131, %c0_132] : memref<9x128x128xbf16, #tpu.memory_space<vmem>>, vector<1x128x128xbf16>
    %120 = vector.shape_cast %119 : vector<1x128x128xbf16> to vector<128x128xbf16>
    %cst_133 = arith.constant dense<0.000000e+00> : vector<128x128xf32>
    %121 = tpu.matmul %118, %120, %cst_133 {dimension_numbers = #tpu.dot_dimension_numbers<[1], [0], [0], [1], [0, 0, 1, 1], [], []>} : vector<128x128xbf16>, vector<128x128xbf16>, vector<128x128xf32> -> vector<128x128xf32>
    %122 = arith.addf %116, %121 : vector<128x128xf32>
    %c2_134 = arith.constant 2 : index
    %c1_135 = arith.constant 1 : index
    %c0_136 = arith.constant 0 : index
    %123 = vector.load %arg10[%c2_134, %c1_135, %c0_136] : memref<10x18x128xbf16, #tpu.memory_space<vmem>>, vector<8x16x128xbf16>
    %124 = vector.shape_cast %123 : vector<8x16x128xbf16> to vector<128x128xbf16>
    %c7_137 = arith.constant 7 : index
    %c0_138 = arith.constant 0 : index
    %c0_139 = arith.constant 0 : index
    %125 = vector.load %arg5[%c7_137, %c0_138, %c0_139] : memref<9x128x128xbf16, #tpu.memory_space<vmem>>, vector<1x128x128xbf16>
    %126 = vector.shape_cast %125 : vector<1x128x128xbf16> to vector<128x128xbf16>
    %cst_140 = arith.constant dense<0.000000e+00> : vector<128x128xf32>
    %127 = tpu.matmul %124, %126, %cst_140 {dimension_numbers = #tpu.dot_dimension_numbers<[1], [0], [0], [1], [0, 0, 1, 1], [], []>} : vector<128x128xbf16>, vector<128x128xbf16>, vector<128x128xf32> -> vector<128x128xf32>
    %128 = arith.addf %122, %127 : vector<128x128xf32>
    %c2_141 = arith.constant 2 : index
    %c2_142 = arith.constant 2 : index
    %c0_143 = arith.constant 0 : index
    %129 = vector.load %arg10[%c2_141, %c2_142, %c0_143] : memref<10x18x128xbf16, #tpu.memory_space<vmem>>, vector<8x16x128xbf16>
    %130 = vector.shape_cast %129 : vector<8x16x128xbf16> to vector<128x128xbf16>
    %c8_144 = arith.constant 8 : index
    %c0_145 = arith.constant 0 : index
    %c0_146 = arith.constant 0 : index
    %131 = vector.load %arg5[%c8_144, %c0_145, %c0_146] : memref<9x128x128xbf16, #tpu.memory_space<vmem>>, vector<1x128x128xbf16>
    %132 = vector.shape_cast %131 : vector<1x128x128xbf16> to vector<128x128xbf16>
    %cst_147 = arith.constant dense<0.000000e+00> : vector<128x128xf32>
    %133 = tpu.matmul %130, %132, %cst_147 {dimension_numbers = #tpu.dot_dimension_numbers<[1], [0], [0], [1], [0, 0, 1, 1], [], []>} : vector<128x128xbf16>, vector<128x128xbf16>, vector<128x128xf32> -> vector<128x128xf32>
    %134 = arith.addf %128, %133 : vector<128x128xf32>
    %c0_148 = arith.constant 0 : index
    %c0_149 = arith.constant 0 : index
    %135 = vector.load %arg6[%c0_148, %c0_149] : memref<1x128xf32, #tpu.memory_space<vmem>>, vector<1x128xf32>
    %136 = vector.broadcast %135 : vector<1x128xf32> to vector<128x128xf32>
    %137 = arith.addf %134, %136 : vector<128x128xf32>
    %cst_150 = arith.constant 0.000000e+00 : f32
    %138 = vector.broadcast %cst_150 : f32 to vector<128x128xf32>
    %139 = arith.maximumf %137, %138 : vector<128x128xf32>
    %c0_151 = arith.constant 0 : index
    %c0_152 = arith.constant 0 : index
    %c2_153 = arith.constant 2 : index
    %c1_154 = arith.constant 1 : index
    %c0_155 = arith.constant 0 : index
    %140 = vector.load %arg2[%c0_151, %c0_152, %c2_153, %c1_154, %c0_155] : memref<1x1x12x18x128xbf16, #tpu.memory_space<vmem>>, vector<1x1x8x16x128xbf16>
    %141 = vector.shape_cast %140 : vector<1x1x8x16x128xbf16> to vector<8x16x128xbf16>
    %142 = vector.shape_cast %141 : vector<8x16x128xbf16> to vector<128x128xbf16>
    %c0_156 = arith.constant 0 : index
    %c0_157 = arith.constant 0 : index
    %143 = vector.load %arg7[%c0_156, %c0_157] : memref<128x128xbf16, #tpu.memory_space<vmem>>, vector<128x128xbf16>
    %cst_158 = arith.constant dense<0.000000e+00> : vector<128x128xf32>
    %144 = tpu.matmul %142, %143, %cst_158 {dimension_numbers = #tpu.dot_dimension_numbers<[1], [0], [0], [1], [0, 0, 1, 1], [], []>} : vector<128x128xbf16>, vector<128x128xbf16>, vector<128x128xf32> -> vector<128x128xf32>
    %c0_159 = arith.constant 0 : index
    %c0_160 = arith.constant 0 : index
    %145 = vector.load %arg8[%c0_159, %c0_160] : memref<1x128xf32, #tpu.memory_space<vmem>>, vector<1x128xf32>
    %146 = vector.broadcast %145 : vector<1x128xf32> to vector<128x128xf32>
    %147 = arith.addf %144, %146 : vector<128x128xf32>
    %148 = arith.addf %139, %147 : vector<128x128xf32>
    %149 = vector.shape_cast %148 : vector<128x128xf32> to vector<8x16x128xf32>
    %c0_161 = arith.constant 0 : index
    %c0_162 = arith.constant 0 : index
    %c0_163 = arith.constant 0 : index
    %c0_164 = arith.constant 0 : index
    %150 = vector.load %arg9[%c0_161, %c0_162, %c0_163, %c0_164] : memref<1x8x16x128xf32, #tpu.memory_space<vmem>>, vector<1x8x16x128xf32>
    %151 = vector.shape_cast %150 : vector<1x8x16x128xf32> to vector<8x16x128xf32>
    %152 = vector.shape_cast %149 : vector<8x16x128xf32> to vector<1x8x16x128xf32>
    tpu.vector_store %arg9[%c0_161, %c0_162, %c0_163, %c0_164], %152 {strides = array<i32>} : memref<1x8x16x128xf32, #tpu.memory_space<vmem>>, vector<1x8x16x128xf32>,
    return
  }
  func.func @transform_0(%arg0: i32, %arg1: i32) -> (i32, i32, i32, i32, i32) {
    %c0_i32 = arith.constant 0 : i32
    %c0_i32_0 = arith.constant 0 : i32
    %c0_i32_1 = arith.constant 0 : i32
    %c0_i32_2 = arith.constant 0 : i32
    return %arg0, %arg1, %c0_i32, %c0_i32_0, %c0_i32_1 : i32, i32, i32, i32, i32
  }
  func.func @transform_1(%arg0: i32, %arg1: i32) -> (i32, i32, i32) {
    %c0_i32 = arith.constant 0 : i32
    %c0_i32_0 = arith.constant 0 : i32
    %c0_i32_1 = arith.constant 0 : i32
    %c0_i32_2 = arith.constant 0 : i32
    return %c0_i32, %c0_i32_0, %c0_i32_1 : i32, i32, i32
  }
  func.func @transform_2(%arg0: i32, %arg1: i32) -> (i32, i32) {
    %c0_i32 = arith.constant 0 : i32
    %c0_i32_0 = arith.constant 0 : i32
    %c0_i32_1 = arith.constant 0 : i32
    return %c0_i32, %c0_i32_0 : i32, i32
  }
  func.func @transform_3(%arg0: i32, %arg1: i32) -> (i32, i32, i32) {
    %c0_i32 = arith.constant 0 : i32
    %c0_i32_0 = arith.constant 0 : i32
    %c0_i32_1 = arith.constant 0 : i32
    %c0_i32_2 = arith.constant 0 : i32
    return %c0_i32, %c0_i32_0, %c0_i32_1 : i32, i32, i32
  }
  func.func @transform_4(%arg0: i32, %arg1: i32) -> (i32, i32) {
    %c0_i32 = arith.constant 0 : i32
    %c0_i32_0 = arith.constant 0 : i32
    %c0_i32_1 = arith.constant 0 : i32
    return %c0_i32, %c0_i32_0 : i32, i32
  }
  func.func @transform_5(%arg0: i32, %arg1: i32) -> (i32, i32) {
    %c0_i32 = arith.constant 0 : i32
    %c0_i32_0 = arith.constant 0 : i32
    %c0_i32_1 = arith.constant 0 : i32
    return %c0_i32, %c0_i32_0 : i32, i32
  }
  func.func @transform_6(%arg0: i32, %arg1: i32) -> (i32, i32) {
    %c0_i32 = arith.constant 0 : i32
    %c0_i32_0 = arith.constant 0 : i32
    %c0_i32_1 = arith.constant 0 : i32
    return %c0_i32, %c0_i32_0 : i32, i32
  }
  func.func @transform_7(%arg0: i32, %arg1: i32) -> (i32, i32, i32, i32) {
    %c0_i32 = arith.constant 0 : i32
    %c0_i32_0 = arith.constant 0 : i32
    %c0_i32_1 = arith.constant 0 : i32
    return %arg0, %arg1, %c0_i32, %c0_i32_0 : i32, i32, i32, i32
  }
}

</mosaic_0001>

<bundles_post_ra>
// kernel: double_conv_forward.1
= control target key start
LH: loop header
LB: loop body
LE: loop exit
PB: predicated region body
PF: predicated region fallthrough
CT: control target
= control target key end

     0   :  { %s8164_s24 = smov 0   ;;  %s8166_s25 = smov 0   ;;  %s10311_s0 = inlined_call_operand.vmem [shape: bf16[2,2,12,18,128], index: 0, kind: input, shape index: {}]   ;;  %s10312_s1 = inlined_call_operand.vmem [shape: bf16[9,128,128], index: 1, kind: input, shape index: {}]   ;;  %s10313_s2 = inlined_call_operand.vmem [shape: f32[1,128], index: 2, kind: input, shape index: {}]   ;;  %s10314_s3 = inlined_call_operand.vmem [shape: bf16[9,128,128], index: 3, kind: input, shape index: {}]   ;;  %s10315_s4 = inlined_call_operand.vmem [shape: f32[1,128], index: 4, kind: input, shape index: {}]   ;;  %s10316_s5 = inlined_call_operand.vmem [shape: bf16[128,128], index: 5, kind: input, shape index: {}]   ;;  %s10317_s6 = inlined_call_operand.vmem [shape: f32[1,128], index: 6, kind: input, shape index: {}]   ;;  %s10318_s7 = inlined_call_operand.vmem [shape: f32[2,16,16,128], index: 7, kind: output, shape index: {}]  }
   0x1   :  { %s8168_s26 = smov 0   ;;  %s8170_s27 = smov 0  }
   0x2   :  { %s8172_s28 = smov 0  }
   0x3 LB: > { %s26_s29 = sadd.s32 1, %s8111_s26  ;;  %s29_s30 = sadd.s32 1, %s8115_s27  ;;  %s8119_s28 = sphi %s8172_s28, %s17_s28   ;;  %s8115_s27 = sphi %s8170_s27, %s10362_s27   ;;  %s8111_s26 = sphi %s8168_s26, %s10361_s26   ;;  %s8107_s25 = sphi %s8166_s25, %s10360_s25   ;;  %s8103_s24 = sphi %s8164_s24, %s10359_s24  }
   0x4   : > { %p27_p0 = scmp.ge.s32.totalorder %s26_s29, 2  ;;  %p6506_p1 = scmp.ge.s32.totalorder %s8119_s28, 1 }
   0x5   : > { %p257_p2 = scmp.lt.s32.totalorder %s8119_s28, 5 }
   0x6   : > { %s10364_s29 = smov (%p27_p0, %s26_s29), 0  ;;  %s10366_s30 = smov (!%p27_p0, %s29_s30), %s8115_s27 }
   0x7   : > { %p258_p3 = pnand %p6506_p1, %p257_p2  ;;  %p31_p4 = scmp.ge.s32.totalorder %s10366_s30, 2 }
   0x9   : > { %s10368_s30 = smov (%p31_p4, %s10366_s30), 0  ;;  %261 = sbr.rel (%p258_p3) target bundleno = 1210 (0x4ba), region = 48 }
   0xe   : > { %v7819_v0 = vld [vmem:[%s10312_s1 + $0x78] sm:$0xff]  ;;  %p298_p5 = scmp.lt.s32.totalorder %s8107_s25, 1  ;;  %p300_p6 = scmp.lt.s32.totalorder %s8103_s24, 1  ;;  %v7818_v4 = vld [vmem:[%s10312_s1 + $0x70] sm:$0xff]  ;;  %v7817_v8 = vld [vmem:[%s10312_s1 + $0x68] sm:$0xff]  ;;  %vm969_vm0 = vcmask 1042432  }
   0xf   : > { %v7811_v1 = vld [vmem:[%s10312_s1 + $0x38] sm:$0xff]  ;;  %s6508_s16 = sshll.u32 %s8103_s24, 3  ;;  %713 = vmatpush.bf16.msra.mxu0 %v7819_v0  ;;  %v7810_v5 = vld [vmem:[%s10312_s1 + $0x30] sm:$0xff]  ;;  %v7809_v9 = vld [vmem:[%s10312_s1 + $0x28] sm:$0xff]  ;;  %vm970_vm1 = vcmask 1046532   ;;  %vm3469_vm6 = vcmask 1043456  }
  0x10   : > { %v7827_v2 = vld [vmem:[%s10312_s1 + $0xb8] sm:$0xff]  ;;  %880 = vmatpush.bf16.msra.mxu1 %v7811_v1  ;;  %s10370_s25 = smov (!%p298_p5, %s8107_s25), 1  ;;  %v7826_v6 = vld [vmem:[%s10312_s1 + $0xb0] sm:$0xff]  ;;  %p310_p7 = scmp.lt.s32.totalorder %s6508_s16, 15  ;;  %v7825_v10 = vld [vmem:[%s10312_s1 + $0xa8] sm:$0xff]  ;;  %vm3476_vm11 = vcmask 1040384  }
  0x11   : > { %v7845_v3 = vld [vmem:[%s10312_s1 + $0xf8] sm:$0xff]  ;;  %1147 = vmatpush.bf16.msra.mxu2 %v7827_v2  ;;  %v7844_v7 = vld [vmem:[%s10312_s1 + $0xf0] sm:$0xff]  ;;  %s301_s9 = scalar_select %p300_p6, %s8103_s24, 1  ;;  %v7843_v11 = vld [vmem:[%s10312_s1 + $0xe8] sm:$0xff]  ;;  %vm365_vm2 = vsmask.f32 3328 }
  0x12   : > { %1372 = vmatpush.bf16.msra.mxu3 %v7845_v3  ;;  %s8025_s10 = smul.u32 72, %s10370_s25  ;;  %s6510_s12 = sshll.u32 %s10370_s25, 5  ;;  %v7816_v12 = vld [vmem:[%s10312_s1 + $0x60] sm:$0xff]  ;;  %v7815_v23 = vld [vmem:[%s10312_s1 + $0x58] sm:$0xff]  ;;  %vm366_vm3 = vsmask.f32 7440  ;;  %vm8283_vm4 = vmor %vm969_vm0, %vm970_vm1 }
  0x13   : > { %s8024_s11 = smul.u32 36, %s301_s9  ;;  %714 = vmatpush.bf16.msra.mxu0 %v7818_v4  ;;  %s10372_s16 = smov (!%p310_p7, %s6508_s16), 15  ;;  %v7808_v13 = vld [vmem:[%s10312_s1 + $0x20] sm:$0xff]  ;;  %v7807_v26 = vld [vmem:[%s10312_s1 + $0x18] sm:$0xff]  ;;  %v7814_v36 = vld [vmem:[%s10312_s1 + $0x50] sm:$0xff] }
  0x14   : > { %881 = vmatpush.bf16.msra.mxu1 %v7810_v5  ;;  %s6509_s23 = sshll.u32 %s10372_s16, 1  ;;  %v7824_v14 = vld [vmem:[%s10312_s1 + $0xa0] sm:$0xff]  ;;  %v7823_v31 = vld [vmem:[%s10312_s1 + $0x98] sm:$0xff]  ;;  %v7806_v37 = vld [vmem:[%s10312_s1 + $0x10] sm:$0xff]  ;;  %vm3470_vm7 = vsmask.f32 7938 }
  0x15   : > { %1148 = vmatpush.bf16.msra.mxu2 %v7826_v6  ;;  %s304_s25 = sadd.s32 %s8025_s10, %s8024_s11  ;;  %s314_s19 = sadd.s32 %s6510_s12, %s6509_s23  ;;  %v7842_v15 = vld [vmem:[%s10312_s1 + $0xe0] sm:$0xff]  ;;  %v7841_v32 = vld [vmem:[%s10312_s1 + $0xd8] sm:$0xff]  ;;  %v7822_v39 = vld [vmem:[%s10312_s1 + $0x90] sm:$0xff]  ;;  %vm3266_vm9 = vsmask.f32 256 }
  0x16   : > { %1373 = vmatpush.bf16.msra.mxu3 %v7844_v7  ;;  %s6507_s22 = sshll.u32 %s304_s25, 2  ;;  %s6511_s21 = sshll.u32 %s314_s19, 3  ;;  %v7840_v45 = vld [vmem:[%s10312_s1 + $0xd0] sm:$0xff]  ;;  %vm8293_vm5 = vmor %vm365_vm2, %vm366_vm3  ;;  %v7813_v53 = vld [vmem:[%s10312_s1 + $0x48] sm:$0xff]  ;;  %vm3267_vm10 = vsmask.f32 4368 }
  0x17   : > { %s8244_s18 = scalar_lea.vmem %s10311_s0, %s6507_s22  ;;  %715 = vmatpush.bf16.msra.mxu0 %v7817_v8  ;;  %s8256_s8 = scalar_lea.vmem %s10318_s7, %s6511_s21  ;;  %v7805_v54 = vld [vmem:[%s10312_s1 + $0x8] sm:$0xff]  ;;  %v7812_v2 = vld [vmem:[%s10312_s1 + $0x40] sm:$0xff]  ;;  %vm9207_vm8 = vmand %vm3469_vm6, %vm3470_vm7 }
  0x18   : > { %882 = vmatpush.bf16.msra.mxu1 %v7809_v9  ;;  %v319_v16 = vld [vmem:[%s8244_s18] sm:$0xf]  ;;  %v320_v17 = vld [vmem:[%s8244_s18 + $0x4] sm:$0xf]  ;;  %v355_v18 = vld [vmem:[%s8244_s18 + $0x8] sm:$0x1] }
  0x19   : > { %1149 = vmatpush.bf16.msra.mxu2 %v7825_v10  ;;  %v369_v19 = vshrl.u32 %v319_v16, 16  ;;  %v372_v20 = vshll.u32 %v319_v16, 16  ;;  %v378_v21 = vshll.u32 %v320_v17, 16  ;;  %v382_v22 = vshrl.u32 %v320_v17, 16  ;;  %v939_v30 = vld [vmem:[%s8244_s18] sm:$0xe]  ;;  %vm9221_vm12 = vmor %vm3266_vm9, %vm3267_vm10 }
  0x1a   : > { %1374 = vmatpush.bf16.msra.mxu3 %v7843_v11  ;;  %v388_v29 = vshll.u32 %v355_v18, 16  ;;  %v974_v34 = vrot.slane %v320_v17, 5  ;;  %v6632_v38 = vrot.slane %v939_v30, 9  ;;  %v321_v44 = vld [vmem:[%s8244_s18 + $0xc] sm:$0xf]  ;;  %v977_v48 = vrot.slane %v355_v18, 5  ;;  %vm9226_vm13 = vmand %vm3476_vm11, %vm3266_vm9 }
  0x1b   : > { %v371_v24 = vrot.slane %v369_v19, 4  ;;  %v374_v25 = vrot.slane %v372_v20, 5  ;;  %716 = vmatpush.bf16.msra.mxu0 %v7816_v12  ;;  %v380_v27 = vrot.slane %v378_v21, 5  ;;  %v384_v28 = vrot.slane %v382_v22, 4  ;;  %v8298_v49 = vld [vmem:[%s8244_s18 + $0x10] sm:$0xf] }
  0x1c   : > { %883 = vmatpush.bf16.msra.mxu1 %v7808_v13  ;;  %v390_v42 = vrot.slane %v388_v29, 5  ;;  %v976_v47 = vrot.slane %v974_v34, 4  ;;  %v975_v50 = vsel %vm8283_vm4, %v6632_v38, %v974_v34  ;;  %v393_v51 = vshrl.u32 %v321_v44, 16  ;;  %v7821_v59 = vld [vmem:[%s10312_s1 + $0x88] sm:$0xff]  ;;  %v7804_v3 = vld [vmem:[%s10312_s1] sm:$0xff]  ;;  %v7853_v11 = vld [vmem:[%s10312_s1 + $0x138] sm:$0xff] }
  0x1d   : > { %1150 = vmatpush.bf16.msra.mxu2 %v7824_v14  ;;  %v375_v33 = vor.u32 %v374_v25, %v371_v24  ;;  %v385_v35 = vor.u32 %v384_v28, %v380_v27  ;;  %v396_v52 = vshll.u32 %v321_v44, 16  ;;  %v402_v57 = vshll.u32 %v8298_v49, 16  ;;  %v7839_v60 = vld [vmem:[%s10312_s1 + $0xc8] sm:$0xff]  ;;  %v7820_v8 = vld [vmem:[%s10312_s1 + $0x80] sm:$0xff]  ;;  %v356_v10 = vld [vmem:[%s8244_s18 + $0x14] sm:$0x1] }
  0x1e   : > { %1375 = vmatpush.bf16.msra.mxu3 %v7842_v15  ;;  %v406_v58 = vshrl.u32 %v8298_v49, 16  ;;  %v978_v61 = vsel %vm8283_vm4, %v976_v47, %v977_v48  ;;  %v1059_v0 = vunpack.c.l.b16 %v975_v50  ;;  %v395_v1 = vrot.slane %v393_v51, 4  ;;  %v7838_v9 = vld [vmem:[%s10312_s1 + $0xc0] sm:$0xff]  ;;  %v7828_v15 = vld [vmem:[%s8244_s18 + $0xc] sm:$0xff]  ;;  %v324_v29 = vld [vmem:[%s8244_s18 + $0x1c] sm:$0xf] }
  0x1f   : > { %717 = vmatpush.bf16.msra.mxu0 %v7815_v23  ;;  %v376_v40 = vrot.slane %v375_v33, 4  ;;  %v386_v41 = vrot.slane %v385_v35, 4  ;;  %v1060_v4 = vunpack.c.l.b16 %v978_v61  ;;  %v398_v5 = vrot.slane %v396_v52, 5  ;;  %v7794_v13 = vld [vmem:[%s8244_s18] sm:$0xff]  ;;  %v940_v19 = vld [vmem:[%s8244_s18 + $0xc] sm:$0xe] }
  0x20   : > { %884 = vmatpush.bf16.msra.mxu1 %v7807_v26  ;;  %v404_v6 = vrot.slane %v402_v57, 5  ;;  %v408_v7 = vrot.slane %v406_v58, 4  ;;  %v412_v18 = vshll.u32 %v356_v10, 16  ;;  %v981_v20 = vrot.slane %v8298_v49, 5  ;;  %v7852_v21 = vld [vmem:[%s10312_s1 + $0x130] sm:$0xff]  ;;  %v7851_v30 = vld [vmem:[%s10312_s1 + $0x128] sm:$0xff] }
  0x21   : > { %1151 = vmatpush.bf16.msra.mxu2 %v7823_v31  ;;  %v381_v55 = vsel %vm8293_vm5, %v376_v40, %v380_v27  ;;  %v391_v56 = vsel %vm8293_vm5, %v386_v41, %v390_v42  ;;  %v1079_v14 = vpack.c.b16 %v1060_v4, %v1059_v0  ;;  %v399_v16 = vor.u32 %v398_v5, %v395_v1  ;;  %v323_v26 = vld [vmem:[%s8244_s18 + $0x18] sm:$0xf]  ;;  %v357_v49 = vld [vmem:[%s8244_s18 + $0x20] sm:$0x1]  ;;  %v7795_v51 = vld [vmem:[%s8244_s18 + $0xc] sm:$0xff]  ;;  %p7198_p8 = scmp.ne.s32.totalorder %s8103_s24, 0 }
  0x22   : > { %1376 = vmatpush.bf16.msra.mxu3 %v7841_v32  ;;  %v625_v62 = vunpack.c.l.b16 %v381_v55  ;;  %v626_v63 = vunpack.c.l.b16 %v391_v56  ;;  %v409_v17 = vor.u32 %v408_v7, %v404_v6  ;;  %v6633_v22 = vrot.slane %v940_v19, 9  ;;  %v941_v58 = vld [vmem:[%s8244_s18 + $0x18] sm:$0xe]  ;;  %v7850_v0 = vld [vmem:[%s10312_s1 + $0x120] sm:$0xff] }
  0x23   : > { %718 = vmatpush.bf16.msra.mxu0 %v7814_v36  ;;  %v400_v23 = vrot.slane %v399_v16, 4  ;;  %v414_v25 = vrot.slane %v412_v18, 5  ;;  %v983_v27 = vrot.slane %v981_v20, 4  ;;  %v984_v28 = vrot.slane %v356_v10, 5  ;;  %v358_v16 = vld [vmem:[%s8244_s18 + $0x2c] sm:$0x1] }
  0x24   : > { %885 = vmatpush.bf16.msra.mxu1 %v7806_v37  ;;  %v645_v12 = vpack.c.b16 %v626_v63, %v625_v62  ;;  %v410_v24 = vrot.slane %v409_v17, 4  ;;  %v982_v31 = vsel %vm8283_vm4, %v6633_v22, %v981_v20  ;;  %v417_v32 = vshrl.u32 %v323_v26, 16  ;;  %v326_v63 = vld [vmem:[%s8244_s18 + $0x28] sm:$0xf] }
  0x25   : > { %1152 = vmatpush.bf16.msra.mxu2 %v7822_v39  ;;  %v420_v33 = vshll.u32 %v323_v26, 16  ;;  %v405_v34 = vsel %vm8293_vm5, %v400_v23, %v404_v6  ;;  %v426_v36 = vshll.u32 %v324_v29, 16  ;;  %v430_v37 = vshrl.u32 %v324_v29, 16 }
  0x26   : > { %1377 = vmatpush.bf16.msra.mxu3 %v7840_v45  ;;  %v415_v35 = vsel %vm8293_vm5, %v410_v24, %v414_v25  ;;  %v985_v38 = vsel %vm8283_vm4, %v983_v27, %v984_v28  ;;  %v627_v39 = vunpack.c.l.b16 %v405_v34  ;;  %v1061_v41 = vunpack.c.l.b16 %v982_v31  ;;  %v7796_v24 = vld [vmem:[%s8244_s18 + $0x18] sm:$0xff]  ;;  %v7830_v28 = vld [vmem:[%s8244_s18 + $0x24] sm:$0xff] }
  0x27   : > { %719 = vmatpush.bf16.msra.mxu0 %v7813_v53  ;;  %v628_v40 = vunpack.c.l.b16 %v415_v35  ;;  %v419_v42 = vrot.slane %v417_v32, 4  ;;  %v1062_v44 = vunpack.c.l.b16 %v985_v38  ;;  %v422_v45 = vrot.slane %v420_v33, 5  ;;  %v7829_v53 = vld [vmem:[%s8244_s18 + $0x18] sm:$0xff] }
  0x28   : > { %886 = vmatpush.bf16.msra.mxu1 %v7805_v54  ;;  %v428_v47 = vrot.slane %v426_v36, 5  ;;  %v432_v48 = vrot.slane %v430_v37, 4  ;;  %v436_v56 = vshll.u32 %v357_v49, 16  ;;  %v988_v57 = vrot.slane %v324_v29, 5  ;;  %v942_v29 = vld [vmem:[%s8244_s18 + $0x24] sm:$0xe] }
  0x29   : > { %1153 = vmatpush.bf16.msra.mxu2 %v7821_v59  ;;  %v646_v50 = vpack.c.b16 %v628_v40, %v627_v39  ;;  %v1080_v52 = vpack.c.b16 %v1062_v44, %v1061_v41  ;;  %v423_v54 = vor.u32 %v422_v45, %v419_v42  ;;  %v325_v59 = vld [vmem:[%s8244_s18 + $0x24] sm:$0xf]  ;;  %v6634_v1 = vrot.slane %v941_v58, 9  ;;  %v327_v36 = vld [vmem:[%s8244_s18 + $0x30] sm:$0xf] }
  0x2a   : > { %1378 = vmatpush.bf16.msra.mxu3 %v7839_v60  ;;  %v433_v55 = vor.u32 %v432_v48, %v428_v47  ;;  %v438_v62 = vrot.slane %v436_v56, 5  ;;  %v441_v4 = vshrl.u32 %v325_v59, 16  ;;  %v444_v5 = vshll.u32 %v325_v59, 16  ;;  %v328_v37 = vld [vmem:[%s8244_s18 + $0x34] sm:$0xf]  ;;  %v7797_v58 = vld [vmem:[%s8244_s18 + $0x24] sm:$0xff] }
  0x2b   : > { %720 = vmatpush.bf16.msra.mxu0 %v7812_v2  ;;  %v424_v60 = vrot.slane %v423_v54, 4  ;;  %v990_v2 = vrot.slane %v988_v57, 4  ;;  %v450_v6 = vshll.u32 %v326_v63, 16  ;;  %v454_v7 = vshrl.u32 %v326_v63, 16  ;;  %v359_v56 = vld [vmem:[%s8244_s18 + $0x38] sm:$0x1] }
  0x2c   : > { %887 = vmatpush.bf16.msra.mxu1 %v7804_v3  ;;  %v434_v61 = vrot.slane %v433_v55, 4  ;;  %v991_v3 = vrot.slane %v357_v49, 5  ;;  %v989_v10 = vsel %vm8283_vm4, %v6634_v1, %v988_v57  ;;  %v460_v22 = vshll.u32 %v358_v16, 16  ;;  %v943_v1 = vld [vmem:[%s8244_s18 + $0x30] sm:$0xe] }
  0x2d   : > { %1154 = vmatpush.bf16.msra.mxu2 %v7820_v8  ;;  %v429_v8 = vsel %vm8293_vm5, %v424_v60, %v428_v47  ;;  %v452_v17 = vrot.slane %v450_v6, 5  ;;  %v456_v18 = vrot.slane %v454_v7, 4  ;;  %v1063_v19 = vunpack.c.l.b16 %v989_v10  ;;  %v7831_v60 = vld [vmem:[%s8244_s18 + $0x30] sm:$0xff]  ;;  %v330_v6 = vld [vmem:[%s8244_s18 + $0x40] sm:$0xf]  ;;  %v7849_v7 = vld [vmem:[%s10312_s1 + $0x118] sm:$0xff] }
  0x2e   : > { %1379 = vmatpush.bf16.msra.mxu3 %v7838_v9  ;;  %721 = vmatmul.bf16.vlgmr.msra.gmra.mxu0 %v645_v12  ;;  %v439_v9 = vsel %vm8293_vm5, %v434_v61, %v438_v62  ;;  %v443_v12 = vrot.slane %v441_v4, 4  ;;  %v995_v26 = vrot.slane %v326_v63, 5  ;;  %v462_v31 = vrot.slane %v460_v22, 5 }
  0x2f   : > { %1826 = vmatpush.bf16.msrb.mxu0 %v7853_v11  ;;  %888 = vmatmul.bf16.vlgmr.msra.gmra.mxu1 %v7794_v13  ;;  %v992_v11 = vsel %vm8283_vm4, %v990_v2, %v991_v3  ;;  %v446_v13 = vrot.slane %v444_v5, 5  ;;  %v457_v25 = vor.u32 %v456_v18, %v452_v17  ;;  %v6635_v33 = vrot.slane %v942_v29, 9  ;;  %v329_v2 = vld [vmem:[%s8244_s18 + $0x3c] sm:$0xf] }
  0x30   : > { %1155 = vmatmul.bf16.vlgmr.msra.gmra.mxu2 %v1079_v14  ;;  %v629_v14 = vunpack.c.l.b16 %v429_v8  ;;  %v1064_v20 = vunpack.c.l.b16 %v992_v11  ;;  %v997_v34 = vrot.slane %v995_v26, 4  ;;  %v998_v35 = vrot.slane %v358_v16, 5 }
  0x31   : > { %1380 = vmatmul.bf16.vlgmr.msra.gmra.mxu3 %v7828_v15  ;;  %v630_v15 = vunpack.c.l.b16 %v439_v9  ;;  %v458_v32 = vrot.slane %v457_v25, 4  ;;  %v996_v40 = vsel %vm8283_vm4, %v6635_v33, %v995_v26  ;;  %v465_v42 = vshrl.u32 %v327_v36, 16 }
  0x32   : > { %v1081_v27 = vpack.c.b16 %v1064_v20, %v1063_v19  ;;  %v999_v41 = vsel %vm8283_vm4, %v997_v34, %v998_v35  ;;  %v468_v44 = vshll.u32 %v327_v36, 16  ;;  %v474_v45 = vshll.u32 %v328_v37, 16  ;;  %v7832_v35 = vld [vmem:[%s8244_s18 + $0x3c] sm:$0xff] }
  0x33   : > { %1827 = vmatpush.bf16.msrb.mxu0 %v7852_v21  ;;  %v447_v21 = vor.u32 %v446_v13, %v443_v12  ;;  %v647_v23 = vpack.c.b16 %v630_v15, %v629_v14  ;;  %v463_v39 = vsel %vm8293_vm5, %v458_v32, %v462_v31  ;;  %v478_v47 = vshrl.u32 %v328_v37, 16  ;;  %v7798_v31 = vld [vmem:[%s8244_s18 + $0x30] sm:$0xff]  ;;  %v944_v36 = vld [vmem:[%s8244_s18 + $0x3c] sm:$0xe] }
  0x34   : > { %v632_v49 = vunpack.c.l.b16 %v463_v39  ;;  %v476_v54 = vrot.slane %v474_v45, 5  ;;  %v484_v63 = vshll.u32 %v359_v56, 16  ;;  %v6636_v8 = vrot.slane %v943_v1, 9  ;;  %v331_v45 = vld [vmem:[%s8244_s18 + $0x48] sm:$0xf] }
  0x35   : > { %v480_v55 = vrot.slane %v478_v47, 4  ;;  %v1005_v10 = vrot.slane %v359_v56, 5  ;;  %v489_v11 = vshrl.u32 %v329_v2, 16  ;;  %v492_v12 = vshll.u32 %v329_v2, 16  ;;  %v332_v47 = vld [vmem:[%s8244_s18 + $0x4c] sm:$0xf] }
  0x36   : > { %v486_v5 = vrot.slane %v484_v63, 5  ;;  %v498_v13 = vshll.u32 %v330_v6, 16  ;;  %v502_v14 = vshrl.u32 %v330_v6, 16  ;;  %v1009_v33 = vrot.slane %v330_v6, 5  ;;  %v7799_v2 = vld [vmem:[%s8244_s18 + $0x3c] sm:$0xff] }
  0x37   : > { %1828 = vmatpush.bf16.msrb.mxu0 %v7851_v30  ;;  %v448_v30 = vrot.slane %v447_v21, 4  ;;  %v481_v62 = vor.u32 %v480_v55, %v476_v54  ;;  %v491_v19 = vrot.slane %v489_v11, 4  ;;  %v494_v20 = vrot.slane %v492_v12, 5 }
  0x38   : > { %v504_v25 = vrot.slane %v502_v14, 4  ;;  %v526_v55 = vshrl.u32 %v332_v47, 16  ;;  %v334_v14 = vld [vmem:[%s8244_s18 + $0x58] sm:$0xf] }
  0x39   : > { %v453_v38 = vsel %vm8293_vm5, %v448_v30, %v452_v17  ;;  %v482_v4 = vrot.slane %v481_v62, 4 }
  0x3a   : > { %v631_v48 = vunpack.c.l.b16 %v453_v38  ;;  %v528_v63 = vrot.slane %v526_v55, 4  ;;  %v8449_v55 = vld [vmem:[%s8244_s18 + $0x64] sm:$0xf] }
  0x3b   : > { %1829 = vmatpush.bf16.msrb.mxu0 %v7850_v0  ;;  %v1002_v0 = vrot.slane %v328_v37, 5  ;;  %v487_v16 = vsel %vm8293_vm5, %v482_v4, %v486_v5  ;;  %v7833_v4 = vld [vmem:[%s8244_s18 + $0x48] sm:$0xff] }
  0x3c   : > { %v648_v57 = vpack.c.b16 %v632_v49, %v631_v48  ;;  %v634_v22 = vunpack.c.l.b16 %v487_v16 }
  0x3d   : > { %v1004_v9 = vrot.slane %v1002_v0, 4  ;;  %v1003_v17 = vsel %vm8283_vm4, %v6636_v8, %v1002_v0  ;;  %v361_v0 = vld [vmem:[%s8244_s18 + $0x50] sm:$0x1]  ;;  %v1016_v8 = vrot.slane %v332_v47, 5 }
  0x3e   : > { %726 = vmatmul.bf16.gmra.mxu0 %v646_v50  ;;  %v1065_v50 = vunpack.c.l.b16 %v996_v40  ;;  %v1067_v26 = vunpack.c.l.b16 %v1003_v17  ;;  %v6637_v40 = vrot.slane %v944_v36, 9 }
  0x3f   : > { %893 = vmatmul.bf16.gmra.mxu1 %v7795_v51  ;;  %v1066_v51 = vunpack.c.l.b16 %v999_v41  ;;  %1830 = vmatpush.bf16.msrb.mxu0 %v7849_v7  ;;  %v1006_v18 = vsel %vm8283_vm4, %v1004_v9, %v1005_v10  ;;  %v1011_v41 = vrot.slane %v1009_v33, 4  ;;  %v532_v7 = vshll.u32 %v361_v0, 16  ;;  %v945_v9 = vld [vmem:[%s8244_s18 + $0x48] sm:$0xe]  ;;  %v333_v10 = vld [vmem:[%s8244_s18 + $0x54] sm:$0xf] }
  0x40   : > { %1160 = vmatmul.bf16.gmra.mxu2 %v1080_v52  ;;  %v467_v52 = vrot.slane %v465_v42, 4  ;;  %v6638_v16 = vrot.slane %v945_v9, 9  ;;  %v1018_v17 = vrot.slane %v1016_v8, 4 }
  0x41   : > { %1385 = vmatmul.bf16.gmra.mxu3 %v7829_v53  ;;  %v470_v53 = vrot.slane %v468_v44, 5  ;;  %v1082_v59 = vpack.c.b16 %v1066_v51, %v1065_v50  ;;  %v7848_v44 = vld [vmem:[%s10312_s1 + $0x110] sm:$0xff]  ;;  %v1010_v50 = vsel %vm8283_vm4, %v6637_v40, %v1009_v33 }
  0x43   : > { %v471_v61 = vor.u32 %v470_v53, %v467_v52  ;;  %1831 = vmatpush.bf16.msrb.mxu0 %v7848_v44  ;;  %v513_v52 = vshrl.u32 %v331_v45, 16  ;;  %v516_v53 = vshll.u32 %v331_v45, 16  ;;  %v7834_v44 = vld [vmem:[%s8244_s18 + $0x54] sm:$0xff] }
  0x44   : > { %v946_v45 = vld [vmem:[%s8244_s18 + $0x54] sm:$0xe] }
  0x45   : > { %v472_v3 = vrot.slane %v471_v61, 4  ;;  %v518_v61 = vrot.slane %v516_v53, 5  ;;  %v7879_v53 = vld [vmem:[%s10312_s1 + $0x1b8] sm:$0xff] }
  0x46   : > { %2345 = vmatpush.bf16.msrb.mxu2 %v7879_v53  ;;  %v7882_v53 = vld [vmem:[%s10312_s1 + $0x1d0] sm:$0xff] }
  0x47   : > { %v477_v15 = vsel %vm8293_vm5, %v472_v3, %v476_v54  ;;  %v522_v54 = vshll.u32 %v332_v47, 16 }
  0x48   : > { %v633_v21 = vunpack.c.l.b16 %v477_v15  ;;  %v7847_v15 = vld [vmem:[%s10312_s1 + $0x108] sm:$0xff] }
  0x49   : > { %v524_v62 = vrot.slane %v522_v54, 5  ;;  %1832 = vmatpush.bf16.msrb.mxu0 %v7847_v15  ;;  %v335_v54 = vld [vmem:[%s8244_s18 + $0x60] sm:$0xf]  ;;  %v7859_v15 = vld [vmem:[%s10312_s1 + $0x168] sm:$0xff] }
  0x4a   : > { %v649_v30 = vpack.c.b16 %v634_v22, %v633_v21  ;;  %v546_v21 = vshll.u32 %v334_v14, 16  ;;  %v550_v22 = vshrl.u32 %v334_v14, 16 }
  0x4b   : > { %v529_v6 = vor.u32 %v528_v63, %v524_v62  ;;  %v561_v63 = vshrl.u32 %v335_v54, 16 }
  0x4c   : > { %v552_v33 = vrot.slane %v550_v22, 4 }
  0x4d   : > { %v530_v12 = vrot.slane %v529_v6, 4 }
  0x4e   : > { %731 = vmatmul.bf16.gmra.mxu0 %v647_v23  ;;  %v360_v23 = vld [vmem:[%s8244_s18 + $0x44] sm:$0x1] }
  0x4f   : > { %898 = vmatmul.bf16.gmra.mxu1 %v7796_v24  ;;  %v500_v24 = vrot.slane %v498_v13, 5  ;;  %v508_v29 = vshll.u32 %v360_v23, 16  ;;  %v1012_v42 = vrot.slane %v360_v23, 5  ;;  %v534_v13 = vrot.slane %v532_v7, 5 }
  0x50   : > { %1165 = vmatmul.bf16.gmra.mxu2 %v1081_v27  ;;  %v1068_v27 = vunpack.c.l.b16 %v1006_v18  ;;  %v1019_v18 = vrot.slane %v361_v0, 5  ;;  %v564_v0 = vshll.u32 %v335_v54, 16 }
  0x51   : > { %1390 = vmatmul.bf16.gmra.mxu3 %v7830_v28  ;;  %v495_v28 = vor.u32 %v494_v20, %v491_v19  ;;  %v505_v32 = vor.u32 %v504_v25, %v500_v24  ;;  %v510_v38 = vrot.slane %v508_v29, 5  ;;  %v1013_v51 = vsel %vm8283_vm4, %v1011_v41, %v1012_v42 }
  0x52   : > { %v1083_v34 = vpack.c.b16 %v1068_v27, %v1067_v26  ;;  %v537_v19 = vshrl.u32 %v333_v10, 16  ;;  %v540_v20 = vshll.u32 %v333_v10, 16  ;;  %v1017_v25 = vsel %vm8283_vm4, %v6638_v16, %v1016_v8  ;;  %v7885_v16 = vld [vmem:[%s10312_s1 + $0x1e8] sm:$0xff] }
  0x53   : > { %v496_v37 = vrot.slane %v495_v28, 4  ;;  %v506_v39 = vrot.slane %v505_v32, 4  ;;  %v1020_v26 = vsel %vm8283_vm4, %v1018_v17, %v1019_v18  ;;  %v548_v32 = vrot.slane %v546_v21, 5  ;;  %v7801_v18 = vld [vmem:[%s8244_s18 + $0x54] sm:$0xff]  ;;  %v7835_v21 = vld [vmem:[%s8244_s18 + $0x60] sm:$0xff] }
  0x54   : > { %v539_v27 = vrot.slane %v537_v19, 4  ;;  %v542_v28 = vrot.slane %v540_v20, 5  ;;  %v1023_v41 = vrot.slane %v334_v14, 5  ;;  %v563_v10 = vrot.slane %v561_v63, 4  ;;  %v363_v14 = vld [vmem:[%s8244_s18 + $0x68] sm:$0x1] }
  0x55   : > { %v501_v48 = vsel %vm8293_vm5, %v496_v37, %v500_v24  ;;  %v511_v49 = vsel %vm8293_vm5, %v506_v39, %v510_v38  ;;  %v535_v24 = vsel %vm8293_vm5, %v530_v12, %v534_v13  ;;  %v7800_v39 = vld [vmem:[%s8244_s18 + $0x48] sm:$0xff]  ;;  %v553_v40 = vor.u32 %v552_v33, %v548_v32  ;;  %v7876_v19 = vld [vmem:[%s10312_s1 + $0x1a0] sm:$0xff]  ;;  %v364_v63 = vld [vmem:[%s8244_s18 + $0x74] sm:$0x1] }
  0x56   : > { %v635_v56 = vunpack.c.l.b16 %v501_v48  ;;  %v543_v36 = vor.u32 %v542_v28, %v539_v27  ;;  %v7858_v27 = vld [vmem:[%s10312_s1 + $0x160] sm:$0xff] }
  0x57   : > { %v7884_v28 = vld [vmem:[%s10312_s1 + $0x1e0] sm:$0xff] }
  0x58   : > { %v544_v47 = vrot.slane %v543_v36, 4 }
  0x5e   : > { %736 = vmatmul.bf16.gmra.mxu0 %v648_v57  ;;  %v636_v57 = vunpack.c.l.b16 %v511_v49  ;;  %v554_v49 = vrot.slane %v553_v40, 4  ;;  %v7883_v40 = vld [vmem:[%s10312_s1 + $0x1d8] sm:$0xff] }
  0x5f   : > { %903 = vmatmul.bf16.gmra.mxu1 %v7797_v58  ;;  %v1069_v58 = vunpack.c.l.b16 %v1010_v50  ;;  %v6639_v50 = vrot.slane %v946_v45, 9 }
  0x60   : > { %1170 = vmatmul.bf16.gmra.mxu2 %v1082_v59  ;;  %v1070_v59 = vunpack.c.l.b16 %v1013_v51  ;;  %v650_v1 = vpack.c.b16 %v636_v57, %v635_v56  ;;  %v1025_v51 = vrot.slane %v1023_v41, 4  ;;  %v7861_v56 = vld [vmem:[%s10312_s1 + $0x178] sm:$0xff] }
  0x61   : > { %1395 = vmatmul.bf16.gmra.mxu3 %v7831_v60  ;;  %v515_v60 = vrot.slane %v513_v52, 4  ;;  %v7887_v57 = vld [vmem:[%s10312_s1 + $0x1f8] sm:$0xff]  ;;  %2120 = vmatpush.bf16.msrb.mxu1 %v7861_v56  ;;  %v7873_v56 = vld [vmem:[%s10312_s1 + $0x188] sm:$0xff] }
  0x62   : > { %v1084_v3 = vpack.c.b16 %v1070_v59, %v1069_v58  ;;  %v549_v58 = vsel %vm8293_vm5, %v544_v47, %v548_v32  ;;  %2799 = vmatpush.bf16.msrb.mxu3 %v7887_v57  ;;  %v7874_v47 = vld [vmem:[%s10312_s1 + $0x190] sm:$0xff] }
  0x63   : > { %v519_v5 = vor.u32 %v518_v61, %v515_v60  ;;  %v1024_v60 = vsel %vm8283_vm4, %v6639_v50, %v1023_v41  ;;  %v639_v6 = vunpack.c.l.b16 %v549_v58 }
  0x64   : > { %v1073_v8 = vunpack.c.l.b16 %v1024_v60 }
  0x65   : > { %v520_v11 = vrot.slane %v519_v5, 4  ;;  %v7877_v5 = vld [vmem:[%s10312_s1 + $0x1a8] sm:$0xff] }
  0x67   : > { %v525_v23 = vsel %vm8293_vm5, %v520_v11, %v524_v62  ;;  %v7878_v62 = vld [vmem:[%s10312_s1 + $0x1b0] sm:$0xff]  ;;  %v566_v11 = vrot.slane %v564_v0, 5  ;;  %v7855_v0 = vld [vmem:[%s10312_s1 + $0x148] sm:$0xff] }
  0x68   : > { %v637_v29 = vunpack.c.l.b16 %v525_v23  ;;  %2346 = vmatpush.bf16.msrb.mxu2 %v7878_v62 }
  0x69   : > { %v567_v22 = vor.u32 %v566_v11, %v563_v10  ;;  %v7836_v11 = vld [vmem:[%s8244_s18 + $0x6c] sm:$0xff] }
  0x6b   : > { %v568_v32 = vrot.slane %v567_v22, 4 }
  0x6c   : > { %2347 = vmatpush.bf16.msrb.mxu2 %v7877_v5 }
  0x6e   : > { %741 = vmatmul.bf16.gmra.mxu0 %v649_v30  ;;  %v638_v30 = vunpack.c.l.b16 %v535_v24  ;;  %v580_v24 = vshll.u32 %v363_v14, 16 }
  0x6f   : > { %908 = vmatmul.bf16.gmra.mxu1 %v7798_v31  ;;  %v362_v31 = vld [vmem:[%s8244_s18 + $0x5c] sm:$0x1] }
  0x70   : > { %1175 = vmatmul.bf16.gmra.mxu2 %v1083_v34  ;;  %v1071_v34 = vunpack.c.l.b16 %v1017_v25  ;;  %v556_v37 = vshll.u32 %v362_v31, 16  ;;  %v651_v38 = vpack.c.b16 %v638_v30, %v637_v29  ;;  %v1026_v52 = vrot.slane %v362_v31, 5  ;;  %v7846_v25 = vld [vmem:[%s10312_s1 + $0x100] sm:$0xff]  ;;  %v337_v30 = vld [vmem:[%s8244_s18 + $0x6c] sm:$0xf]  ;;  %v7875_v31 = vld [vmem:[%s10312_s1 + $0x198] sm:$0xff] }
  0x71   : > { %1400 = vmatmul.bf16.gmra.mxu3 %v7832_v35  ;;  %v1072_v35 = vunpack.c.l.b16 %v1020_v26  ;;  %v1030_v26 = vrot.slane %v8449_v55, 5  ;;  %2348 = vmatpush.bf16.msrb.mxu2 %v7876_v19  ;;  %v947_v29 = vld [vmem:[%s8244_s18 + $0x60] sm:$0xe]  ;;  %v585_v41 = vshrl.u32 %v337_v30, 16 }
  0x72   : > { %v558_v48 = vrot.slane %v556_v37, 5  ;;  %v1027_v61 = vsel %vm8283_vm4, %v1025_v51, %v1026_v52  ;;  %1833 = vmatpush.bf16.msrb.mxu0 %v7846_v25  ;;  %v6640_v36 = vrot.slane %v947_v29, 9  ;;  %v7856_v52 = vld [vmem:[%s10312_s1 + $0x150] sm:$0xff]  ;;  %v7895_v25 = vld [vmem:[%s10312_s1 + $0x238] sm:$0xff] }
  0x73   : > { %v1085_v42 = vpack.c.b16 %v1072_v35, %v1071_v34  ;;  %v1074_v9 = vunpack.c.l.b16 %v1027_v61  ;;  %v582_v34 = vrot.slane %v580_v24, 5  ;;  %v8507_v35 = vld [vmem:[%s8244_s18 + $0x70] sm:$0xf]  ;;  %v1032_v37 = vrot.slane %v1030_v26, 4 }
  0x74   : > { %v559_v59 = vsel %vm8293_vm5, %v554_v49, %v558_v48  ;;  %v598_v45 = vshrl.u32 %v8507_v35, 16  ;;  %v1031_v50 = vsel %vm8283_vm4, %v6640_v36, %v1030_v26  ;;  %v587_v54 = vrot.slane %v585_v41, 4 }
  0x75   : > { %v640_v7 = vunpack.c.l.b16 %v559_v59  ;;  %v1086_v20 = vpack.c.b16 %v1074_v9, %v1073_v8  ;;  %2349 = vmatpush.bf16.msrb.mxu2 %v7875_v31  ;;  %v1075_v61 = vunpack.c.l.b16 %v1031_v50  ;;  %v7053_v31 = vld [vmem:[%s8244_s18 + $0x1c] sm:$0xf] }
  0x76   : > { %v600_v60 = vrot.slane %v598_v45, 4  ;;  %3093 = vmatpush.bf16.msra.mxu0 %v7895_v25 }
  0x77   : > { %v652_v17 = vpack.c.b16 %v640_v7, %v639_v6  ;;  %v604_v6 = vshll.u32 %v364_v63, 16  ;;  %v7872_v7 = vld [vmem:[%s10312_s1 + $0x180] sm:$0xff] }
  0x79   : > { %2350 = vmatpush.bf16.msrb.mxu2 %v7874_v47 }
  0x7d   : > { %2351 = vmatpush.bf16.msrb.mxu2 %v7873_v56 }
  0x7e   : > { %746 = vmatmul.bf16.gmra.mxu0 %v650_v1  ;;  %v570_v1 = vshll.u32 %v8449_v55, 16 }
  0x7f   : > { %913 = vmatmul.bf16.gmra.mxu1 %v7799_v2  ;;  %v574_v2 = vshrl.u32 %v8449_v55, 16 }
  0x80   : > { %1180 = vmatmul.bf16.gmra.mxu2 %v1084_v3  ;;  %v7860_v3 = vld [vmem:[%s10312_s1 + $0x170] sm:$0xff]  ;;  %v572_v12 = vrot.slane %v570_v1, 5  ;;  %v7881_v1 = vld [vmem:[%s10312_s1 + $0x1c8] sm:$0xff] }
  0x81   : > { %1405 = vmatmul.bf16.gmra.mxu3 %v7833_v4  ;;  %v7886_v4 = vld [vmem:[%s10312_s1 + $0x1f0] sm:$0xff]  ;;  %2121 = vmatpush.bf16.msrb.mxu1 %v7860_v3  ;;  %v576_v13 = vrot.slane %v574_v2, 4 }
  0x82   : > { %2800 = vmatpush.bf16.msrb.mxu3 %v7886_v4  ;;  %v573_v48 = vsel %vm8293_vm5, %v568_v32, %v572_v12  ;;  %v7802_v4 = vld [vmem:[%s8244_s18 + $0x60] sm:$0xff]  ;;  %2352 = vmatpush.bf16.msrb.mxu2 %v7872_v7 }
  0x83   : > { %v577_v23 = vor.u32 %v576_v13, %v572_v12  ;;  %v641_v57 = vunpack.c.l.b16 %v573_v48  ;;  %v6798_v12 = vld [vmem:[%s8244_s18 + $0xc] sm:$0xf]  ;;  %v2464_v48 = vshll.u32 %v7053_v31, 16 }
  0x84   : > { %v1482_v22 = vshrl.u32 %v6798_v12, 16 }
  0x85   : > { %2122 = vmatpush.bf16.msrb.mxu1 %v7859_v15  ;;  %v578_v33 = vrot.slane %v577_v23, 4  ;;  %v1037_v15 = vrot.slane %v8507_v35, 5  ;;  %v1485_v23 = vshll.u32 %v6798_v12, 16  ;;  %v7837_v12 = vld [vmem:[%s8244_s18 + $0x78] sm:$0xff] }
  0x86   : > { %2801 = vmatpush.bf16.msrb.mxu3 %v7885_v16  ;;  %v7854_v16 = vld [vmem:[%s10312_s1 + $0x140] sm:$0xff]  ;;  %v1484_v36 = vrot.slane %v1482_v22, 4 }
  0x87   : > { %v583_v49 = vsel %vm8293_vm5, %v578_v33, %v582_v34  ;;  %v1039_v26 = vrot.slane %v1037_v15, 4 }
  0x88   : > { %v642_v58 = vunpack.c.l.b16 %v583_v49  ;;  %v2468_v49 = vshrl.u32 %v7053_v31, 16  ;;  %v7056_v31 = vld [vmem:[%s8244_s18 + $0x28] sm:$0xf] }
  0x89   : > { %2123 = vmatpush.bf16.msrb.mxu1 %v7858_v27  ;;  %v1040_v27 = vrot.slane %v364_v63, 5 }
  0x8a   : > { %2802 = vmatpush.bf16.msrb.mxu3 %v7884_v28  ;;  %v653_v3 = vpack.c.b16 %v642_v58, %v641_v57  ;;  %v7052_v28 = vld [vmem:[%s8244_s18 + $0x18] sm:$0xf] }
  0x8b   : > { %v1041_v47 = vsel %vm8283_vm4, %v1039_v26, %v1040_v27  ;;  %v7055_v27 = vld [vmem:[%s8244_s18 + $0x24] sm:$0xf] }
  0x8c   : > { %v1078_v58 = vunpack.c.l.b16 %v1041_v47  ;;  %v2492_v47 = vshrl.u32 %v7056_v31, 16 }
  0x8e   : > { %751 = vmatmul.bf16.gmra.mxu0 %v651_v38  ;;  %v1033_v38 = vrot.slane %v363_v14, 5  ;;  %2803 = vmatpush.bf16.msrb.mxu3 %v7883_v40  ;;  %v948_v14 = vld [vmem:[%s8244_s18 + $0x6c] sm:$0xe] }
  0x8f   : > { %918 = vmatmul.bf16.gmra.mxu1 %v7800_v39  ;;  %v7857_v39 = vld [vmem:[%s10312_s1 + $0x158] sm:$0xff]  ;;  %v6641_v24 = vrot.slane %v948_v14, 9 }
  0x90   : > { %1185 = vmatmul.bf16.gmra.mxu2 %v1085_v42  ;;  %v588_v42 = vshll.u32 %v337_v30, 16  ;;  %v1034_v51 = vsel %vm8283_vm4, %v1032_v37, %v1033_v38  ;;  %2124 = vmatpush.bf16.msrb.mxu1 %v7857_v39  ;;  %v1487_v37 = vrot.slane %v1485_v23, 5  ;;  %v8595_v23 = vld [vmem:[%s8244_s18 + $0x1c] sm:$0xf] }
  0x91   : > { %1410 = vmatmul.bf16.gmra.mxu3 %v7834_v44  ;;  %v594_v44 = vshll.u32 %v8507_v35, 16  ;;  %v1076_v62 = vunpack.c.l.b16 %v1034_v51  ;;  %v1038_v41 = vsel %vm8283_vm4, %v6641_v24, %v1037_v15 }
  0x92   : > { %v590_v55 = vrot.slane %v588_v42, 5  ;;  %2804 = vmatpush.bf16.msrb.mxu3 %v7882_v53  ;;  %v2455_v42 = vshrl.u32 %v7052_v28, 16  ;;  %v1488_v56 = vor.u32 %v1487_v37, %v1484_v36  ;;  %v1077_v57 = vunpack.c.l.b16 %v1038_v41 }
  0x93   : > { %v8537_v59 = vrot.slane %v594_v44, 5  ;;  %v1087_v10 = vpack.c.b16 %v1076_v62, %v1075_v61  ;;  %v2458_v44 = vshll.u32 %v7052_v28, 16  ;;  %v8583_v61 = vrot.slane %v2464_v48, 5 }
  0x94   : > { %2125 = vmatpush.bf16.msrb.mxu1 %v7856_v52  ;;  %v591_v2 = vor.u32 %v590_v55, %v587_v54  ;;  %v6800_v55 = vld [vmem:[%s8244_s18 + $0x14] sm:$0x1]  ;;  %v2470_v62 = vrot.slane %v2468_v49, 4 }
  0x95   : > { %v601_v5 = vor.u32 %v600_v60, %v8537_v59  ;;  %v2460_v60 = vrot.slane %v2458_v44, 5  ;;  %v1950_v26 = vrot.slane %v6800_v55, 5 }
  0x96   : > { %2805 = vmatpush.bf16.msrb.mxu3 %v7881_v1  ;;  %v7054_v1 = vld [vmem:[%s8244_s18 + $0x20] sm:$0x1] }
  0x97   : > { %v602_v19 = vrot.slane %v601_v5, 4  ;;  %v7803_v5 = vld [vmem:[%s8244_s18 + $0x6c] sm:$0xff] }
  0x98   : > { %2126 = vmatpush.bf16.msrb.mxu1 %v7855_v0  ;;  %v1501_v0 = vshll.u32 %v6800_v55, 16  ;;  %v7894_v55 = vld [vmem:[%s10312_s1 + $0x230] sm:$0xff] }
  0x99   : > { %3094 = vmatpush.bf16.msra.mxu0 %v7894_v55 }
  0x9a   : > { %v1503_v22 = vrot.slane %v1501_v0, 5 }
  0x9c   : > { %2127 = vmatpush.bf16.msrb.mxu1 %v7854_v16  ;;  %v2471_v16 = vor.u32 %v2470_v62, %v8583_v61 }
  0x9e   : > { %756 = vmatmul.bf16.gmra.mxu0 %v652_v17  ;;  %v7880_v17 = vld [vmem:[%s10312_s1 + $0x1c0] sm:$0xff] }
  0x9f   : > { %923 = vmatmul.bf16.gmra.mxu1 %v7801_v18  ;;  %v592_v18 = vrot.slane %v591_v2, 4  ;;  %2806 = vmatpush.bf16.msrb.mxu3 %v7880_v17  ;;  %v2474_v17 = vshll.u32 %v7054_v1, 16 }
  0xa0   : > { %1190 = vmatmul.bf16.gmra.mxu2 %v1086_v20  ;;  %v606_v20 = vrot.slane %v604_v6, 5  ;;  %v1489_v6 = vrot.slane %v1488_v56, 4 }
  0xa1   : > { %1415 = vmatmul.bf16.gmra.mxu3 %v7835_v21  ;;  %v8562_v21 = vld [vmem:[%s8244_s18 + $0x10] sm:$0xf]  ;;  %v597_v34 = vsel %vm8293_vm5, %v592_v18, %v8537_v59  ;;  %v2457_v59 = vrot.slane %v2455_v42, 4  ;;  %v6801_v18 = vld [vmem:[%s8244_s18 + $0x18] sm:$0xf] }
  0xa2   : > { %v1491_v29 = vshll.u32 %v8562_v21, 16  ;;  %v1495_v30 = vshrl.u32 %v8562_v21, 16  ;;  %v607_v35 = vsel %vm8293_vm5, %v602_v19, %v606_v20  ;;  %v643_v53 = vunpack.c.l.b16 %v597_v34 }
  0xa3   : > { %v644_v54 = vunpack.c.l.b16 %v607_v35  ;;  %v1947_v7 = vrot.slane %v8562_v21, 5  ;;  %v2461_v14 = vor.u32 %v2460_v60, %v2457_v59  ;;  %v1515_v34 = vshll.u32 %v8595_v23, 16 }
  0xa4   : > { %v1493_v51 = vrot.slane %v1491_v29, 5  ;;  %v1497_v52 = vrot.slane %v1495_v30, 4  ;;  %v1506_v29 = vshrl.u32 %v6801_v18, 16  ;;  %v1509_v30 = vshll.u32 %v6801_v18, 16  ;;  %v7862_v18 = vld [vmem:[%s8244_s18 + $0x18] sm:$0xff] }
  0xa5   : > { %v1949_v25 = vrot.slane %v1947_v7, 4  ;;  %v2462_v28 = vrot.slane %v2461_v14, 4  ;;  %v1519_v35 = vshrl.u32 %v8595_v23, 16  ;;  %v8618_v59 = vrot.slane %v1515_v34, 5 }
  0xa6   : > { %v1498_v63 = vor.u32 %v1497_v52, %v1493_v51  ;;  %v1494_v21 = vsel %vm8293_vm5, %v1489_v6, %v1493_v51 }
  0xa7   : > { %v1738_v37 = vunpack.c.l.b16 %v1494_v21  ;;  %v1951_v44 = vsel %vm8283_vm4, %v1949_v25, %v1950_v26  ;;  %v2467_v52 = vsel %vm8293_vm5, %v2462_v28, %v8583_v61  ;;  %v1521_v60 = vrot.slane %v1519_v35, 4 }
  0xa8   : > { %v1499_v20 = vrot.slane %v1498_v63, 4  ;;  %v2711_v6 = vunpack.c.l.b16 %v2467_v52  ;;  %v7059_v52 = vld [vmem:[%s8244_s18 + $0x34] sm:$0xf] }
  0xaa   : > { %v1504_v36 = vsel %vm8293_vm5, %v1499_v20, %v1503_v22 }
  0xab   : > { %v722_v8 = vpop.f32.mrf.mxu0  ;;  %v1739_v63 = vunpack.c.l.b16 %v1504_v36 }
  0xac   : > { %v889_v9 = vpop.f32.mrf.mxu1 }
  0xad   : > { %v890_v13 = vadd.f32 %v889_v9, %v722_v8 }
  0xae   : > { %761 = vmatmul.bf16.gmra.mxu0 %v653_v3 }
  0xaf   : > { %928 = vmatmul.bf16.gmra.mxu1 %v7802_v4  ;;  %v654_v4 = vpack.c.b16 %v644_v54, %v643_v53  ;;  %v1508_v53 = vrot.slane %v1506_v29, 4  ;;  %v1511_v54 = vrot.slane %v1509_v30, 5  ;;  %v6804_v29 = vld [vmem:[%s8244_s18 + $0x24] sm:$0xf] }
  0xb0   : > { %1195 = vmatmul.bf16.gmra.mxu2 %v1087_v10 }
  0xb1   : > { %1420 = vmatmul.bf16.gmra.mxu3 %v7836_v11  ;;  %v1088_v11 = vpack.c.b16 %v1078_v58, %v1077_v57  ;;  %v6803_v58 = vld [vmem:[%s8244_s18 + $0x20] sm:$0x1] }
  0xb2   : > { %v1957_v35 = vrot.slane %v6803_v58, 5 }
  0xb3   : > { %v1156_v32 = vpop.f32.mrf.mxu2  ;;  %v724_v39 = vpop.f32.mrf.mxu0 }
  0xb4   : > { %v1381_v33 = vpop.f32.mrf.mxu3  ;;  %v1206_v38 = vadd.f32 %v1156_v32, %v890_v13  ;;  %v891_v40 = vpop.f32.mrf.mxu1  ;;  %v6876_v13 = vld [vmem:[%s8244_s18 + $0xc] sm:$0xe]  ;;  %v2472_v32 = vrot.slane %v2471_v16, 4 }
  0xb5   : > { %v892_v45 = vadd.f32 %v891_v40, %v724_v39  ;;  %v6886_v24 = vrot.slane %v6876_v13, 9  ;;  %v2482_v39 = vshll.u32 %v7055_v27, 16 }
  0xb6   : > { %v8580_v50 = vadd.f32 %v1381_v33, %v1206_v38  ;;  %v2476_v33 = vrot.slane %v2474_v17, 5  ;;  %v2479_v38 = vshrl.u32 %v7055_v27, 16  ;;  %v1758_v17 = vpack.c.b16 %v1739_v63, %v1738_v37 }
  0xb7   : > { %v1948_v42 = vsel %vm8283_vm4, %v6886_v24, %v1947_v7  ;;  %v2484_v0 = vrot.slane %v2482_v39, 5  ;;  %v1530_v39 = vshrl.u32 %v6804_v29, 16 }
  0xb8   : > { %v2477_v57 = vsel %vm8293_vm5, %v2472_v32, %v2476_v33  ;;  %v2481_v61 = vrot.slane %v2479_v38, 4  ;;  %v2032_v1 = vunpack.c.l.b16 %v1948_v42 }
  0xb9   : > { %v2712_v7 = vunpack.c.l.b16 %v2477_v57 }
  0xba   : > { %v2485_v13 = vor.u32 %v2484_v0, %v2481_v61  ;;  %v8657_v61 = vld [vmem:[%s8244_s18 + $0x2c] sm:$0x1] }
  0xbb   : > { %v1158_v2 = vpop.f32.mrf.mxu2  ;;  %v727_v9 = vpop.f32.mrf.mxu0  ;;  %v2731_v26 = vpack.c.b16 %v2712_v7, %v2711_v6  ;;  %v2516_v6 = vshrl.u32 %v7059_v52, 16 }
  0xbc   : > { %v1383_v3 = vpop.f32.mrf.mxu3  ;;  %v1207_v8 = vadd.f32 %v1158_v2, %v892_v45  ;;  %v894_v10 = vpop.f32.mrf.mxu1  ;;  %v2488_v45 = vshll.u32 %v7056_v31, 16  ;;  %v2033_v2 = vunpack.c.l.b16 %v1951_v44  ;;  %v2486_v36 = vrot.slane %v2485_v13, 4 }
  0xbd   : > { %v895_v15 = vadd.f32 %v894_v10, %v727_v9  ;;  %v1525_v9 = vshll.u32 %v6803_v58, 16  ;;  %v1522_v10 = vor.u32 %v1521_v60, %v8618_v59 }
  0xbe   : > { %v8592_v19 = vadd.f32 %v1383_v3, %v1207_v8  ;;  %766 = vmatmul.bf16.gmra.mxu0 %v654_v4  ;;  %v7057_v3 = vld [vmem:[%s8244_s18 + $0x2c] sm:$0x1]  ;;  %v8623_v4 = vrot.slane %v2488_v45, 5  ;;  %v1512_v8 = vor.u32 %v1511_v54, %v1508_v53  ;;  %v2052_v20 = vpack.c.b16 %v2033_v2, %v2032_v1  ;;  %v7058_v45 = vld [vmem:[%s8244_s18 + $0x30] sm:$0xf] }
  0xbf   : > { %933 = vmatmul.bf16.gmra.mxu1 %v7803_v5  ;;  %v2494_v5 = vrot.slane %v2492_v47, 4  ;;  %v2498_v14 = vshll.u32 %v7057_v3, 16  ;;  %v1527_v28 = vrot.slane %v1525_v9, 5  ;;  %v1523_v31 = vrot.slane %v1522_v10, 4 }
  0xc0   : > { %1200 = vmatmul.bf16.gmra.mxu2 %v1088_v11  ;;  %v1954_v11 = vrot.slane %v8595_v23, 5  ;;  %v1513_v27 = vrot.slane %v1512_v8, 4  ;;  %v8632_v23 = vld [vmem:[%s8244_s18 + $0x28] sm:$0xf]  ;;  %v2503_v1 = vshrl.u32 %v7058_v45, 16  ;;  %v2506_v2 = vshll.u32 %v7058_v45, 16 }
  0xc1   : > { %1425 = vmatmul.bf16.gmra.mxu3 %v7837_v12  ;;  %v6877_v12 = vld [vmem:[%s8244_s18 + $0x18] sm:$0xe]  ;;  %v2495_v22 = vor.u32 %v2494_v5, %v8623_v4  ;;  %v2500_v37 = vrot.slane %v2498_v14, 5  ;;  %v1543_v42 = vshrl.u32 %v8632_v23, 16  ;;  %v1528_v47 = vsel %vm8293_vm5, %v1523_v31, %v1527_v28 }
  0xc2   : > { %v6887_v32 = vrot.slane %v6877_v12, 9  ;;  %v1956_v33 = vrot.slane %v1954_v11, 4  ;;  %v1518_v44 = vsel %vm8293_vm5, %v1513_v27, %v8618_v59  ;;  %v2512_v5 = vshll.u32 %v7059_v52, 16 }
  0xc3   : > { %v1161_v40 = vpop.f32.mrf.mxu2  ;;  %v729_v49 = vpop.f32.mrf.mxu0  ;;  %v2496_v38 = vrot.slane %v2495_v22, 4  ;;  %v1545_v0 = vrot.slane %v1543_v42, 4  ;;  %v1741_v8 = vunpack.c.l.b16 %v1528_v47  ;;  %v1964_v47 = vrot.slane %v8657_v61, 5 }
  0xc4   : > { %v1386_v41 = vpop.f32.mrf.mxu3  ;;  %v1208_v48 = vadd.f32 %v1161_v40, %v895_v15  ;;  %v896_v51 = vpop.f32.mrf.mxu1  ;;  %v1533_v40 = vshll.u32 %v6804_v29, 16  ;;  %v8667_v22 = vrot.slane %v2512_v5, 5 }
  0xc5   : > { %v897_v56 = vadd.f32 %v896_v51, %v729_v49  ;;  %v1958_v49 = vsel %vm8283_vm4, %v1956_v33, %v1957_v35  ;;  %v2491_v51 = vsel %vm8293_vm5, %v2486_v36, %v8623_v4  ;;  %v2501_v55 = vsel %vm8293_vm5, %v2496_v38, %v2500_v37  ;;  %v7863_v37 = vld [vmem:[%s8244_s18 + $0x24] sm:$0xff] }
  0xc6   : > { %v8620_v62 = vadd.f32 %v1386_v41, %v1208_v48  ;;  %v1539_v41 = vshll.u32 %v8632_v23, 16  ;;  %v1955_v48 = vsel %vm8283_vm4, %v6887_v32, %v1954_v11  ;;  %v1535_v57 = vrot.slane %v1533_v40, 5  ;;  %v7893_v11 = vld [vmem:[%s10312_s1 + $0x228] sm:$0xff] }
  0xc7   : > { %v1740_v4 = vunpack.c.l.b16 %v1518_v44  ;;  %v2034_v9 = vunpack.c.l.b16 %v1955_v48  ;;  %v2035_v10 = vunpack.c.l.b16 %v1958_v49  ;;  %v2713_v12 = vunpack.c.l.b16 %v2491_v51  ;;  %3095 = vmatpush.bf16.msra.mxu0 %v7893_v11  ;;  %v6807_v48 = vld [vmem:[%s8244_s18 + $0x30] sm:$0xf]  ;;  %v8681_v51 = vld [vmem:[%s8244_s18 + $0x34] sm:$0xf] }
  0xc8   : > { %v8654_v58 = vrot.slane %v1539_v41, 5  ;;  %v2714_v13 = vunpack.c.l.b16 %v2501_v55  ;;  %v7061_v55 = vld [vmem:[%s8244_s18 + $0x3c] sm:$0xf] }
  0xc9   : > { %v2053_v29 = vpack.c.b16 %v2035_v10, %v2034_v9  ;;  %v2530_v5 = vshll.u32 %v7061_v55, 16 }
  0xcb   : > { %v1163_v15 = vpop.f32.mrf.mxu2  ;;  %v732_v24 = vpop.f32.mrf.mxu0 }
  0xcc   : > { %v1388_v16 = vpop.f32.mrf.mxu3  ;;  %v1209_v21 = vadd.f32 %v1163_v15, %v897_v56  ;;  %v899_v25 = vpop.f32.mrf.mxu1  ;;  %v1532_v56 = vrot.slane %v1530_v39, 4  ;;  %v1549_v15 = vshll.u32 %v8657_v61, 16 }
  0xcd   : > { %v900_v30 = vadd.f32 %v899_v25, %v732_v24  ;;  %v1759_v24 = vpack.c.b16 %v1741_v8, %v1740_v4  ;;  %v1961_v25 = vrot.slane %v8632_v23, 5  ;;  %v2527_v4 = vshrl.u32 %v7061_v55, 16  ;;  %v7892_v55 = vld [vmem:[%s10312_s1 + $0x220] sm:$0xff] }
  0xce   : > { %v8634_v34 = vadd.f32 %v1388_v16, %v1209_v21  ;;  %1834 = vmatmul.bf16.vlgmr.msrb.gmra.mxu0 %v1758_v17  ;;  %v1536_v14 = vor.u32 %v1535_v57, %v1532_v56  ;;  %v1546_v16 = vor.u32 %v1545_v0, %v8654_v58  ;;  %v2505_v17 = vrot.slane %v2503_v1, 4  ;;  %v7062_v56 = vld [vmem:[%s8244_s18 + $0x40] sm:$0xf] }
  0xcf   : > { %2128 = vmatmul.bf16.vlgmr.msrb.gmra.mxu1 %v2052_v20  ;;  %v6878_v20 = vld [vmem:[%s8244_s18 + $0x24] sm:$0xe]  ;;  %v2518_v21 = vrot.slane %v2516_v6, 4  ;;  %v1551_v32 = vrot.slane %v1549_v15, 5  ;;  %v1963_v45 = vrot.slane %v1961_v25, 4  ;;  %v1563_v0 = vshll.u32 %v8681_v51, 16  ;;  %3096 = vmatpush.bf16.msra.mxu0 %v7892_v55 }
  0xd0   : > { %2353 = vmatmul.bf16.vlgmr.msrb.gmra.mxu2 %v7862_v18  ;;  %v2508_v18 = vrot.slane %v2506_v2, 5  ;;  %v1537_v31 = vrot.slane %v1536_v14, 4  ;;  %v1547_v38 = vrot.slane %v1546_v16, 4  ;;  %v6888_v39 = vrot.slane %v6878_v20, 9  ;;  %v8747_v55 = vld [vmem:[%s8244_s18 + $0x50] sm:$0x1] }
  0xd1   : > { %2807 = vmatmul.bf16.vlgmr.msrb.gmra.mxu3 %v2731_v26  ;;  %v7060_v26 = vld [vmem:[%s8244_s18 + $0x38] sm:$0x1]  ;;  %v2519_v23 = vor.u32 %v2518_v21, %v8667_v22  ;;  %v1567_v1 = vshrl.u32 %v8681_v51, 16  ;;  %v2536_v6 = vshll.u32 %v7062_v56, 16  ;;  %v2540_v8 = vshrl.u32 %v7062_v56, 16 }
  0xd2   : > { %v2509_v40 = vor.u32 %v2508_v18, %v2505_v17  ;;  %v2522_v42 = vshll.u32 %v7060_v26, 16  ;;  %v1542_v49 = vsel %vm8293_vm5, %v1537_v31, %v8654_v58  ;;  %v1552_v52 = vsel %vm8293_vm5, %v1547_v38, %v1551_v32  ;;  %v7063_v32 = vld [vmem:[%s8244_s18 + $0x44] sm:$0x1] }
  0xd3   : > { %v1166_v53 = vpop.f32.mrf.mxu2  ;;  %v734_v60 = vpop.f32.mrf.mxu0  ;;  %v2520_v57 = vrot.slane %v2519_v23, 4  ;;  %v1742_v61 = vunpack.c.l.b16 %v1542_v49  ;;  %v1965_v58 = vsel %vm8283_vm4, %v1963_v45, %v1964_v47  ;;  %v1569_v26 = vrot.slane %v1567_v1, 4  ;;  %v6879_v23 = vld [vmem:[%s8244_s18 + $0x30] sm:$0xe] }
  0xd4   : > { %v1391_v54 = vpop.f32.mrf.mxu3  ;;  %v1210_v59 = vadd.f32 %v1166_v53, %v900_v30  ;;  %v901_v63 = vpop.f32.mrf.mxu1  ;;  %v2732_v30 = vpack.c.b16 %v2714_v13, %v2713_v12  ;;  %v1962_v53 = vsel %vm8283_vm4, %v6888_v39, %v1961_v25  ;;  %v1743_v12 = vunpack.c.l.b16 %v1552_v52 }
  0xd5   : > { %v902_v3 = vadd.f32 %v901_v63, %v734_v60  ;;  %v1554_v60 = vshrl.u32 %v6807_v48, 16  ;;  %v1557_v63 = vshll.u32 %v6807_v48, 16  ;;  %v2036_v13 = vunpack.c.l.b16 %v1962_v53  ;;  %v7864_v53 = vld [vmem:[%s8244_s18 + $0x30] sm:$0xff] }
  0xd6   : > { %v8659_v7 = vadd.f32 %v1391_v54, %v1210_v59  ;;  %v2510_v54 = vrot.slane %v2509_v40, 4  ;;  %v2524_v59 = vrot.slane %v2522_v42, 5  ;;  %v2037_v21 = vunpack.c.l.b16 %v1965_v58 }
  0xd7   : > { %v1556_v17 = vrot.slane %v1554_v60, 4  ;;  %v1559_v18 = vrot.slane %v1557_v63, 5  ;;  %v8701_v25 = vrot.slane %v1563_v0, 5  ;;  %v1968_v38 = vrot.slane %v8681_v51, 5 }
  0xd8   : > { %v2515_v14 = vsel %vm8293_vm5, %v2510_v54, %v8667_v22  ;;  %v2525_v16 = vsel %vm8293_vm5, %v2520_v57, %v2524_v59  ;;  %v2542_v22 = vrot.slane %v2540_v8, 4  ;;  %v2546_v47 = vshll.u32 %v7063_v32, 16  ;;  %v6810_v59 = vld [vmem:[%s8244_s18 + $0x3c] sm:$0xf]  ;;  %v7064_v8 = vld [vmem:[%s8244_s18 + $0x48] sm:$0xf] }
  0xd9   : > { %v2716_v31 = vunpack.c.l.b16 %v2525_v16  ;;  %v1970_v58 = vrot.slane %v1968_v38, 4 }
  0xdb   : > { %v1168_v27 = vpop.f32.mrf.mxu2  ;;  %v737_v35 = vpop.f32.mrf.mxu0 }
  0xdc   : > { %v1393_v28 = vpop.f32.mrf.mxu3  ;;  %v1211_v33 = vadd.f32 %v1168_v27, %v902_v3  ;;  %v904_v36 = vpop.f32.mrf.mxu1  ;;  %v2529_v27 = vrot.slane %v2527_v4, 4  ;;  %v8718_v4 = vld [vmem:[%s8244_s18 + $0x40] sm:$0xf] }
  0xdd   : > { %v905_v41 = vadd.f32 %v904_v36, %v737_v35  ;;  %v1760_v36 = vpack.c.b16 %v1743_v12, %v1742_v61  ;;  %v6889_v61 = vrot.slane %v6879_v23, 9  ;;  %v1591_v12 = vshrl.u32 %v8718_v4, 16 }
  0xde   : > { %v8673_v44 = vadd.f32 %v1393_v28, %v1211_v33  ;;  %1839 = vmatmul.bf16.gmra.mxu0 %v1759_v24  ;;  %v6809_v24 = vld [vmem:[%s8244_s18 + $0x38] sm:$0x1]  ;;  %v2532_v28 = vrot.slane %v2530_v5, 5  ;;  %v1560_v33 = vor.u32 %v1559_v18, %v1556_v17  ;;  %v1578_v5 = vshrl.u32 %v6810_v59, 16 }
  0xdf   : > { %2133 = vmatmul.bf16.gmra.mxu1 %v2053_v29  ;;  %v8703_v29 = vrot.slane %v2536_v6, 5  ;;  %v1573_v35 = vshll.u32 %v6809_v24, 16  ;;  %v1971_v0 = vrot.slane %v6809_v24, 5  ;;  %v1581_v6 = vshll.u32 %v6810_v59, 16 }
  0xe0   : > { %2358 = vmatmul.bf16.gmra.mxu2 %v7863_v37  ;;  %v1570_v37 = vor.u32 %v1569_v26, %v8701_v25  ;;  %v2533_v42 = vor.u32 %v2532_v28, %v2529_v27  ;;  %v1561_v56 = vrot.slane %v1560_v33, 4  ;;  %v1969_v16 = vsel %vm8283_vm4, %v6889_v61, %v1968_v38 }
  0xe1   : > { %2812 = vmatmul.bf16.gmra.mxu3 %v2732_v30  ;;  %v2715_v30 = vunpack.c.l.b16 %v2515_v14  ;;  %v2543_v45 = vor.u32 %v2542_v22, %v8703_v29  ;;  %v1575_v57 = vrot.slane %v1573_v35, 5  ;;  %v1972_v17 = vsel %vm8283_vm4, %v1970_v58, %v1971_v0 }
  0xe2   : > { %v1571_v63 = vrot.slane %v1570_v37, 4  ;;  %v2534_v1 = vrot.slane %v2533_v42, 4  ;;  %v1580_v27 = vrot.slane %v1578_v5, 4  ;;  %v2551_v28 = vshrl.u32 %v7064_v8, 16 }
  0xe3   : > { %v1171_v2 = vpop.f32.mrf.mxu2  ;;  %v739_v10 = vpop.f32.mrf.mxu0  ;;  %v2733_v54 = vpack.c.b16 %v2716_v31, %v2715_v30  ;;  %v2554_v22 = vshll.u32 %v7064_v8, 16  ;;  %v1583_v31 = vrot.slane %v1581_v6, 5  ;;  %v1975_v61 = vrot.slane %v8718_v4, 5  ;;  %v6813_v6 = vld [vmem:[%s8244_s18 + $0x48] sm:$0xf] }
  0xe4   : > { %v1396_v3 = vpop.f32.mrf.mxu3  ;;  %v1212_v9 = vadd.f32 %v1171_v2, %v905_v41  ;;  %v906_v11 = vpop.f32.mrf.mxu1  ;;  %v2054_v41 = vpack.c.b16 %v2037_v21, %v2036_v13  ;;  %v2544_v2 = vrot.slane %v2543_v45, 4  ;;  %v7065_v13 = vld [vmem:[%s8244_s18 + $0x4c] sm:$0xf]  ;;  %v2539_v18 = vsel %vm8293_vm5, %v2534_v1, %v8703_v29 }
  0xe5   : > { %v907_v15 = vadd.f32 %v906_v11, %v739_v10  ;;  %v1576_v10 = vsel %vm8293_vm5, %v1571_v63, %v1575_v57  ;;  %v1587_v11 = vshll.u32 %v8718_v4, 16  ;;  %v2560_v32 = vshll.u32 %v7065_v13, 16  ;;  %v6880_v63 = vld [vmem:[%s8244_s18 + $0x3c] sm:$0xe] }
  0xe6   : > { %v8698_v20 = vadd.f32 %v1396_v3, %v1212_v9  ;;  %v2548_v3 = vrot.slane %v2546_v47, 5  ;;  %v1566_v9 = vsel %vm8293_vm5, %v1561_v56, %v8701_v25  ;;  %v2564_v33 = vshrl.u32 %v7065_v13, 16 }
  0xe7   : > { %v1593_v29 = vrot.slane %v1591_v12, 4  ;;  %v1744_v37 = vunpack.c.l.b16 %v1566_v9  ;;  %v1745_v38 = vunpack.c.l.b16 %v1576_v10  ;;  %v2717_v23 = vunpack.c.l.b16 %v2539_v18 }
  0xe8   : > { %v2549_v21 = vsel %vm8293_vm5, %v2544_v2, %v2548_v3  ;;  %v2553_v45 = vrot.slane %v2551_v28, 4  ;;  %v2556_v47 = vrot.slane %v2554_v22, 5  ;;  %v7865_v2 = vld [vmem:[%s8244_s18 + $0x3c] sm:$0xff]  ;;  %v6890_v4 = vrot.slane %v6880_v63, 9  ;;  %v7067_v28 = vld [vmem:[%s8244_s18 + $0x54] sm:$0xf] }
  0xe9   : > { %v2718_v42 = vunpack.c.l.b16 %v2549_v21  ;;  %v1761_v57 = vpack.c.b16 %v1745_v38, %v1744_v37  ;;  %v1602_v18 = vshrl.u32 %v6813_v6, 16  ;;  %v1605_v21 = vshll.u32 %v6813_v6, 16 }
  0xea   : > { %v2557_v5 = vor.u32 %v2556_v47, %v2553_v45  ;;  %v1976_v38 = vsel %vm8283_vm4, %v6890_v4, %v1975_v61  ;;  %v2575_v47 = vshrl.u32 %v7067_v28, 16 }
  0xeb   : > { %v1173_v39 = vpop.f32.mrf.mxu2  ;;  %v742_v49 = vpop.f32.mrf.mxu0  ;;  %v2734_v3 = vpack.c.b16 %v2718_v42, %v2717_v23 }
  0xec   : > { %v1398_v40 = vpop.f32.mrf.mxu3  ;;  %v1213_v48 = vadd.f32 %v1173_v39, %v907_v15  ;;  %v909_v52 = vpop.f32.mrf.mxu1  ;;  %v2038_v39 = vunpack.c.l.b16 %v1969_v16 }
  0xed   : > { %v910_v51 = vadd.f32 %v909_v52, %v742_v49  ;;  %v8743_v49 = vrot.slane %v2560_v32, 5  ;;  %v2566_v52 = vrot.slane %v2564_v33, 4  ;;  %v8772_v33 = vld [vmem:[%s8244_s18 + $0x58] sm:$0xf] }
  0xee   : > { %v8715_v60 = vadd.f32 %v1398_v40, %v1213_v48  ;;  %1844 = vmatmul.bf16.gmra.mxu0 %v1760_v36  ;;  %v8740_v36 = vrot.slane %v1587_v11, 5  ;;  %v2039_v40 = vunpack.c.l.b16 %v1972_v17  ;;  %v1584_v48 = vor.u32 %v1583_v31, %v1580_v27  ;;  %v8758_v17 = vld [vmem:[%s8244_s18 + $0x4c] sm:$0xf] }
  0xef   : > { %2138 = vmatmul.bf16.gmra.mxu1 %v2054_v41  ;;  %v6812_v41 = vld [vmem:[%s8244_s18 + $0x44] sm:$0x1]  ;;  %v2567_v10 = vor.u32 %v2566_v52, %v8743_v49  ;;  %v2570_v11 = vshll.u32 %v8747_v55, 16  ;;  %v1611_v31 = vshll.u32 %v8758_v17, 16  ;;  %v1615_v32 = vshrl.u32 %v8758_v17, 16 }
  0xf0   : > { %2363 = vmatmul.bf16.gmra.mxu2 %v7864_v53  ;;  %v1594_v53 = vor.u32 %v1593_v29, %v8740_v36  ;;  %v2055_v59 = vpack.c.b16 %v2039_v40, %v2038_v39  ;;  %v1585_v9 = vrot.slane %v1584_v48, 4  ;;  %v1978_v16 = vrot.slane %v6812_v41, 5 }
  0xf1   : > { %2817 = vmatmul.bf16.gmra.mxu3 %v2733_v54  ;;  %v1597_v54 = vshll.u32 %v6812_v41, 16  ;;  %v2572_v27 = vrot.slane %v2570_v11, 5  ;;  %v1604_v40 = vrot.slane %v1602_v18, 4  ;;  %v2578_v48 = vshll.u32 %v7067_v28, 16 }
  0xf2   : > { %v1595_v13 = vrot.slane %v1594_v53, 4  ;;  %v1590_v22 = vsel %vm8293_vm5, %v1585_v9, %v8740_v36  ;;  %v1607_v36 = vrot.slane %v1605_v21, 5  ;;  %v1617_v63 = vrot.slane %v1615_v32, 4 }
  0xf3   : > { %v1176_v14 = vpop.f32.mrf.mxu2  ;;  %v744_v25 = vpop.f32.mrf.mxu0  ;;  %v2580_v6 = vrot.slane %v2578_v48, 5  ;;  %v1982_v21 = vrot.slane %v8758_v17, 5  ;;  %v8802_v17 = vld [vmem:[%s8244_s18 + $0x58] sm:$0xf] }
  0xf4   : > { %v1401_v15 = vpop.f32.mrf.mxu3  ;;  %v1214_v24 = vadd.f32 %v1176_v14, %v910_v51  ;;  %v911_v26 = vpop.f32.mrf.mxu1  ;;  %v1599_v14 = vrot.slane %v1597_v54, 5  ;;  %v2584_v54 = vshll.u32 %v8772_v33, 16 }
  0xf5   : > { %v912_v30 = vadd.f32 %v911_v26, %v744_v25  ;;  %v7891_v25 = vld [vmem:[%s10312_s1 + $0x218] sm:$0xff]  ;;  %v2568_v26 = vrot.slane %v2567_v10, 4 }
  0xf6   : > { %v8738_v35 = vadd.f32 %v1401_v15, %v1214_v24  ;;  %v1977_v15 = vrot.slane %v1975_v61, 4  ;;  %v2558_v24 = vrot.slane %v2557_v5, 4  ;;  %3097 = vmatpush.bf16.msra.mxu0 %v7891_v25  ;;  %v2577_v5 = vrot.slane %v2575_v47, 4 }
  0xf7   : > { %v2573_v53 = vsel %vm8293_vm5, %v2568_v26, %v2572_v27  ;;  %v7866_v27 = vld [vmem:[%s8244_s18 + $0x48] sm:$0xff] }
  0xf8   : > { %v1979_v39 = vsel %vm8283_vm4, %v1977_v15, %v1978_v16  ;;  %v2563_v45 = vsel %vm8293_vm5, %v2558_v24, %v8743_v49  ;;  %v6815_v49 = vld [vmem:[%s8244_s18 + $0x50] sm:$0x1] }
  0xf9   : > { %v1621_v11 = vshll.u32 %v6815_v49, 16 }
  0xfb   : > { %v1178_v51 = vpop.f32.mrf.mxu2  ;;  %v747_v0 = vpop.f32.mrf.mxu0 }
  0xfc   : > { %v1403_v56 = vpop.f32.mrf.mxu3  ;;  %v1215_v58 = vadd.f32 %v1178_v51, %v912_v30  ;;  %v914_v1 = vpop.f32.mrf.mxu1  ;;  %v1600_v30 = vsel %vm8293_vm5, %v1595_v13, %v1599_v14  ;;  %v2588_v51 = vshrl.u32 %v8772_v33, 16  ;;  %v8791_v13 = vld [vmem:[%s8244_s18 + $0x5c] sm:$0x1] }
  0xfd   : > { %v915_v8 = vadd.f32 %v914_v1, %v747_v0  ;;  %v1747_v61 = vunpack.c.l.b16 %v1600_v30  ;;  %v2041_v0 = vunpack.c.l.b16 %v1979_v39  ;;  %v1608_v1 = vor.u32 %v1607_v36, %v1604_v40 }
  0xfe   : > { %v8755_v12 = vadd.f32 %v1403_v56, %v1215_v58  ;;  %1849 = vmatmul.bf16.gmra.mxu0 %v1761_v57  ;;  %v1746_v57 = vunpack.c.l.b16 %v1590_v22  ;;  %v2040_v58 = vunpack.c.l.b16 %v1976_v38  ;;  %v2590_v9 = vrot.slane %v2588_v51, 4  ;;  %v6881_v22 = vld [vmem:[%s8244_s18 + $0x48] sm:$0xe] }
  0xff   : > { %2143 = vmatmul.bf16.gmra.mxu1 %v2055_v59  ;;  %v1613_v59 = vrot.slane %v1611_v31, 5  ;;  %v1609_v18 = vrot.slane %v1608_v1, 4  ;;  %v2581_v30 = vor.u32 %v2580_v6, %v2577_v5  ;;  %v1623_v40 = vrot.slane %v1621_v11, 5 }
 0x100   : > { %2368 = vmatmul.bf16.gmra.mxu2 %v7865_v2  ;;  %v2719_v2 = vunpack.c.l.b16 %v2563_v45  ;;  %v1762_v15 = vpack.c.b16 %v1747_v61, %v1746_v57  ;;  %v2056_v16 = vpack.c.b16 %v2041_v0, %v2040_v58  ;;  %v7070_v45 = vld [vmem:[%s8244_s18 + $0x60] sm:$0xf]  ;;  %v1635_v57 = vshll.u32 %v8802_v17, 16 }
 0x101   : > { %2822 = vmatmul.bf16.gmra.mxu3 %v2734_v3  ;;  %v2720_v3 = vunpack.c.l.b16 %v2573_v53  ;;  %v1618_v10 = vor.u32 %v1617_v63, %v1613_v59  ;;  %v1614_v36 = vsel %vm8293_vm5, %v1609_v18, %v1613_v59  ;;  %v2582_v47 = vrot.slane %v2581_v30, 4  ;;  %v8808_v53 = vld [vmem:[%s8244_s18 + $0x64] sm:$0xf] }
 0x102   : > { %v1639_v63 = vshrl.u32 %v8802_v17, 16  ;;  %v1748_v61 = vunpack.c.l.b16 %v1614_v36  ;;  %v2599_v58 = vshrl.u32 %v7070_v45, 16  ;;  %v2602_v0 = vshll.u32 %v7070_v45, 16  ;;  %v6882_v45 = vld [vmem:[%s8244_s18 + $0x54] sm:$0xe] }
 0x103   : > { %v1181_v29 = vpop.f32.mrf.mxu2  ;;  %v749_v23 = vpop.f32.mrf.mxu0  ;;  %v2735_v28 = vpack.c.b16 %v2720_v3, %v2719_v2  ;;  %v1619_v39 = vrot.slane %v1618_v10, 4  ;;  %v2608_v5 = vshll.u32 %v8808_v53, 16  ;;  %v2612_v6 = vshrl.u32 %v8808_v53, 16 }
 0x104   : > { %v1406_v37 = vpop.f32.mrf.mxu3  ;;  %v1216_v41 = vadd.f32 %v1181_v29, %v915_v8  ;;  %v916_v42 = vpop.f32.mrf.mxu1  ;;  %v8788_v8 = vrot.slane %v2584_v54, 5  ;;  %v2594_v29 = vshll.u32 %v8791_v13, 16 }
 0x105   : > { %v917_v52 = vadd.f32 %v916_v42, %v749_v23  ;;  %v1984_v23 = vrot.slane %v1982_v21, 4  ;;  %v1985_v42 = vrot.slane %v6815_v49, 5  ;;  %v1624_v59 = vsel %vm8293_vm5, %v1619_v39, %v1623_v40 }
 0x106   : > { %v8785_v56 = vadd.f32 %v1406_v37, %v1216_v41  ;;  %v2591_v32 = vor.u32 %v2590_v9, %v8788_v8  ;;  %v6816_v37 = vld [vmem:[%s8244_s18 + $0x54] sm:$0xf]  ;;  %v6891_v41 = vrot.slane %v6881_v22, 9  ;;  %v2596_v51 = vrot.slane %v2594_v29, 5 }
 0x107   : > { %v1626_v48 = vshrl.u32 %v6816_v37, 16  ;;  %v1986_v3 = vsel %vm8283_vm4, %v1984_v23, %v1985_v42  ;;  %v2604_v22 = vrot.slane %v2602_v0, 5  ;;  %v8836_v29 = vrot.slane %v2608_v5, 5  ;;  %v8846_v5 = vld [vmem:[%s8244_s18 + $0x64] sm:$0xf] }
 0x108   : > { %v2592_v54 = vrot.slane %v2591_v32, 4  ;;  %v1983_v2 = vsel %vm8283_vm4, %v6891_v41, %v1982_v21  ;;  %v8834_v32 = vld [vmem:[%s8244_s18 + $0x68] sm:$0x1]  ;;  %v1989_v42 = vrot.slane %v8802_v17, 5  ;;  %v6819_v17 = vld [vmem:[%s8244_s18 + $0x60] sm:$0xf] }
 0x109   : > { %v2042_v30 = vunpack.c.l.b16 %v1983_v2 }
 0x10a   : > { %v2597_v21 = vsel %vm8293_vm5, %v2592_v54, %v2596_v51 }
 0x10b   : > { %v1183_v14 = vpop.f32.mrf.mxu2  ;;  %v752_v25 = vpop.f32.mrf.mxu0  ;;  %v2722_v40 = vunpack.c.l.b16 %v2597_v21  ;;  %v1653_v21 = vshll.u32 %v6819_v17, 16 }
 0x10c   : > { %v1408_v4 = vpop.f32.mrf.mxu3  ;;  %v1217_v24 = vadd.f32 %v1183_v14, %v917_v52  ;;  %v919_v26 = vpop.f32.mrf.mxu1  ;;  %v1629_v52 = vshll.u32 %v6816_v37, 16  ;;  %v2587_v14 = vsel %vm8293_vm5, %v2582_v47, %v8788_v8  ;;  %v2601_v8 = vrot.slane %v2599_v58, 4 }
 0x10d   : > { %v920_v31 = vadd.f32 %v919_v26, %v752_v25  ;;  %v8829_v25 = vrot.slane %v1635_v57, 5  ;;  %v1641_v26 = vrot.slane %v1639_v63, 4  ;;  %v2614_v37 = vrot.slane %v2612_v6, 4  ;;  %v7867_v57 = vld [vmem:[%s8244_s18 + $0x54] sm:$0xff] }
 0x10e   : > { %v8799_v38 = vadd.f32 %v1408_v4, %v1217_v24  ;;  %1854 = vmatmul.bf16.gmra.mxu0 %v1762_v15  ;;  %v1628_v4 = vrot.slane %v1626_v48, 4  ;;  %v1631_v15 = vrot.slane %v1629_v52, 5  ;;  %v6818_v24 = vld [vmem:[%s8244_s18 + $0x5c] sm:$0x1]  ;;  %v2721_v39 = vunpack.c.l.b16 %v2587_v14 }
 0x10f   : > { %2148 = vmatmul.bf16.gmra.mxu1 %v2056_v16  ;;  %v7890_v16 = vld [vmem:[%s10312_s1 + $0x210] sm:$0xff]  ;;  %v1645_v41 = vshll.u32 %v6818_v24, 16  ;;  %v1642_v23 = vor.u32 %v1641_v26, %v8829_v25  ;;  %v2605_v47 = vor.u32 %v2604_v22, %v2601_v8  ;;  %v2618_v48 = vshll.u32 %v8834_v32, 16 }
 0x110   : > { %2373 = vmatmul.bf16.gmra.mxu2 %v7866_v27  ;;  %3098 = vmatpush.bf16.msra.mxu0 %v7890_v16  ;;  %v1632_v36 = vor.u32 %v1631_v15, %v1628_v4  ;;  %v1659_v26 = vshll.u32 %v8846_v5, 16 }
 0x111   : > { %2827 = vmatmul.bf16.gmra.mxu3 %v2735_v28  ;;  %v1749_v28 = vunpack.c.l.b16 %v1624_v59  ;;  %v2615_v59 = vor.u32 %v2614_v37, %v8836_v29  ;;  %v2606_v4 = vrot.slane %v2605_v47, 4  ;;  %v2620_v15 = vrot.slane %v2618_v48, 5 }
 0x112   : > { %v1633_v2 = vrot.slane %v1632_v36, 4 }
 0x113   : > { %v1186_v49 = vpop.f32.mrf.mxu2  ;;  %v754_v10 = vpop.f32.mrf.mxu0  ;;  %v1763_v51 = vpack.c.b16 %v1749_v28, %v1748_v61  ;;  %v1992_v61 = vrot.slane %v6818_v24, 5  ;;  %v2616_v16 = vrot.slane %v2615_v59, 4  ;;  %v1663_v28 = vshrl.u32 %v8846_v5, 16  ;;  %v7073_v24 = vld [vmem:[%s8244_s18 + $0x6c] sm:$0xf] }
 0x114   : > { %v1411_v1 = vpop.f32.mrf.mxu3  ;;  %v1218_v9 = vadd.f32 %v1186_v49, %v920_v31  ;;  %v921_v11 = vpop.f32.mrf.mxu1  ;;  %v2043_v31 = vunpack.c.l.b16 %v1986_v3  ;;  %v1647_v3 = vrot.slane %v1645_v41, 5  ;;  %v1638_v8 = vsel %vm8293_vm5, %v1633_v2, %v8829_v25 }
 0x115   : > { %v922_v18 = vadd.f32 %v921_v11, %v754_v10  ;;  %v6892_v10 = vrot.slane %v6882_v45, 9  ;;  %v1991_v11 = vrot.slane %v1989_v42, 4  ;;  %v2611_v37 = vsel %vm8293_vm5, %v2606_v4, %v8836_v29 }
 0x116   : > { %v8831_v27 = vadd.f32 %v1411_v1, %v1218_v9  ;;  %v2057_v63 = vpack.c.b16 %v2043_v31, %v2042_v30  ;;  %v2736_v1 = vpack.c.b16 %v2722_v40, %v2721_v39  ;;  %v1643_v9 = vrot.slane %v1642_v23, 4  ;;  %v8866_v39 = vld [vmem:[%s8244_s18 + $0x70] sm:$0xf] }
 0x117   : > { %v1990_v30 = vsel %vm8283_vm4, %v6892_v10, %v1989_v42  ;;  %v1993_v31 = vsel %vm8283_vm4, %v1991_v11, %v1992_v61  ;;  %v2621_v25 = vsel %vm8293_vm5, %v2616_v16, %v2620_v15  ;;  %v1655_v23 = vrot.slane %v1653_v21, 5  ;;  %v8886_v16 = vld [vmem:[%s8244_s18 + $0x74] sm:$0x1] }
 0x118   : > { %v1648_v22 = vsel %vm8293_vm5, %v1643_v9, %v1647_v3  ;;  %v8870_v45 = vrot.slane %v1659_v26, 5  ;;  %v2632_v59 = vshll.u32 %v8866_v39, 16  ;;  %v2045_v2 = vunpack.c.l.b16 %v1993_v31  ;;  %v7889_v3 = vld [vmem:[%s10312_s1 + $0x208] sm:$0xff] }
 0x119   : > { %3099 = vmatpush.bf16.msra.mxu0 %v7889_v3  ;;  %v1996_v15 = vrot.slane %v8846_v5, 5 }
 0x11b   : > { %v1188_v52 = vpop.f32.mrf.mxu2  ;;  %v757_v0 = vpop.f32.mrf.mxu0 }
 0x11c   : > { %v1413_v54 = vpop.f32.mrf.mxu3  ;;  %v1219_v58 = vadd.f32 %v1188_v52, %v922_v18  ;;  %v924_v49 = vpop.f32.mrf.mxu1  ;;  %v1650_v18 = vshrl.u32 %v6819_v17, 16  ;;  %v8873_v52 = vld [vmem:[%s8244_s18 + $0x68] sm:$0x1]  ;;  %v2723_v17 = vunpack.c.l.b16 %v2611_v37 }
 0x11d   : > { %v925_v6 = vadd.f32 %v924_v49, %v757_v0  ;;  %v1751_v49 = vunpack.c.l.b16 %v1648_v22  ;;  %v1669_v10 = vshll.u32 %v8873_v52, 16 }
 0x11e   : > { %v8848_v14 = vadd.f32 %v1413_v54, %v1219_v58  ;;  %1859 = vmatmul.bf16.gmra.mxu0 %v1763_v51  ;;  %v1652_v41 = vrot.slane %v1650_v18, 4  ;;  %v1665_v54 = vrot.slane %v1663_v28, 4  ;;  %v2623_v51 = vshrl.u32 %v7073_v24, 16  ;;  %v6883_v28 = vld [vmem:[%s8244_s18 + $0x60] sm:$0xe] }
 0x11f   : > { %2153 = vmatmul.bf16.gmra.mxu1 %v2057_v63  ;;  %v1750_v63 = vunpack.c.l.b16 %v1638_v8  ;;  %v2636_v58 = vshrl.u32 %v8866_v39, 16  ;;  %v8888_v18 = vrot.slane %v2632_v59, 5  ;;  %v1671_v37 = vrot.slane %v1669_v10, 5 }
 0x120   : > { %2378 = vmatmul.bf16.gmra.mxu2 %v7867_v57  ;;  %v2626_v57 = vshll.u32 %v7073_v24, 16  ;;  %v1656_v9 = vor.u32 %v1655_v23, %v1652_v41  ;;  %v1666_v11 = vor.u32 %v1665_v54, %v8870_v45  ;;  %v2625_v61 = vrot.slane %v2623_v51, 4  ;;  %v7868_v41 = vld [vmem:[%s8244_s18 + $0x60] sm:$0xff] }
 0x121   : > { %2832 = vmatmul.bf16.gmra.mxu3 %v2736_v1  ;;  %v2044_v1 = vunpack.c.l.b16 %v1990_v30  ;;  %v2638_v21 = vrot.slane %v2636_v58, 4  ;;  %v1764_v26 = vpack.c.b16 %v1751_v49, %v1750_v63  ;;  %v6893_v51 = vrot.slane %v6883_v28, 9 }
 0x122   : > { %v2628_v4 = vrot.slane %v2626_v57, 5  ;;  %v1657_v31 = vrot.slane %v1656_v9, 4  ;;  %v1667_v23 = vrot.slane %v1666_v11, 4  ;;  %v1998_v57 = vrot.slane %v1996_v15, 4 }
 0x123   : > { %v1191_v40 = vpop.f32.mrf.mxu2  ;;  %v759_v42 = vpop.f32.mrf.mxu0  ;;  %v2058_v22 = vpack.c.b16 %v2045_v2, %v2044_v1  ;;  %v2639_v63 = vor.u32 %v2638_v21, %v8888_v18  ;;  %v7076_v1 = vld [vmem:[%s8244_s18 + $0x78] sm:$0xf]  ;;  %v1997_v21 = vsel %vm8283_vm4, %v6893_v51, %v1996_v15 }
 0x124   : > { %v1416_v36 = vpop.f32.mrf.mxu3  ;;  %v1220_v47 = vadd.f32 %v1191_v40, %v925_v6  ;;  %v926_v48 = vpop.f32.mrf.mxu1  ;;  %v2724_v6 = vunpack.c.l.b16 %v2621_v25  ;;  %v6822_v40 = vld [vmem:[%s8244_s18 + $0x6c] sm:$0xf] }
 0x125   : > { %v927_v29 = vadd.f32 %v926_v48, %v759_v42  ;;  %v2642_v42 = vshll.u32 %v8886_v16, 16  ;;  %v8895_v48 = vld [vmem:[%s8244_s18 + $0x70] sm:$0xf]  ;;  %v1674_v58 = vshrl.u32 %v6822_v40, 16  ;;  %v1677_v49 = vshll.u32 %v6822_v40, 16 }
 0x126   : > { %v8877_v0 = vadd.f32 %v1416_v36, %v1220_v47  ;;  %v2737_v30 = vpack.c.b16 %v2724_v6, %v2723_v17  ;;  %v2629_v47 = vor.u32 %v2628_v4, %v2625_v61  ;;  %v1683_v2 = vshll.u32 %v8895_v48, 16 }
 0x127   : > { %v1687_v3 = vshrl.u32 %v8895_v48, 16  ;;  %v1662_v17 = vsel %vm8293_vm5, %v1657_v31, %v8870_v45  ;;  %v1672_v6 = vsel %vm8293_vm5, %v1667_v23, %v1671_v37  ;;  %v2640_v10 = vrot.slane %v2639_v63, 4  ;;  %v6824_v23 = vld [vmem:[%s8244_s18 + $0x74] sm:$0x1] }
 0x128   : > { %v2630_v9 = vrot.slane %v2629_v47, 4  ;;  %v2644_v11 = vrot.slane %v2642_v42, 5  ;;  %v2647_v61 = vshrl.u32 %v7076_v1, 16  ;;  %v2650_v4 = vshll.u32 %v7076_v1, 16 }
 0x129   : > { %v1676_v28 = vrot.slane %v1674_v58, 4  ;;  %v1753_v15 = vunpack.c.l.b16 %v1672_v6  ;;  %v1693_v1 = vshll.u32 %v6824_v23, 16  ;;  %v8930_v6 = vld [vmem:[%s8244_s18 + $0x80] sm:$0x1] }
 0x12a   : > { %v2645_v42 = vsel %vm8293_vm5, %v2640_v10, %v2644_v11  ;;  %v2649_v51 = vrot.slane %v2647_v61, 4  ;;  %10325 = vst [vmem:[#allocation3_spill] sm:$0xff] %v8930_v6  ;;  %v2003_v10 = vrot.slane %v8895_v48, 5  ;;  %v7888_v48 = vld [vmem:[%s10312_s1 + $0x200] sm:$0xff] }
 0x12b   : > { %v1193_v8 = vpop.f32.mrf.mxu2  ;;  %v762_v25 = vpop.f32.mrf.mxu0  ;;  %3100 = vmatpush.bf16.msra.mxu0 %v7888_v48 }
 0x12c   : > { %v1418_v24 = vpop.f32.mrf.mxu3  ;;  %v1221_v36 = vadd.f32 %v1193_v8, %v927_v29  ;;  %v929_v5 = vpop.f32.mrf.mxu1  ;;  %v1999_v29 = vrot.slane %v8873_v52, 5  ;;  %v8910_v52 = vld [vmem:[%s8244_s18 + $0x7c] sm:$0xf]  ;;  %v1679_v8 = vrot.slane %v1677_v49, 5 }
 0x12d   : > { %v930_v54 = vadd.f32 %v929_v5, %v762_v25  ;;  %v2656_v31 = vshll.u32 %v8910_v52, 16  ;;  %v2660_v37 = vshrl.u32 %v8910_v52, 16  ;;  %v1752_v5 = vunpack.c.l.b16 %v1662_v17 }
 0x12e   : > { %v8898_v59 = vadd.f32 %v1418_v24, %v1221_v36  ;;  %1864 = vmatmul.bf16.gmra.mxu0 %v1764_v26  ;;  %v2000_v26 = vsel %vm8283_vm4, %v1998_v57, %v1999_v29  ;;  %v2652_v57 = vrot.slane %v2650_v4, 5  ;;  %v1680_v58 = vor.u32 %v1679_v8, %v1676_v28 }
 0x12f   : > { %2158 = vmatmul.bf16.gmra.mxu1 %v2058_v22  ;;  %v8916_v22 = vrot.slane %v1683_v2, 5  ;;  %v2047_v29 = vunpack.c.l.b16 %v2000_v26  ;;  %v2658_v2 = vrot.slane %v2656_v31, 5  ;;  %v2726_v17 = vunpack.c.l.b16 %v2645_v42 }
 0x130   : > { %2383 = vmatmul.bf16.gmra.mxu2 %v7868_v41  ;;  %v2635_v41 = vsel %vm8293_vm5, %v2630_v9, %v8888_v18  ;;  %v6884_v9 = vld [vmem:[%s8244_s18 + $0x6c] sm:$0xe]  ;;  %v2653_v11 = vor.u32 %v2652_v57, %v2649_v51  ;;  %v1765_v61 = vpack.c.b16 %v1753_v15, %v1752_v5  ;;  %v1695_v8 = vrot.slane %v1693_v1, 5  ;;  %v8950_v1 = vld [vmem:[%s8244_s18 + $0x7c] sm:$0xf] }
 0x131   : > { %2837 = vmatmul.bf16.gmra.mxu3 %v2737_v30  ;;  %v1689_v30 = vrot.slane %v1687_v3, 4  ;;  %v2662_v3 = vrot.slane %v2660_v37, 4  ;;  %v2725_v18 = vunpack.c.l.b16 %v2635_v41  ;;  %v6894_v41 = vrot.slane %v6884_v9, 9  ;;  %v7079_v9 = vld [vmem:[%s8244_s18 + $0x84] sm:$0xf] }
 0x132   : > { %v2005_v15 = vrot.slane %v2003_v10, 4  ;;  %v2006_v42 = vrot.slane %v6824_v23, 5  ;;  %v2654_v51 = vrot.slane %v2653_v11, 4  ;;  %v2674_v48 = vshll.u32 %v7079_v9, 16 }
 0x133   : > { %v1196_v45 = vpop.f32.mrf.mxu2  ;;  %v764_v36 = vpop.f32.mrf.mxu0  ;;  %v1690_v49 = vor.u32 %v1689_v30, %v8916_v22  ;;  %v2666_v30 = vshll.u32 %v8930_v6, 16  ;;  %v2004_v23 = vsel %vm8283_vm4, %v6894_v41, %v2003_v10 }
 0x134   : > { %v1421_v24 = vpop.f32.mrf.mxu3  ;;  %v1222_v40 = vadd.f32 %v1196_v45, %v930_v54  ;;  %v931_v25 = vpop.f32.mrf.mxu1  ;;  %v2046_v54 = vunpack.c.l.b16 %v1997_v21  ;;  %v1681_v45 = vrot.slane %v1680_v58, 4  ;;  %v2048_v10 = vunpack.c.l.b16 %v2004_v23 }
 0x135   : > { %v932_v47 = vadd.f32 %v931_v25, %v764_v36  ;;  %v1691_v28 = vrot.slane %v1690_v49, 4  ;;  %v7869_v36 = vld [vmem:[%s8244_s18 + $0x6c] sm:$0xff]  ;;  %v2738_v25 = vpack.c.b16 %v2726_v17, %v2725_v18  ;;  %v2668_v58 = vrot.slane %v2666_v30, 5  ;;  %v6825_v49 = vld [vmem:[%s8244_s18 + $0x78] sm:$0xf] }
 0x136   : > { %v8926_v63 = vadd.f32 %v1421_v24, %v1222_v40  ;;  %v2059_v4 = vpack.c.b16 %v2047_v29, %v2046_v54  ;;  %v2663_v24 = vor.u32 %v2662_v3, %v2658_v2  ;;  %v8070_v3 = vld [vmem:[%s8244_s18 + $0x1c] sm:$0xf]  ;;  %v2007_v17 = vsel %vm8283_vm4, %v2005_v15, %v2006_v42 }
 0x137   : > { %v1696_v54 = vsel %vm8293_vm5, %v1691_v28, %v1695_v8  ;;  %v2920_v18 = vrot.slane %v8070_v3, 5  ;;  %v1711_v30 = vshrl.u32 %v8950_v1, 16 }
 0x138   : > { %v2664_v29 = vrot.slane %v2663_v24, 4  ;;  %v1707_v24 = vshll.u32 %v8950_v1, 16 }
 0x139   : > { %v1713_v3 = vrot.slane %v1711_v30, 4 }
 0x13a   : > { %v2669_v8 = vsel %vm8293_vm5, %v2664_v29, %v2668_v58  ;;  %v2922_v58 = vrot.slane %v2920_v18, 4  ;;  %v1709_v23 = vrot.slane %v1707_v24, 5 }
 0x13b   : > { %v1198_v21 = vpop.f32.mrf.mxu2  ;;  %v767_v37 = vpop.f32.mrf.mxu0 }
 0x13c   : > { %v1423_v26 = vpop.f32.mrf.mxu3  ;;  %v1223_v31 = vadd.f32 %v1198_v21, %v932_v47  ;;  %v934_v40 = vpop.f32.mrf.mxu1  ;;  %v1686_v47 = vsel %vm8293_vm5, %v1681_v45, %v8916_v22  ;;  %v2659_v22 = vsel %vm8293_vm5, %v2654_v51, %v2658_v2  ;;  %v1701_v45 = vshll.u32 %v6825_v49, 16  ;;  %v8959_v21 = vld [vmem:[%s8244_s18 + $0x88] sm:$0xf] }
 0x13d   : > { %v935_v5 = vadd.f32 %v934_v40, %v767_v37  ;;  %v1754_v11 = vunpack.c.l.b16 %v1686_v47  ;;  %10326 = vst [vmem:[#allocation4_spill] sm:$0xff] %v8959_v21  ;;  %v2049_v40 = vunpack.c.l.b16 %v2007_v17  ;;  %v2680_v15 = vshll.u32 %v8959_v21, 16  ;;  %v6827_v17 = vld [vmem:[%s8244_s18 + $0x80] sm:$0x1] }
 0x13e   : > { %v8939_v57 = vadd.f32 %v1423_v26, %v1223_v31  ;;  %1869 = vmatmul.bf16.gmra.mxu0 %v1765_v61  ;;  %v1755_v61 = vunpack.c.l.b16 %v1696_v54  ;;  %v2684_v42 = vshrl.u32 %v8959_v21, 16  ;;  %v2728_v47 = vunpack.c.l.b16 %v2669_v8 }
 0x13f   : > { %2163 = vmatmul.bf16.gmra.mxu1 %v2059_v4  ;;  %v1698_v4 = vshrl.u32 %v6825_v49, 16  ;;  %v1703_v29 = vrot.slane %v1701_v45, 5  ;;  %v8973_v45 = vld [vmem:[%s8244_s18 + $0x8c] sm:$0x1]  ;;  %v1717_v24 = vshll.u32 %v6827_v17, 16 }
 0x140   : > { %2388 = vmatmul.bf16.gmra.mxu2 %v7869_v36  ;;  %v2727_v36 = vunpack.c.l.b16 %v2659_v22  ;;  %v1766_v21 = vpack.c.b16 %v1755_v61, %v1754_v11  ;;  %v2010_v11 = vrot.slane %v8950_v1, 5 }
 0x141   : > { %2842 = vmatmul.bf16.gmra.mxu3 %v2738_v25  ;;  %v2671_v25 = vshrl.u32 %v7079_v9, 16  ;;  %v1700_v54 = vrot.slane %v1698_v4, 4  ;;  %v2682_v9 = vrot.slane %v2680_v15, 5 }
 0x143   : > { %v1201_v26 = vpop.f32.mrf.mxu2  ;;  %v769_v2 = vpop.f32.mrf.mxu0  ;;  %v2673_v22 = vrot.slane %v2671_v25, 4  ;;  %v1704_v4 = vor.u32 %v1703_v29, %v1700_v54  ;;  %v2690_v29 = vshll.u32 %v8973_v45, 16 }
 0x144   : > { %v1426_v28 = vpop.f32.mrf.mxu3  ;;  %v1224_v31 = vadd.f32 %v1201_v26, %v935_v5  ;;  %v936_v37 = vpop.f32.mrf.mxu1  ;;  %v8071_v5 = vld [vmem:[%s8244_s18 + $0x20] sm:$0x1]  ;;  %v7130_v26 = vld [vmem:[%s8244_s18 + $0x18] sm:$0xe] }
 0x145   : > { %v937_v41 = vadd.f32 %v936_v37, %v769_v2  ;;  %v2923_v49 = vrot.slane %v8071_v5, 5  ;;  %v2676_v2 = vrot.slane %v2674_v48, 5  ;;  %v2686_v37 = vrot.slane %v2684_v42, 4  ;;  %v7870_v42 = vld [vmem:[%s8244_s18 + $0x78] sm:$0xff] }
 0x146   : > { %v8967_v51 = vadd.f32 %v1426_v28, %v1224_v31  ;;  %v7140_v6 = vrot.slane %v7130_v26, 9  ;;  %v2060_v28 = vpack.c.b16 %v2049_v40, %v2048_v10  ;;  %v2739_v31 = vpack.c.b16 %v2728_v47, %v2727_v36  ;;  %v6885_v36 = vld [vmem:[%s8244_s18 + $0x78] sm:$0xe] }
 0x147   : > { %v1714_v5 = vor.u32 %v1713_v3, %v1709_v23  ;;  %v2924_v25 = vsel %vm8283_vm4, %v2922_v58, %v2923_v49  ;;  %v2677_v47 = vor.u32 %v2676_v2, %v2673_v22  ;;  %v2687_v54 = vor.u32 %v2686_v37, %v2682_v9 }
 0x148   : > { %10327 = vst [vmem:[#allocation5_spill] sm:$0xff] %v8967_v51  ;;  %v2921_v30 = vsel %vm8283_vm4, %v7140_v6, %v2920_v18  ;;  %v3006_v10 = vunpack.c.l.b16 %v2924_v25  ;;  %v1705_v18 = vrot.slane %v1704_v4, 4  ;;  %v6895_v58 = vrot.slane %v6885_v36, 9 }
 0x149   : > { %v3005_v61 = vunpack.c.l.b16 %v2921_v30  ;;  %v1715_v1 = vrot.slane %v1714_v5, 4  ;;  %v2012_v49 = vrot.slane %v2010_v11, 4  ;;  %v2013_v26 = vrot.slane %v6827_v17, 5 }
 0x14a   : > { %v2692_v30 = vrot.slane %v2690_v29, 5  ;;  %v1710_v2 = vsel %vm8293_vm5, %v1705_v18, %v1709_v23 }
 0x14b   : > { %v1203_v8 = vpop.f32.mrf.mxu2  ;;  %v1835_v15 = vpop.f32.mrf.mxu0  ;;  %v3025_v6 = vpack.c.b16 %v3006_v10, %v3005_v61  ;;  %v2014_v37 = vsel %vm8283_vm4, %v2012_v49, %v2013_v26  ;;  %v1756_v23 = vunpack.c.l.b16 %v1710_v2  ;;  %v7871_v61 = vld [vmem:[%s8244_s18 + $0x84] sm:$0xff]  ;;  %v8074_v2 = vld [vmem:[%s8244_s18 + $0x34] sm:$0xf] }
 0x14c   : > { %v1428_v51 = vpop.f32.mrf.mxu3  ;;  %v1225_v48 = vadd.f32 %v1203_v8, %v937_v41  ;;  %v8982_v40 = vadd.f32 %v1835_v15, %v8580_v50  ;;  %v1719_v41 = vrot.slane %v1717_v24, 5  ;;  %v2678_v50 = vrot.slane %v2677_v47, 4 }
 0x14d   : > { %v2688_v8 = vrot.slane %v2687_v54, 4  ;;  %v2051_v24 = vunpack.c.l.b16 %v2014_v37  ;;  %v8072_v54 = vld [vmem:[%s8244_s18 + $0x28] sm:$0xf]  ;;  %v7132_v37 = vld [vmem:[%s8244_s18 + $0x30] sm:$0xe] }
 0x14e   : > { %v8986_v3 = vadd.f32 %v1428_v51, %v1225_v48  ;;  %1874 = vmatmul.bf16.gmra.mxu0 %v1766_v21  ;;  %v1720_v21 = vsel %vm8293_vm5, %v1715_v1, %v1719_v41  ;;  %v2011_v51 = vsel %vm8283_vm4, %v6895_v58, %v2010_v11  ;;  %v2683_v17 = vsel %vm8293_vm5, %v2678_v50, %v2682_v9  ;;  %v7131_v41 = vld [vmem:[%s8244_s18 + $0x24] sm:$0xe]  ;;  %v8073_v58 = vld [vmem:[%s8244_s18 + $0x2c] sm:$0x1] }
 0x14f   : > { %2168 = vmatmul.bf16.gmra.mxu1 %v2060_v28  ;;  %v1757_v4 = vunpack.c.l.b16 %v1720_v21  ;;  %v2050_v5 = vunpack.c.l.b16 %v2011_v51  ;;  %v2729_v25 = vunpack.c.l.b16 %v2683_v17  ;;  %v2927_v29 = vrot.slane %v8072_v54, 5 }
 0x150   : > { %2393 = vmatmul.bf16.gmra.mxu2 %v7870_v42  ;;  %v2930_v49 = vrot.slane %v8073_v58, 5  ;;  %v2934_v21 = vrot.slane %v8074_v2, 5  ;;  %v7142_v17 = vrot.slane %v7132_v37, 9 }
 0x151   : > { %2847 = vmatmul.bf16.gmra.mxu3 %v2739_v31  ;;  %v2693_v31 = vsel %vm8293_vm5, %v2688_v8, %v2692_v30  ;;  %v1767_v15 = vpack.c.b16 %v1757_v4, %v1756_v23  ;;  %v2061_v42 = vpack.c.b16 %v2051_v24, %v2050_v5  ;;  %v2929_v1 = vrot.slane %v2927_v29, 4  ;;  %v8075_v23 = vld [vmem:[%s8244_s18 + $0x38] sm:$0x1] }
 0x152   : > { %v2730_v48 = vunpack.c.l.b16 %v2693_v31  ;;  %v2936_v31 = vrot.slane %v2934_v21, 4  ;;  %v2937_v4 = vrot.slane %v8075_v23, 5  ;;  %v2935_v5 = vsel %vm8283_vm4, %v7142_v17, %v2934_v21 }
 0x153   : > { %v1837_v22 = vpop.f32.mrf.mxu0  ;;  %v2931_v50 = vsel %vm8283_vm4, %v2929_v1, %v2930_v49  ;;  %v2951_v21 = vrot.slane %v8747_v55, 5  ;;  %v7135_v55 = vld [vmem:[%s8244_s18 + $0x54] sm:$0xe] }
 0x154   : > { %v8997_v28 = vadd.f32 %v1837_v22, %v8592_v19  ;;  %v2740_v19 = vpack.c.b16 %v2730_v48, %v2729_v25  ;;  %v3008_v30 = vunpack.c.l.b16 %v2931_v50  ;;  %v2938_v24 = vsel %vm8283_vm4, %v2936_v31, %v2937_v4  ;;  %v8078_v50 = vld [vmem:[%s8244_s18 + $0x4c] sm:$0xf] }
 0x155   : > { %v3010_v48 = vunpack.c.l.b16 %v2938_v24 }
 0x15b   : > { %v1840_v11 = vpop.f32.mrf.mxu0 }
 0x15c   : > { %v9005_v10 = vadd.f32 %v1840_v11, %v8620_v62  ;;  %v7141_v62 = vrot.slane %v7131_v41, 9  ;;  %v8076_v11 = vld [vmem:[%s8244_s18 + $0x40] sm:$0xf] }
 0x15e   : > { %1879 = vmatmul.bf16.gmra.mxu0 %v1767_v15 }
 0x15f   : > { %2173 = vmatmul.bf16.gmra.mxu1 %v2061_v42 }
 0x160   : > { %2398 = vmatmul.bf16.gmra.mxu2 %v7871_v61  ;;  %v2941_v61 = vrot.slane %v8076_v11, 5 }
 0x161   : > { %2852 = vmatmul.bf16.gmra.mxu3 %v2740_v19 }
 0x162   : > { %v2943_v54 = vrot.slane %v2941_v61, 4 }
 0x163   : > { %v1842_v9 = vpop.f32.mrf.mxu0 }
 0x164   : > { %v9008_v36 = vadd.f32 %v1842_v9, %v8634_v34  ;;  %v2928_v34 = vsel %vm8283_vm4, %v7141_v62, %v2927_v29  ;;  %v7133_v9 = vld [vmem:[%s8244_s18 + $0x3c] sm:$0xe]  ;;  %v8077_v29 = vld [vmem:[%s8244_s18 + $0x44] sm:$0x1] }
 0x165   : > { %v2944_v41 = vrot.slane %v8077_v29, 5  ;;  %v2962_v29 = vrot.slane %v8808_v53, 5 }
 0x167   : > { %v2945_v1 = vsel %vm8283_vm4, %v2943_v54, %v2944_v41  ;;  %v7136_v41 = vld [vmem:[%s8244_s18 + $0x60] sm:$0xe] }
 0x16b   : > { %v1845_v47 = vpop.f32.mrf.mxu0 }
 0x16c   : > { %v9012_v18 = vadd.f32 %v1845_v47, %v8659_v7  ;;  %v3007_v7 = vunpack.c.l.b16 %v2928_v34  ;;  %v7143_v47 = vrot.slane %v7133_v9, 9 }
 0x16e   : > { %3101 = vmatmul.bf16.vlgmr.msra.gmra.mxu0 %v3025_v6  ;;  %v3026_v22 = vpack.c.b16 %v3008_v30, %v3007_v7  ;;  %v2948_v7 = vrot.slane %v8078_v50, 5 }
 0x170   : > { %v2950_v2 = vrot.slane %v2948_v7, 4 }
 0x172   : > { %v2952_v17 = vsel %vm8283_vm4, %v2950_v2, %v2951_v21  ;;  %v2969_v21 = vrot.slane %v8866_v39, 5 }
 0x173   : > { %v1847_v26 = vpop.f32.mrf.mxu0 }
 0x174   : > { %v9021_v8 = vadd.f32 %v1847_v26, %v8673_v44 }
 0x17b   : > { %v1850_v6 = vpop.f32.mrf.mxu0 }
 0x17c   : > { %v9025_v51 = vadd.f32 %v1850_v6, %v8698_v20  ;;  %v3009_v20 = vunpack.c.l.b16 %v2935_v5  ;;  %v2955_v5 = vrot.slane %v8772_v33, 5 }
 0x17e   : > { %3106 = vmatmul.bf16.gmra.mxu0 %v3026_v22  ;;  %v3027_v15 = vpack.c.b16 %v3010_v48, %v3009_v20  ;;  %v7134_v22 = vld [vmem:[%s8244_s18 + $0x48] sm:$0xe]  ;;  %v7145_v20 = vrot.slane %v7135_v55, 9  ;;  %v2957_v48 = vrot.slane %v2955_v5, 4  ;;  %v8121_v55 = vmov 0  }
 0x17f   : > { %v7144_v6 = vrot.slane %v7134_v22, 9  ;;  %3236 = vst [vmem:[#allocation2] sm:$0xf] %v8121_v55 }
 0x180   : > { %3237 = vst [vmem:[#allocation2 + $0x4] sm:$0xf] %v8121_v55 }
 0x181   : > { %3238 = vst [vmem:[#allocation2 + $0x8] sm:$0x1] %v8121_v55 }
 0x182   : > { %3239 = vst [vmem:[#allocation2 + $0xc] sm:$0xf] %v8121_v55 }
 0x183   : > { %v1852_v44 = vpop.f32.mrf.mxu0  ;;  %3240 = vst [vmem:[#allocation2 + $0x10] sm:$0xf] %v8121_v55 }
 0x184   : > { %v9034_v25 = vadd.f32 %v1852_v44, %v8715_v60  ;;  %v2942_v60 = vsel %vm8283_vm4, %v7143_v47, %v2941_v61  ;;  %v9075_v47 = vpop.f32.mrf.mxu1  ;;  %3241 = vst [vmem:[#allocation2 + $0x14] sm:$0x1] %v8121_v55 }
 0x185   : > { %v3011_v49 = vunpack.c.l.b16 %v2942_v60  ;;  %v7146_v60 = vrot.slane %v7136_v41, 9  ;;  %3242 = vst [vmem:[#allocation2 + $0x18] sm:$0xf] %v8121_v55 }
 0x186   : > { %3243 = vst [vmem:[#allocation2 + $0x1c] sm:$0xf] %v8121_v55 }
 0x187   : > { %3244 = vst [vmem:[#allocation2 + $0x20] sm:$0x1] %v8121_v55 }
 0x188   : > { %3245 = vst [vmem:[#allocation2 + $0x24] sm:$0xf] %v8121_v55 }
 0x189   : > { %3246 = vst [vmem:[#allocation2 + $0x28] sm:$0xf] %v8121_v55 }
 0x18a   : > { %3247 = vst [vmem:[#allocation2 + $0x2c] sm:$0x1] %v8121_v55 }
 0x18b   : > { %v1855_v42 = vpop.f32.mrf.mxu0  ;;  %3248 = vst [vmem:[#allocation2 + $0x30] sm:$0xf] %v8121_v55 }
 0x18c   : > { %v9038_v19 = vadd.f32 %v1855_v42, %v8738_v35  ;;  %v3012_v35 = vunpack.c.l.b16 %v2945_v1  ;;  %v2964_v1 = vrot.slane %v2962_v29, 4  ;;  %3249 = vst [vmem:[#allocation2 + $0x34] sm:$0xf] %v8121_v55 }
 0x18d   : > { %3250 = vst [vmem:[#allocation2 + $0x38] sm:$0x1] %v8121_v55 }
 0x18e   : > { %3111 = vmatmul.bf16.gmra.mxu0 %v3027_v15  ;;  %v3028_v26 = vpack.c.b16 %v3012_v35, %v3011_v49  ;;  %v2958_v15 = vrot.slane %v8791_v13, 5  ;;  %v9085_v49 = vpop.f32.mrf.mxu3  ;;  %3251 = vst [vmem:[#allocation2 + $0x3c] sm:$0xf] %v8121_v55 }
 0x18f   : > { %3252 = vst [vmem:[#allocation2 + $0x40] sm:$0xf] %v8121_v55 }
 0x190   : > { %v2959_v11 = vsel %vm8283_vm4, %v2957_v48, %v2958_v15  ;;  %3253 = vst [vmem:[#allocation2 + $0x44] sm:$0x1] %v8121_v55 }
 0x191   : > { %3254 = vst [vmem:[#allocation2 + $0x48] sm:$0xf] %v8121_v55 }
 0x192   : > { %3255 = vst [vmem:[#allocation2 + $0x4c] sm:$0xf] %v8121_v55 }
 0x193   : > { %v1857_v62 = vpop.f32.mrf.mxu0  ;;  %3256 = vst [vmem:[#allocation2 + $0x50] sm:$0x1] %v8121_v55 }
 0x194   : > { %v9047_v58 = vadd.f32 %v1857_v62, %v8755_v12  ;;  %v2949_v12 = vsel %vm8283_vm4, %v7144_v6, %v2948_v7  ;;  %v9082_v62 = vpop.f32.mrf.mxu2  ;;  %3257 = vst [vmem:[#allocation2 + $0x54] sm:$0xf] %v8121_v55 }
 0x195   : > { %v3013_v23 = vunpack.c.l.b16 %v2949_v12  ;;  %v7137_v12 = vld [vmem:[%s8244_s18 + $0x6c] sm:$0xe]  ;;  %3258 = vst [vmem:[#allocation2 + $0x58] sm:$0xf] %v8121_v55 }
 0x196   : > { %3259 = vst [vmem:[#allocation2 + $0x5c] sm:$0x1] %v8121_v55 }
 0x197   : > { %3260 = vst [vmem:[#allocation2 + $0x60] sm:$0xf] %v8121_v55 }
 0x198   : > { %3261 = vst [vmem:[#allocation2 + $0x64] sm:$0xf] %v8121_v55 }
 0x199   : > { %3262 = vst [vmem:[#allocation2 + $0x68] sm:$0x1] %v8121_v55 }
 0x19a   : > { %3263 = vst [vmem:[#allocation2 + $0x6c] sm:$0xf] %v8121_v55 }
 0x19b   : > { %v1860_v34 = vpop.f32.mrf.mxu0  ;;  %3264 = vst [vmem:[#allocation2 + $0x70] sm:$0xf] %v8121_v55 }
 0x19c   : > { %v9051_v30 = vadd.f32 %v1860_v34, %v8785_v56  ;;  %v3014_v56 = vunpack.c.l.b16 %v2952_v17  ;;  %v9094_v34 = vpop.f32.mrf.mxu1  ;;  %v9096_v22 = vpop.f32.mrf.mxu2  ;;  %3265 = vst [vmem:[#allocation2 + $0x74] sm:$0x1] %v8121_v55 }
 0x19e   : > { %3116 = vmatmul.bf16.gmra.mxu0 %v3028_v26  ;;  %v3029_v4 = vpack.c.b16 %v3014_v56, %v3013_v23  ;;  %v2963_v26 = vsel %vm8283_vm4, %v7146_v60, %v2962_v29  ;;  %v2971_v23 = vrot.slane %v2969_v21, 4  ;;  %v2972_v56 = vrot.slane %v8886_v16, 5  ;;  %v10329_v60 = vld [vmem:[#allocation3_spill] sm:$0xff] }
 0x19f   : > { %v3017_v50 = vunpack.c.l.b16 %v2963_v26 }
 0x1a0   : > { %v2973_v39 = vsel %vm8283_vm4, %v2971_v23, %v2972_v56  ;;  %v10330_v23 = vld [vmem:[#allocation4_spill] sm:$0xff] }
 0x1a1   : > { %v3020_v48 = vunpack.c.l.b16 %v2973_v39  ;;  %v2983_v56 = vrot.slane %v10330_v23, 5 }
 0x1a3   : > { %v1862_v37 = vpop.f32.mrf.mxu0 }
 0x1a4   : > { %v9060_v31 = vadd.f32 %v1862_v37, %v8799_v38  ;;  %v2956_v38 = vsel %vm8283_vm4, %v7145_v20, %v2955_v5  ;;  %v9105_v17 = vpop.f32.mrf.mxu1 }
 0x1a5   : > { %v3015_v33 = vunpack.c.l.b16 %v2956_v38 }
 0x1ab   : > { %v1865_v44 = vpop.f32.mrf.mxu0 }
 0x1ac   : > { %v9064_v24 = vadd.f32 %v1865_v44, %v8831_v27  ;;  %v3016_v27 = vunpack.c.l.b16 %v2959_v11  ;;  %v9125_v15 = vpop.f32.mrf.mxu1  ;;  %v2976_v11 = vrot.slane %v8910_v52, 5 }
 0x1ae   : > { %3121 = vmatmul.bf16.gmra.mxu0 %v3029_v4  ;;  %v3030_v9 = vpack.c.b16 %v3016_v27, %v3015_v33  ;;  %v9108_v4 = vpop.f32.mrf.mxu2  ;;  %v10328_v33 = vld [vmem:[#allocation5_spill] sm:$0xff]  ;;  %v2978_v41 = vrot.slane %v2976_v11, 4 }
 0x1b3   : > { %v1867_v42 = vpop.f32.mrf.mxu0 }
 0x1b4   : > { %v9073_v61 = vadd.f32 %v1867_v42, %v8848_v14  ;;  %v2965_v14 = vrot.slane %v8834_v32, 5  ;;  %v9098_v32 = vpop.f32.mrf.mxu3  ;;  %v9147_v52 = vpop.f32.mrf.mxu1 }
 0x1b6   : > { %v2966_v53 = vsel %vm8283_vm4, %v2964_v1, %v2965_v14  ;;  %v9129_v42 = vpop.f32.mrf.mxu2  ;;  %v2979_v1 = vrot.slane %v10329_v60, 5 }
 0x1b7   : > { %v3018_v7 = vunpack.c.l.b16 %v2966_v53  ;;  %v2179_v53 = vadd.f32 %v9075_v47, %v8982_v40  ;;  %v9174_v47 = vld [vmem:[%s10313_s2] ss:$0 sm:$0xff] }
 0x1b8   : > { %v2980_v26 = vsel %vm8283_vm4, %v2978_v41, %v2979_v1 }
 0x1b9   : > { %v3031_v6 = vpack.c.b16 %v3018_v7, %v3017_v50 }
 0x1bb   : > { %v1870_v54 = vpop.f32.mrf.mxu0 }
 0x1bc   : > { %v9079_v13 = vadd.f32 %v1870_v54, %v8877_v0  ;;  %v9119_v20 = vpop.f32.mrf.mxu3 }
 0x1be   : > { %3126 = vmatmul.bf16.gmra.mxu0 %v3030_v9  ;;  %v7138_v9 = vld [vmem:[%s8244_s18 + $0x78] sm:$0xe]  ;;  %v9160_v7 = vpop.f32.mrf.mxu2 }
 0x1bf   : > { %v7148_v29 = vrot.slane %v7138_v9, 9  ;;  %v2181_v9 = vadd.f32 %v9105_v17, %v9005_v10  ;;  %v3472_v17 = vld [vmem:[#allocation2] sm:$0xf] }
 0x1c1   : > { %v2406_v55 = vadd.f32 %v9108_v4, %v2181_v9 }
 0x1c3   : > { %v1872_v35 = vpop.f32.mrf.mxu0 }
 0x1c4   : > { %v9092_v0 = vadd.f32 %v1872_v35, %v8898_v59  ;;  %v7147_v59 = vrot.slane %v7137_v12, 9  ;;  %v9140_v54 = vpop.f32.mrf.mxu3  ;;  %v2977_v35 = vsel %vm8283_vm4, %v7148_v29, %v2976_v11 }
 0x1c6   : > { %v2970_v5 = vsel %vm8283_vm4, %v7147_v59, %v2969_v21  ;;  %v3022_v21 = vunpack.c.l.b16 %v2980_v26  ;;  %v7139_v59 = vld [vmem:[%s8244_s18 + $0x84] sm:$0xe] }
 0x1c7   : > { %v3019_v16 = vunpack.c.l.b16 %v2970_v5 }
 0x1cb   : > { %v1875_v2 = vpop.f32.mrf.mxu0 }
 0x1cc   : > { %v9102_v37 = vadd.f32 %v1875_v2, %v8926_v63  ;;  %v3021_v2 = vunpack.c.l.b16 %v2977_v35  ;;  %v9167_v40 = vpop.f32.mrf.mxu3 }
 0x1ce   : > { %3131 = vmatmul.bf16.gmra.mxu0 %v3031_v6  ;;  %v2404_v6 = vadd.f32 %v9082_v62, %v2179_v53  ;;  %v3033_v62 = vpack.c.b16 %v3022_v21, %v3021_v2 }
 0x1d3   : > { %v1877_v44 = vpop.f32.mrf.mxu0 }
 0x1d4   : > { %v9116_v63 = vadd.f32 %v1877_v44, %v8939_v57  ;;  %v3032_v57 = vpack.c.b16 %v3020_v48, %v3019_v16  ;;  %v2180_v44 = vadd.f32 %v9094_v34, %v8997_v28  ;;  %v7149_v48 = vrot.slane %v7139_v59, 9  ;;  %v9199_v29 = vpop.f32.mrf.mxu3 }
 0x1d5   : > { %v2985_v28 = vrot.slane %v2983_v56, 4  ;;  %v2986_v34 = vrot.slane %v8973_v45, 5 }
 0x1d6   : > { %v2405_v39 = vadd.f32 %v9096_v22, %v2180_v44  ;;  %v2984_v22 = vsel %vm8283_vm4, %v7149_v48, %v2983_v56  ;;  %v2182_v56 = vadd.f32 %v9125_v15, %v9008_v36  ;;  %v3478_v36 = vld [vmem:[#allocation2 + $0x8] sm:$0x1] }
 0x1d7   : > { %v2987_v60 = vsel %vm8283_vm4, %v2985_v28, %v2986_v34 }
 0x1d8   : > { %v2859_v11 = vadd.f32 %v9098_v32, %v2405_v39  ;;  %v3023_v32 = vunpack.c.l.b16 %v2984_v22  ;;  %v3024_v53 = vunpack.c.l.b16 %v2987_v60 }
 0x1da   : > { %v3034_v59 = vpack.c.b16 %v3024_v53, %v3023_v32  ;;  %v2183_v32 = vadd.f32 %v9147_v52, %v9012_v18 }
 0x1db   : > { %v1880_v38 = vpop.f32.mrf.mxu0 }
 0x1dc   : > { %v9134_v27 = vadd.f32 %v1880_v38, %v10328_v33  ;;  %v9218_v39 = vpop.f32.mrf.mxu3 }
 0x1de   : > { %3136 = vmatmul.bf16.gmra.mxu0 %v3032_v57  ;;  %v9189_v57 = vpop.f32.mrf.mxu2 }
 0x1e3   : > { %v1882_v14 = vpop.f32.mrf.mxu0 }
 0x1e4   : > { %v9157_v50 = vadd.f32 %v1882_v14, %v8986_v3  ;;  %v2858_v3 = vadd.f32 %v9085_v49, %v2404_v6  ;;  %v9183_v49 = vpop.f32.mrf.mxu1 }
 0x1eb   : > { %v3102_v12 = vpop.f32.mrf.mxu0 }
 0x1ec   : > { %v3152_v5 = vadd.f32 %v3102_v12, %v2858_v3  ;;  %v9205_v6 = vpop.f32.mrf.mxu1  ;;  %v9211_v3 = vpop.f32.mrf.mxu2 }
 0x1ee   : > { %v3176_v16 = vadd.f32 %v9174_v47, %v3152_v5  ;;  %3141 = vmatmul.bf16.gmra.mxu0 %v3033_v62  ;;  %v2860_v62 = vadd.f32 %v9119_v20, %v2406_v55 }
 0x1f0   : > { %v3196_v38 = vmax.f32 %v3176_v16, 0.0  ;;  %v2407_v16 = vadd.f32 %v9129_v42, %v2182_v56 }
 0x1f2   : > { %v3216_v33 = vpack.c.bf16 %v3196_v38, %v3196_v38  ;;  %v2861_v42 = vadd.f32 %v9140_v54, %v2407_v16 }
 0x1f3   : > { %v3104_v41 = vpop.f32.mrf.mxu0 }
 0x1f4   : > { %v3270_v1 = vshrl.u32 %v3216_v33, 16  ;;  %v3153_v45 = vadd.f32 %v3104_v41, %v2859_v11  ;;  %v3273_v35 = vshll.u32 %v3216_v33, 16  ;;  %v9230_v9 = vpop.f32.mrf.mxu1 }
 0x1f6   : > { %v3272_v14 = vrot.slane %v3270_v1, 7  ;;  %v3177_v26 = vadd.f32 %v9174_v47, %v3153_v45  ;;  %v9237_v45 = vpop.f32.mrf.mxu2 }
 0x1f8   : > { %v3275_v2 = vor.u32 %v3273_v35, %v3272_v14  ;;  %v3197_v21 = vmax.f32 %v3177_v26, 0.0  ;;  %v3276_v15 = vrot.slane %v3272_v14, 4  ;;  %v2408_v26 = vadd.f32 %v9160_v7, %v2183_v32 }
 0x1f9   : > { %v2184_v7 = vadd.f32 %v9183_v49, %v9021_v8 }
 0x1fa   : > { %v3473_v4 = vsel %vm9207_vm8, %v3275_v2, %v3472_v17  ;;  %v3217_v12 = vpack.c.bf16 %v3197_v21, %v3197_v21  ;;  %v9243_v2 = vpop.f32.mrf.mxu3  ;;  %v3481_v21 = vld [vmem:[#allocation2 + $0xc] sm:$0xf] }
 0x1fb   : > { %3474 = vst [vmem:[#allocation2] sm:$0xf] %v3473_v4  ;;  %v3107_v23 = vpop.f32.mrf.mxu0  ;;  %v2409_v16 = vadd.f32 %v9189_v57, %v2184_v7 }
 0x1fc   : > { %v3278_v44 = vshrl.u32 %v3217_v12, 16  ;;  %v3154_v5 = vadd.f32 %v3107_v23, %v2860_v62  ;;  %v3281_v28 = vshll.u32 %v3217_v12, 16  ;;  %v2862_v12 = vadd.f32 %v9167_v40, %v2408_v26  ;;  %v2149_v52 = vpop.f32.mrf.mxu1  ;;  %v3485_v40 = vld [vmem:[#allocation2 + $0x14] sm:$0x1] }
 0x1fe   : > { %v3280_v48 = vrot.slane %v3278_v44, 7  ;;  %v3178_v34 = vadd.f32 %v9174_v47, %v3154_v5  ;;  %3146 = vmatmul.bf16.gmra.mxu0 %v3034_v59  ;;  %v2374_v5 = vpop.f32.mrf.mxu2 }
 0x200   : > { %v3283_v11 = vor.u32 %v3281_v28, %v3280_v48  ;;  %v3285_v33 = vrot.slane %v3280_v48, 4  ;;  %v3198_v22 = vmax.f32 %v3178_v34, 0.0 }
 0x202   : > { %v3284_v41 = vsel %vm9221_vm12, %v3276_v15, %v3283_v11  ;;  %v3479_v60 = vsel %vm9226_vm13, %v3285_v33, %v3478_v36  ;;  %v3218_v1 = vpack.c.bf16 %v3198_v22, %v3198_v22  ;;  %v2828_v22 = vpop.f32.mrf.mxu3 }
 0x203   : > { %3475 = vst [vmem:[#allocation2 + $0x4] sm:$0xf] %v3284_v41  ;;  %v3109_v55 = vpop.f32.mrf.mxu0 }
 0x204   : > { %3480 = vst [vmem:[#allocation2 + $0x8] sm:$0x1] %v3479_v60  ;;  %v3287_v14 = vshrl.u32 %v3218_v1, 16  ;;  %v3155_v35 = vadd.f32 %v3109_v55, %v2861_v42  ;;  %v3290_v53 = vshll.u32 %v3218_v1, 16  ;;  %v2863_v42 = vadd.f32 %v9199_v29, %v2409_v16  ;;  %v2151_v32 = vpop.f32.mrf.mxu1 }
 0x205   : > { %v2185_v60 = vadd.f32 %v9205_v6, %v9025_v51 }
 0x206   : > { %v3289_v54 = vrot.slane %v3287_v14, 7  ;;  %v3179_v17 = vadd.f32 %v9174_v47, %v3155_v35 }
 0x207   : > { %v2410_v14 = vadd.f32 %v9211_v3, %v2185_v60  ;;  %v2186_v3 = vadd.f32 %v9230_v9, %v9034_v25 }
 0x208   : > { %v3292_v62 = vor.u32 %v3290_v53, %v3289_v54  ;;  %v3199_v4 = vmax.f32 %v3179_v17, 0.0  ;;  %v3293_v36 = vrot.slane %v3289_v54, 4  ;;  %v2376_v54 = vpop.f32.mrf.mxu2  ;;  %v3488_v53 = vld [vmem:[#allocation2 + $0x18] sm:$0xf] }
 0x20a   : > { %v3482_v59 = vsel %vm9207_vm8, %v3292_v62, %v3481_v21  ;;  %v3219_v18 = vpack.c.bf16 %v3199_v4, %v3199_v4  ;;  %v2864_v62 = vadd.f32 %v9218_v39, %v2410_v14  ;;  %v2830_v6 = vpop.f32.mrf.mxu3  ;;  %v3492_v39 = vld [vmem:[#allocation2 + $0x20] sm:$0x1] }
 0x20b   : > { %3483 = vst [vmem:[#allocation2 + $0xc] sm:$0xf] %v3482_v59  ;;  %v3112_v23 = vpop.f32.mrf.mxu0 }
 0x20c   : > { %v3295_v56 = vshrl.u32 %v3219_v18, 16  ;;  %v3156_v44 = vadd.f32 %v3112_v23, %v2862_v12  ;;  %v3298_v28 = vshll.u32 %v3219_v18, 16  ;;  %v2411_v23 = vadd.f32 %v9237_v45, %v2186_v3  ;;  %v2154_v16 = vpop.f32.mrf.mxu1 }
 0x20e   : > { %v3297_v48 = vrot.slane %v3295_v56, 7  ;;  %v3180_v34 = vadd.f32 %v9174_v47, %v3156_v44 }
 0x210   : > { %v3300_v15 = vor.u32 %v3298_v28, %v3297_v48  ;;  %v3302_v11 = vrot.slane %v3297_v48, 4  ;;  %v3200_v33 = vmax.f32 %v3180_v34, 0.0 }
 0x212   : > { %v3301_v8 = vsel %vm9221_vm12, %v3293_v36, %v3300_v15  ;;  %v3486_v49 = vsel %vm9226_vm13, %v3302_v11, %v3485_v40  ;;  %v3220_v41 = vpack.c.bf16 %v3200_v33, %v3200_v33  ;;  %v2379_v36 = vpop.f32.mrf.mxu2  ;;  %v2865_v15 = vadd.f32 %v9243_v2, %v2411_v23 }
 0x213   : > { %3484 = vst [vmem:[#allocation2 + $0x10] sm:$0xf] %v3301_v8  ;;  %v3114_v57 = vpop.f32.mrf.mxu0  ;;  %v2187_v33 = vadd.f32 %v2149_v52, %v9038_v19  ;;  %v2188_v52 = vadd.f32 %v2151_v32, %v9047_v58 }
 0x214   : > { %3487 = vst [vmem:[#allocation2 + $0x14] sm:$0x1] %v3486_v49  ;;  %v3304_v1 = vshrl.u32 %v3220_v41, 16  ;;  %v3157_v55 = vadd.f32 %v3114_v57, %v2863_v42  ;;  %v3307_v29 = vshll.u32 %v3220_v41, 16  ;;  %v2833_v49 = vpop.f32.mrf.mxu3 }
 0x215   : > { %v2412_v41 = vadd.f32 %v2374_v5, %v2187_v33 }
 0x216   : > { %v3306_v35 = vrot.slane %v3304_v1, 7  ;;  %v3181_v26 = vadd.f32 %v9174_v47, %v3157_v55  ;;  %v3495_v1 = vld [vmem:[#allocation2 + $0x24] sm:$0xf] }
 0x218   : > { %v3309_v17 = vor.u32 %v3307_v29, %v3306_v35  ;;  %v3201_v21 = vmax.f32 %v3181_v26, 0.0  ;;  %v3310_v48 = vrot.slane %v3306_v35, 4  ;;  %v2156_v35 = vpop.f32.mrf.mxu1  ;;  %v2866_v29 = vadd.f32 %v2828_v22, %v2412_v41 }
 0x21a   : > { %v3489_v4 = vsel %vm9207_vm8, %v3309_v17, %v3488_v53  ;;  %v3221_v51 = vpack.c.bf16 %v3201_v21, %v3201_v21  ;;  %v2381_v17 = vpop.f32.mrf.mxu2 }
 0x21b   : > { %3490 = vst [vmem:[#allocation2 + $0x18] sm:$0xf] %v3489_v4  ;;  %v3117_v12 = vpop.f32.mrf.mxu0 }
 0x21c   : > { %v3312_v59 = vshrl.u32 %v3221_v51, 16  ;;  %v3158_v18 = vadd.f32 %v3117_v12, %v2864_v62  ;;  %v3315_v56 = vshll.u32 %v3221_v51, 16  ;;  %v2413_v62 = vadd.f32 %v2376_v54, %v2188_v52  ;;  %v2835_v3 = vpop.f32.mrf.mxu3 }
 0x21e   : > { %v3314_v7 = vrot.slane %v3312_v59, 7  ;;  %v3182_v44 = vadd.f32 %v9174_v47, %v3158_v18  ;;  %v3499_v59 = vld [vmem:[#allocation2 + $0x2c] sm:$0x1] }
 0x220   : > { %v3317_v28 = vor.u32 %v3315_v56, %v3314_v7  ;;  %v3319_v34 = vrot.slane %v3314_v7, 4  ;;  %v3202_v40 = vmax.f32 %v3182_v44, 0.0  ;;  %v2867_v56 = vadd.f32 %v2830_v6, %v2413_v62 }
 0x222   : > { %v3318_v25 = vsel %vm9221_vm12, %v3310_v48, %v3317_v28  ;;  %v3493_v9 = vsel %vm9226_vm13, %v3319_v34, %v3492_v39  ;;  %v3222_v45 = vpack.c.bf16 %v3202_v40, %v3202_v40  ;;  %v2159_v39 = vpop.f32.mrf.mxu1  ;;  %v2189_v48 = vadd.f32 %v2154_v16, %v9051_v30  ;;  %v2384_v40 = vpop.f32.mrf.mxu2 }
 0x223   : > { %3491 = vst [vmem:[#allocation2 + $0x1c] sm:$0xf] %v3318_v25  ;;  %v3119_v11 = vpop.f32.mrf.mxu0  ;;  %v2190_v16 = vadd.f32 %v2156_v35, %v9060_v31 }
 0x224   : > { %3494 = vst [vmem:[#allocation2 + $0x20] sm:$0x1] %v3493_v9  ;;  %v3321_v42 = vshrl.u32 %v3222_v45, 16  ;;  %v3159_v8 = vadd.f32 %v3119_v11, %v2865_v15  ;;  %v3324_v60 = vshll.u32 %v3222_v45, 16  ;;  %v2414_v15 = vadd.f32 %v2379_v36, %v2189_v48  ;;  %v3502_v45 = vld [vmem:[#allocation2 + $0x30] sm:$0xf] }
 0x226   : > { %v3323_v57 = vrot.slane %v3321_v42, 7  ;;  %v3183_v2 = vadd.f32 %v9174_v47, %v3159_v8  ;;  %v2838_v42 = vpop.f32.mrf.mxu3  ;;  %v2868_v8 = vadd.f32 %v2833_v49, %v2414_v15 }
 0x228   : > { %v3326_v55 = vor.u32 %v3324_v60, %v3323_v57  ;;  %v3203_v14 = vmax.f32 %v3183_v2, 0.0  ;;  %v3327_v18 = vrot.slane %v3323_v57, 4 }
 0x22a   : > { %v3496_v26 = vsel %vm9207_vm8, %v3326_v55, %v3495_v1  ;;  %v3223_v53 = vpack.c.bf16 %v3203_v14, %v3203_v14  ;;  %v2161_v36 = vpop.f32.mrf.mxu1  ;;  %v2415_v1 = vadd.f32 %v2381_v17, %v2190_v16 }
 0x22b   : > { %3497 = vst [vmem:[#allocation2 + $0x24] sm:$0xf] %v3496_v26  ;;  %v3122_v19 = vpop.f32.mrf.mxu0  ;;  %v2386_v26 = vpop.f32.mrf.mxu2 }
 0x22c   : > { %v3329_v21 = vshrl.u32 %v3223_v53, 16  ;;  %v3160_v5 = vadd.f32 %v3122_v19, %v2866_v29  ;;  %v3332_v51 = vshll.u32 %v3223_v53, 16  ;;  %v3506_v53 = vld [vmem:[#allocation2 + $0x38] sm:$0x1] }
 0x22e   : > { %v3331_v4 = vrot.slane %v3329_v21, 7  ;;  %v3184_v12 = vadd.f32 %v9174_v47, %v3160_v5  ;;  %v2869_v5 = vadd.f32 %v2835_v3, %v2415_v1 }
 0x230   : > { %v3334_v22 = vor.u32 %v3332_v51, %v3331_v4  ;;  %v3336_v23 = vrot.slane %v3331_v4, 4  ;;  %v3204_v7 = vmax.f32 %v3184_v12, 0.0  ;;  %v2840_v4 = vpop.f32.mrf.mxu3  ;;  %v2191_v51 = vadd.f32 %v2159_v39, %v9064_v24 }
 0x231   : > { %v2192_v39 = vadd.f32 %v2161_v36, %v9073_v61 }
 0x232   : > { %v3335_v44 = vsel %vm9221_vm12, %v3327_v18, %v3334_v22  ;;  %v3500_v58 = vsel %vm9226_vm13, %v3336_v23, %v3499_v59  ;;  %v3224_v32 = vpack.c.bf16 %v3204_v7, %v3204_v7  ;;  %v2416_v18 = vadd.f32 %v2384_v40, %v2191_v51  ;;  %v2164_v7 = vpop.f32.mrf.mxu1 }
 0x233   : > { %3498 = vst [vmem:[#allocation2 + $0x28] sm:$0xf] %v3335_v44  ;;  %v3124_v54 = vpop.f32.mrf.mxu0  ;;  %v2193_v1 = vadd.f32 %v2164_v7, %v9079_v13  ;;  %v3520_v7 = vld [vmem:[#allocation2 + $0x50] sm:$0x1] }
 0x234   : > { %3501 = vst [vmem:[#allocation2 + $0x2c] sm:$0x1] %v3500_v58  ;;  %v3338_v28 = vshrl.u32 %v3224_v32, 16  ;;  %v3161_v34 = vadd.f32 %v3124_v54, %v2867_v56  ;;  %v3341_v9 = vshll.u32 %v3224_v32, 16  ;;  %v3509_v56 = vld [vmem:[#allocation2 + $0x3c] sm:$0xf]  ;;  %v2389_v32 = vpop.f32.mrf.mxu2  ;;  %v2870_v54 = vadd.f32 %v2838_v42, %v2416_v18 }
 0x236   : > { %v3340_v25 = vrot.slane %v3338_v28, 7  ;;  %v3185_v6 = vadd.f32 %v9174_v47, %v3161_v34 }
 0x238   : > { %v3343_v11 = vor.u32 %v3341_v9, %v3340_v25  ;;  %v3205_v33 = vmax.f32 %v3185_v6, 0.0  ;;  %v3344_v19 = vrot.slane %v3340_v25, 4  ;;  %v2843_v15 = vpop.f32.mrf.mxu3  ;;  %v2417_v25 = vadd.f32 %v2386_v26, %v2192_v39 }
 0x23a   : > { %v3503_v41 = vsel %vm9207_vm8, %v3343_v11, %v3502_v45  ;;  %v3225_v57 = vpack.c.bf16 %v3205_v33, %v3205_v33  ;;  %v3513_v11 = vld [vmem:[#allocation2 + $0x44] sm:$0x1] }
 0x23b   : > { %3504 = vst [vmem:[#allocation2 + $0x30] sm:$0xf] %v3503_v41  ;;  %v3127_v30 = vpop.f32.mrf.mxu0 }
 0x23c   : > { %v3346_v60 = vshrl.u32 %v3225_v57, 16  ;;  %v3162_v2 = vadd.f32 %v3127_v30, %v2868_v8  ;;  %v3349_v14 = vshll.u32 %v3225_v57, 16  ;;  %v2166_v57 = vpop.f32.mrf.mxu1  ;;  %v2871_v30 = vadd.f32 %v2840_v4, %v2417_v25 }
 0x23e   : > { %v3348_v55 = vrot.slane %v3346_v60, 7  ;;  %v3186_v29 = vadd.f32 %v9174_v47, %v3162_v2  ;;  %v2391_v2 = vpop.f32.mrf.mxu2 }
 0x240   : > { %v3351_v49 = vor.u32 %v3349_v14, %v3348_v55  ;;  %v3353_v52 = vrot.slane %v3348_v55, 4  ;;  %v3206_v21 = vmax.f32 %v3186_v29, 0.0  ;;  %v2418_v29 = vadd.f32 %v2389_v32, %v2193_v1 }
 0x242   : > { %v3352_v62 = vsel %vm9221_vm12, %v3344_v19, %v3351_v49  ;;  %v3507_v31 = vsel %vm9226_vm13, %v3353_v52, %v3506_v53  ;;  %v3226_v35 = vpack.c.bf16 %v3206_v21, %v3206_v21  ;;  %v2845_v49 = vpop.f32.mrf.mxu3  ;;  %v3516_v52 = vld [vmem:[#allocation2 + $0x48] sm:$0xf] }
 0x243   : > { %3505 = vst [vmem:[#allocation2 + $0x34] sm:$0xf] %v3352_v62  ;;  %v3129_v17 = vpop.f32.mrf.mxu0  ;;  %v2872_v62 = vadd.f32 %v2843_v15, %v2418_v29 }
 0x244   : > { %3508 = vst [vmem:[#allocation2 + $0x38] sm:$0x1] %v3507_v31  ;;  %v3355_v12 = vshrl.u32 %v3226_v35, 16  ;;  %v3163_v59 = vadd.f32 %v3129_v17, %v2869_v5  ;;  %v3358_v23 = vshll.u32 %v3226_v35, 16  ;;  %v2169_v4 = vpop.f32.mrf.mxu1  ;;  %v2194_v17 = vadd.f32 %v2166_v57, %v9092_v0 }
 0x246   : > { %v3357_v22 = vrot.slane %v3355_v12, 7  ;;  %v3187_v3 = vadd.f32 %v9174_v47, %v3163_v59  ;;  %v2394_v59 = vpop.f32.mrf.mxu2  ;;  %v2419_v18 = vadd.f32 %v2391_v2, %v2194_v17 }
 0x248   : > { %v3360_v44 = vor.u32 %v3358_v23, %v3357_v22  ;;  %v3207_v58 = vmax.f32 %v3187_v3, 0.0  ;;  %v3361_v33 = vrot.slane %v3357_v22, 4 }
 0x24a   : > { %v3510_v48 = vsel %vm9207_vm8, %v3360_v44, %v3509_v56  ;;  %v3227_v28 = vpack.c.bf16 %v3207_v58, %v3207_v58 }
 0x24b   : > { %3511 = vst [vmem:[#allocation2 + $0x3c] sm:$0xf] %v3510_v48  ;;  %v3132_v24 = vpop.f32.mrf.mxu0  ;;  %v2873_v48 = vadd.f32 %v2845_v49, %v2419_v18 }
 0x24c   : > { %v3363_v34 = vshrl.u32 %v3227_v28, 16  ;;  %v3164_v40 = vadd.f32 %v3132_v24, %v2870_v54  ;;  %v3366_v6 = vshll.u32 %v3227_v28, 16  ;;  %v2848_v54 = vpop.f32.mrf.mxu3  ;;  %v2171_v25 = vpop.f32.mrf.mxu1 }
 0x24e   : > { %v3365_v9 = vrot.slane %v3363_v34, 7  ;;  %v3188_v45 = vadd.f32 %v9174_v47, %v3164_v40  ;;  %v2195_v34 = vadd.f32 %v2169_v4, %v9102_v37 }
 0x250   : > { %v3368_v8 = vor.u32 %v3366_v6, %v3365_v9  ;;  %v3370_v42 = vrot.slane %v3365_v9, 4  ;;  %v3208_v41 = vmax.f32 %v3188_v45, 0.0  ;;  %v2420_v9 = vadd.f32 %v2394_v59, %v2195_v34 }
 0x252   : > { %v3369_v16 = vsel %vm9221_vm12, %v3361_v33, %v3368_v8  ;;  %v3514_v61 = vsel %vm9226_vm13, %v3370_v42, %v3513_v11  ;;  %v3228_v60 = vpack.c.bf16 %v3208_v41, %v3208_v41  ;;  %v2396_v33 = vpop.f32.mrf.mxu2  ;;  %v3523_v8 = vld [vmem:[#allocation2 + $0x54] sm:$0xf]  ;;  %v2874_v57 = vadd.f32 %v2848_v54, %v2420_v9  ;;  %v3534_v9 = vld [vmem:[#allocation2 + $0x68] sm:$0x1] }
 0x253   : > { %3512 = vst [vmem:[#allocation2 + $0x40] sm:$0xf] %v3369_v16  ;;  %v3134_v36 = vpop.f32.mrf.mxu0 }
 0x254   : > { %3515 = vst [vmem:[#allocation2 + $0x44] sm:$0x1] %v3514_v61  ;;  %v3372_v55 = vshrl.u32 %v3228_v60, 16  ;;  %v3165_v14 = vadd.f32 %v3134_v36, %v2871_v30  ;;  %v3375_v53 = vshll.u32 %v3228_v60, 16  ;;  %v2850_v61 = vpop.f32.mrf.mxu3  ;;  %v2196_v60 = vadd.f32 %v2171_v25, %v9116_v63 }
 0x256   : > { %v3374_v26 = vrot.slane %v3372_v55, 7  ;;  %v3189_v19 = vadd.f32 %v9174_v47, %v3165_v14  ;;  %v2421_v1 = vadd.f32 %v2396_v33, %v2196_v60 }
 0x258   : > { %v3377_v21 = vor.u32 %v3375_v53, %v3374_v26  ;;  %v3209_v5 = vmax.f32 %v3189_v19, 0.0  ;;  %v3378_v56 = vrot.slane %v3374_v26, 4  ;;  %v2174_v26 = vpop.f32.mrf.mxu1  ;;  %v3527_v53 = vld [vmem:[#allocation2 + $0x5c] sm:$0x1] }
 0x25a   : > { %v3517_v31 = vsel %vm9207_vm8, %v3377_v21, %v3516_v52  ;;  %v3229_v35 = vpack.c.bf16 %v3209_v5, %v3209_v5  ;;  %v2399_v5 = vpop.f32.mrf.mxu2 }
 0x25b   : > { %3518 = vst [vmem:[#allocation2 + $0x48] sm:$0xf] %v3517_v31  ;;  %v3137_v13 = vpop.f32.mrf.mxu0 }
 0x25c   : > { %v3380_v51 = vshrl.u32 %v3229_v35, 16  ;;  %v3166_v12 = vadd.f32 %v3137_v13, %v2872_v62  ;;  %v3383_v23 = vshll.u32 %v3229_v35, 16  ;;  %v2875_v62 = vadd.f32 %v2850_v61, %v2421_v1 }
 0x25d   : > { %v2197_v13 = vadd.f32 %v2174_v26, %v9134_v27 }
 0x25e   : > { %v3382_v22 = vrot.slane %v3380_v51, 7  ;;  %v3190_v3 = vadd.f32 %v9174_v47, %v3166_v12  ;;  %v2853_v12 = vpop.f32.mrf.mxu3 }
 0x25f   : > { %v2422_v59 = vadd.f32 %v2399_v5, %v2197_v13 }
 0x260   : > { %v3385_v44 = vor.u32 %v3383_v23, %v3382_v22  ;;  %v3387_v58 = vrot.slane %v3382_v22, 4  ;;  %v3210_v32 = vmax.f32 %v3190_v3, 0.0  ;;  %v3530_v3 = vld [vmem:[#allocation2 + $0x60] sm:$0xf] }
 0x262   : > { %v3386_v28 = vsel %vm9221_vm12, %v3378_v56, %v3385_v44  ;;  %v3521_v0 = vsel %vm9226_vm13, %v3387_v58, %v3520_v7  ;;  %v3230_v24 = vpack.c.bf16 %v3210_v32, %v3210_v32  ;;  %v2176_v44 = vpop.f32.mrf.mxu1  ;;  %v2876_v58 = vadd.f32 %v2853_v12, %v2422_v59 }
 0x263   : > { %3519 = vst [vmem:[#allocation2 + $0x4c] sm:$0xf] %v3386_v28  ;;  %v3139_v39 = vpop.f32.mrf.mxu0  ;;  %v2198_v28 = vadd.f32 %v2176_v44, %v9157_v50 }
 0x264   : > { %3522 = vst [vmem:[#allocation2 + $0x50] sm:$0x1] %v3521_v0  ;;  %v3389_v40 = vshrl.u32 %v3230_v24, 16  ;;  %v3167_v15 = vadd.f32 %v3139_v39, %v2873_v48  ;;  %v3392_v45 = vshll.u32 %v3230_v24, 16  ;;  %v2401_v48 = vpop.f32.mrf.mxu2 }
 0x265   : > { %v2423_v39 = vadd.f32 %v2401_v48, %v2198_v28 }
 0x266   : > { %v3391_v6 = vrot.slane %v3389_v40, 7  ;;  %v3191_v11 = vadd.f32 %v9174_v47, %v3167_v15  ;;  %v2855_v25 = vpop.f32.mrf.mxu3 }
 0x268   : > { %v3394_v42 = vor.u32 %v3392_v45, %v3391_v6  ;;  %v3211_v41 = vmax.f32 %v3191_v11, 0.0  ;;  %v3395_v19 = vrot.slane %v3391_v6, 4 }
 0x26a   : > { %v3524_v30 = vsel %vm9207_vm8, %v3394_v42, %v3523_v8  ;;  %v3231_v16 = vpack.c.bf16 %v3211_v41, %v3211_v41  ;;  %v2877_v8 = vadd.f32 %v2855_v25, %v2423_v39 }
 0x26b   : > { %3525 = vst [vmem:[#allocation2 + $0x54] sm:$0xf] %v3524_v30  ;;  %v3142_v37 = vpop.f32.mrf.mxu0 }
 0x26c   : > { %v3397_v2 = vshrl.u32 %v3231_v16, 16  ;;  %v3168_v36 = vadd.f32 %v3142_v37, %v2874_v57  ;;  %v3400_v14 = vshll.u32 %v3231_v16, 16 }
 0x26e   : > { %v3399_v55 = vrot.slane %v3397_v2, 7  ;;  %v3192_v29 = vadd.f32 %v9174_v47, %v3168_v36  ;;  %v3537_v2 = vld [vmem:[#allocation2 + $0x6c] sm:$0xf] }
 0x270   : > { %v3402_v49 = vor.u32 %v3400_v14, %v3399_v55  ;;  %v3404_v52 = vrot.slane %v3399_v55, 4  ;;  %v3212_v21 = vmax.f32 %v3192_v29, 0.0 }
 0x272   : > { %v3403_v31 = vsel %vm9221_vm12, %v3395_v19, %v3402_v49  ;;  %v3528_v63 = vsel %vm9226_vm13, %v3404_v52, %v3527_v53  ;;  %v3232_v35 = vpack.c.bf16 %v3212_v21, %v3212_v21  ;;  %v3541_v19 = vld [vmem:[#allocation2 + $0x74] sm:$0x1] }
 0x273   : > { %3526 = vst [vmem:[#allocation2 + $0x58] sm:$0xf] %v3403_v31  ;;  %v3144_v4 = vpop.f32.mrf.mxu0 }
 0x274   : > { %3529 = vst [vmem:[#allocation2 + $0x5c] sm:$0x1] %v3528_v63  ;;  %v3406_v17 = vshrl.u32 %v3232_v35, 16  ;;  %v3169_v51 = vadd.f32 %v3144_v4, %v2875_v62  ;;  %v3409_v22 = vshll.u32 %v3232_v35, 16 }
 0x276   : > { %v3408_v18 = vrot.slane %v3406_v17, 7  ;;  %v3193_v23 = vadd.f32 %v9174_v47, %v3169_v51 }
 0x278   : > { %v3411_v7 = vor.u32 %v3409_v22, %v3408_v18  ;;  %v3213_v56 = vmax.f32 %v3193_v23, 0.0  ;;  %v3412_v6 = vrot.slane %v3408_v18, 4 }
 0x27a   : > { %v3531_v32 = vsel %vm9207_vm8, %v3411_v7, %v3530_v3  ;;  %v3233_v54 = vpack.c.bf16 %v3213_v56, %v3213_v56 }
 0x27b   : > { %3532 = vst [vmem:[#allocation2 + $0x60] sm:$0xf] %v3531_v32  ;;  %v3147_v27 = vpop.f32.mrf.mxu0 }
 0x27c   : > { %v3414_v0 = vshrl.u32 %v3233_v54, 16  ;;  %v3170_v24 = vadd.f32 %v3147_v27, %v2876_v58  ;;  %v3417_v40 = vshll.u32 %v3233_v54, 16 }
 0x27e   : > { %v3416_v34 = vrot.slane %v3414_v0, 7  ;;  %v3194_v15 = vadd.f32 %v9174_v47, %v3170_v24 }
 0x280   : > { %v3419_v45 = vor.u32 %v3417_v40, %v3416_v34  ;;  %v3421_v11 = vrot.slane %v3416_v34, 4  ;;  %v3214_v33 = vmax.f32 %v3194_v15, 0.0 }
 0x282   : > { %v3420_v42 = vsel %vm9221_vm12, %v3412_v6, %v3419_v45  ;;  %v3535_v50 = vsel %vm9226_vm13, %v3421_v11, %v3534_v9  ;;  %v3234_v41 = vpack.c.bf16 %v3214_v33, %v3214_v33 }
 0x283   : > { %3533 = vst [vmem:[#allocation2 + $0x64] sm:$0xf] %v3420_v42  ;;  %v3149_v57 = vpop.f32.mrf.mxu0 }
 0x284   : > { %3536 = vst [vmem:[#allocation2 + $0x68] sm:$0x1] %v3535_v50  ;;  %v3423_v30 = vshrl.u32 %v3234_v41, 16  ;;  %v3171_v16 = vadd.f32 %v3149_v57, %v2877_v8  ;;  %v3426_v37 = vshll.u32 %v3234_v41, 16 }
 0x286   : > { %v3425_v61 = vrot.slane %v3423_v30, 7  ;;  %v3195_v60 = vadd.f32 %v9174_v47, %v3171_v16 }
 0x288   : > { %v3428_v36 = vor.u32 %v3426_v37, %v3425_v61  ;;  %v3215_v1 = vmax.f32 %v3195_v60, 0.0  ;;  %v3429_v49 = vrot.slane %v3425_v61, 4 }
 0x28a   : > { %v3538_v55 = vsel %vm9207_vm8, %v3428_v36, %v3537_v2  ;;  %v3235_v14 = vpack.c.bf16 %v3215_v1, %v3215_v1 }
 0x28b   : > { %3539 = vst [vmem:[#allocation2 + $0x6c] sm:$0xf] %v3538_v55 }
 0x28c   : > { %v3431_v29 = vshrl.u32 %v3235_v14, 16  ;;  %v3434_v53 = vshll.u32 %v3235_v14, 16 }
 0x28e   : > { %v3433_v26 = vrot.slane %v3431_v29, 7 }
 0x290   : > { %v3436_v52 = vor.u32 %v3434_v53, %v3433_v26  ;;  %v3438_v21 = vrot.slane %v3433_v26, 4  ;;  %3547 = sbr.rel (%p7198_p8) target bundleno = 665 (0x299), region = 52 }
 0x292   : > { %v3437_v5 = vsel %vm9221_vm12, %v3429_v49, %v3436_v52  ;;  %v3542_v47 = vsel %vm9226_vm13, %v3438_v21, %v3541_v19 }
 0x293   : > { %3540 = vst [vmem:[#allocation2 + $0x70] sm:$0xf] %v3437_v5 }
 0x294   : > { %3543 = vst [vmem:[#allocation2 + $0x74] sm:$0x1] %v3542_v47 }
 0x295   : > { %v8122_v10 = vmov 0  }
 0x296   : > { %3548 = vst [vmem:[#allocation2] sm:$0xf] %v8122_v10 }
 0x297   : > { %3549 = vst [vmem:[#allocation2 + $0x4] sm:$0xf] %v8122_v10 }
 0x298   : > { %3550 = vst [vmem:[#allocation2 + $0x8] sm:$0x1] %v8122_v10 }
 0x299 PF: > { %p7199_p9 = scmp.ne.s32.totalorder %s8103_s24, 1 }
 0x29b   : > { %3554 = sbr.rel (%p7199_p9) target bundleno = 676 (0x2a4), region = 56 }
 0x2a0   : > { %v8123_v62 = vmov 0  }
 0x2a1   : > { %3556 = vst [vmem:[#allocation2 + $0x6c] sm:$0xf] %v8123_v62 }
 0x2a2   : > { %3557 = vst [vmem:[#allocation2 + $0x70] sm:$0xf] %v8123_v62 }
 0x2a3   : > { %3558 = vst [vmem:[#allocation2 + $0x74] sm:$0x1] %v8123_v62 }
 0x2a4 PF: > { %v7919_v20 = vld [vmem:[%s10314_s3 + $0x78] sm:$0xff]  ;;  %v7918_v35 = vld [vmem:[%s10314_s3 + $0x70] sm:$0xff]  ;;  %v7917_v51 = vld [vmem:[%s10314_s3 + $0x68] sm:$0xff] }
 0x2a5   : > { %v7911_v38 = vld [vmem:[%s10314_s3 + $0x38] sm:$0xff]  ;;  %3888 = vmatpush.bf16.msra.mxu1 %v7919_v20  ;;  %v7910_v4 = vld [vmem:[%s10314_s3 + $0x30] sm:$0xff]  ;;  %v7909_v12 = vld [vmem:[%s10314_s3 + $0x28] sm:$0xff] }
 0x2a6   : > { %v7927_v31 = vld [vmem:[%s10314_s3 + $0xb8] sm:$0xff]  ;;  %4033 = vmatpush.bf16.msra.mxu2 %v7911_v38  ;;  %v7926_v13 = vld [vmem:[%s10314_s3 + $0xb0] sm:$0xff]  ;;  %v7925_v59 = vld [vmem:[%s10314_s3 + $0xa8] sm:$0xff] }
 0x2a7   : > { %v7975_v63 = vld [vmem:[%s10314_s3 + $0x1b8] sm:$0xff]  ;;  %4259 = vmatpush.bf16.msra.mxu3 %v7927_v31  ;;  %v7974_v17 = vld [vmem:[%s10314_s3 + $0x1b0] sm:$0xff]  ;;  %v7973_v18 = vld [vmem:[%s10314_s3 + $0x1a8] sm:$0xff] }
 0x2a8   : > { %5277 = vmatpush.bf16.msrb.mxu0 %v7975_v63  ;;  %v7916_v22 = vld [vmem:[%s10314_s3 + $0x60] sm:$0xff]  ;;  %v3591_v58 = vld [vmem:[#allocation2 + $0x8] sm:$0x1]  ;;  %v7915_v28 = vld [vmem:[%s10314_s3 + $0x58] sm:$0xff] }
 0x2a9   : > { %3889 = vmatpush.bf16.msra.mxu1 %v7918_v35  ;;  %v7908_v23 = vld [vmem:[%s10314_s3 + $0x20] sm:$0xff]  ;;  %v7907_v34 = vld [vmem:[%s10314_s3 + $0x18] sm:$0xff]  ;;  %v3619_v25 = vshll.u32 %v3591_v58, 16  ;;  %v7914_v8 = vld [vmem:[%s10314_s3 + $0x50] sm:$0xff]  ;;  %v4111_v41 = vrot.slane %v3591_v58, 5 }
 0x2aa   : > { %4034 = vmatpush.bf16.msra.mxu2 %v7910_v4  ;;  %v7924_v3 = vld [vmem:[%s10314_s3 + $0xa0] sm:$0xff]  ;;  %v7923_v6 = vld [vmem:[%s10314_s3 + $0x98] sm:$0xff]  ;;  %v7906_v57 = vld [vmem:[%s10314_s3 + $0x10] sm:$0xff] }
 0x2ab   : > { %4260 = vmatpush.bf16.msra.mxu3 %v7926_v13  ;;  %v7972_v7 = vld [vmem:[%s10314_s3 + $0x1a0] sm:$0xff]  ;;  %v7971_v45 = vld [vmem:[%s10314_s3 + $0x198] sm:$0xff]  ;;  %v3621_v61 = vrot.slane %v3619_v25, 5  ;;  %v3561_v37 = vld [vmem:[#allocation2 + $0xc] sm:$0xf] }
 0x2ac   : > { %5278 = vmatpush.bf16.msrb.mxu0 %v7974_v17  ;;  %v3559_v56 = vld [vmem:[#allocation2] sm:$0xf]  ;;  %v3560_v44 = vld [vmem:[#allocation2 + $0x4] sm:$0xf]  ;;  %v7922_v60 = vld [vmem:[%s10314_s3 + $0x90] sm:$0xff]  ;;  %v3624_v14 = vshrl.u32 %v3561_v37, 16 }
 0x2ad   : > { %3890 = vmatpush.bf16.msra.mxu1 %v7917_v51  ;;  %v3600_v32 = vshrl.u32 %v3559_v56, 16  ;;  %v3603_v54 = vshll.u32 %v3559_v56, 16  ;;  %v3609_v48 = vshll.u32 %v3560_v44, 16  ;;  %v3613_v27 = vshrl.u32 %v3560_v44, 16  ;;  %v4082_v9 = vld [vmem:[#allocation2] sm:$0xe] }
 0x2ae   : > { %4035 = vmatpush.bf16.msra.mxu2 %v7909_v12  ;;  %v4108_v39 = vrot.slane %v3560_v44, 5  ;;  %v7312_v42 = vrot.slane %v4082_v9, 9  ;;  %v7970_v2 = vld [vmem:[%s10314_s3 + $0x190] sm:$0xff]  ;;  %v3627_v29 = vshll.u32 %v3561_v37, 16  ;;  %v7913_v26 = vld [vmem:[%s10314_s3 + $0x48] sm:$0xff]  ;;  %v7912_v31 = vld [vmem:[%s10314_s3 + $0x40] sm:$0xff] }
 0x2af   : > { %4261 = vmatpush.bf16.msra.mxu3 %v7925_v59  ;;  %v3602_v0 = vrot.slane %v3600_v32, 4  ;;  %v3605_v24 = vrot.slane %v3603_v54, 5  ;;  %v3611_v40 = vrot.slane %v3609_v48, 5  ;;  %v3615_v15 = vrot.slane %v3613_v27, 4  ;;  %v9414_v36 = vld [vmem:[#allocation2 + $0x10] sm:$0xf] }
 0x2b0   : > { %5279 = vmatpush.bf16.msrb.mxu0 %v7973_v18  ;;  %v4110_v50 = vrot.slane %v4108_v39, 4  ;;  %v4109_v1 = vsel %vm8283_vm4, %v7312_v42, %v4108_v39  ;;  %v7905_v53 = vld [vmem:[%s10314_s3 + $0x8] sm:$0xff]  ;;  %v3633_v52 = vshll.u32 %v9414_v36, 16  ;;  %v3637_v21 = vshrl.u32 %v9414_v36, 16  ;;  %v7904_v63 = vld [vmem:[%s10314_s3] sm:$0xff]  ;;  %v7951_v18 = vld [vmem:[%s10314_s3 + $0x138] sm:$0xff] }
 0x2b1   : > { %3891 = vmatpush.bf16.msra.mxu1 %v7916_v22  ;;  %v3606_v11 = vor.u32 %v3605_v24, %v3602_v0  ;;  %v3616_v33 = vor.u32 %v3615_v15, %v3611_v40  ;;  %v7921_v5 = vld [vmem:[%s10314_s3 + $0x88] sm:$0xff]  ;;  %v4179_v20 = vunpack.c.l.b16 %v4109_v1  ;;  %v3626_v35 = vrot.slane %v3624_v14, 4  ;;  %v7920_v51 = vld [vmem:[%s10314_s3 + $0x80] sm:$0xff]  ;;  %v3592_v59 = vld [vmem:[#allocation2 + $0x14] sm:$0x1] }
 0x2b2   : > { %4036 = vmatpush.bf16.msra.mxu2 %v7908_v23  ;;  %v4112_v55 = vsel %vm8283_vm4, %v4110_v50, %v4111_v41  ;;  %v7969_v47 = vld [vmem:[%s10314_s3 + $0x188] sm:$0xff]  ;;  %v3629_v4 = vrot.slane %v3627_v29, 5  ;;  %v3635_v13 = vrot.slane %v3633_v52, 5  ;;  %v3639_v17 = vrot.slane %v3637_v21, 4  ;;  %v7968_v12 = vld [vmem:[%s10314_s3 + $0x180] sm:$0xff]  ;;  %v7943_v22 = vld [vmem:[%s10314_s3 + $0xf8] sm:$0xff] }
 0x2b3   : > { %4262 = vmatpush.bf16.msra.mxu3 %v7924_v3  ;;  %v3607_v30 = vrot.slane %v3606_v11, 4  ;;  %v3617_v16 = vrot.slane %v3616_v33, 4  ;;  %v4180_v38 = vunpack.c.l.b16 %v4112_v55  ;;  %v7896_v3 = vld [vmem:[#allocation2] sm:$0xff]  ;;  %v7960_v56 = vld [vmem:[#allocation2 + $0x18] sm:$0xff]  ;;  %v3643_v32 = vshll.u32 %v3592_v59, 16  ;;  %v7942_v0 = vld [vmem:[%s10314_s3 + $0xf0] sm:$0xff] }
 0x2b4   : > { %5280 = vmatpush.bf16.msrb.mxu0 %v7972_v7  ;;  %v3630_v44 = vor.u32 %v3629_v4, %v3626_v35  ;;  %v3640_v58 = vor.u32 %v3639_v17, %v3635_v13  ;;  %v7959_v54 = vld [vmem:[%s10314_s3 + $0x178] sm:$0xff]  ;;  %v4083_v48 = vld [vmem:[#allocation2 + $0xc] sm:$0xe]  ;;  %v4115_v27 = vrot.slane %v9414_v36, 5  ;;  %v7961_v21 = vld [vmem:[#allocation2 + $0x24] sm:$0xff] }
 0x2b5   : > { %3892 = vmatpush.bf16.msra.mxu1 %v7915_v28  ;;  %v3612_v19 = vsel %vm8293_vm5, %v3607_v30, %v3611_v40  ;;  %v3622_v49 = vsel %vm8293_vm5, %v3617_v16, %v3621_v61  ;;  %v4195_v7 = vpack.c.b16 %v4180_v38, %v4179_v20  ;;  %v7950_v28 = vld [vmem:[%s10314_s3 + $0x130] sm:$0xff]  ;;  %v3563_v24 = vld [vmem:[#allocation2 + $0x18] sm:$0xf]  ;;  %v3645_v40 = vrot.slane %v3643_v32, 5  ;;  %v9466_v25 = vld [vmem:[#allocation2 + $0x1c] sm:$0xf] }
 0x2b6   : > { %4037 = vmatpush.bf16.msra.mxu2 %v7907_v34  ;;  %v3808_v10 = vunpack.c.l.b16 %v3612_v19  ;;  %v3809_v62 = vunpack.c.l.b16 %v3622_v49  ;;  %v3631_v39 = vrot.slane %v3630_v44, 4  ;;  %v3641_v34 = vrot.slane %v3640_v58, 4  ;;  %v7949_v11 = vld [vmem:[%s10314_s3 + $0x128] sm:$0xff]  ;;  %v4084_v20 = vld [vmem:[#allocation2 + $0x18] sm:$0xe]  ;;  %v7940_v17 = vld [vmem:[%s10314_s3 + $0xe0] sm:$0xff] }
 0x2b7   : > { %4263 = vmatpush.bf16.msra.mxu3 %v7923_v6  ;;  %v7313_v15 = vrot.slane %v4083_v48, 9  ;;  %v4117_v9 = vrot.slane %v4115_v27, 4  ;;  %v4118_v6 = vrot.slane %v3592_v59, 5  ;;  %v7941_v33 = vld [vmem:[%s10314_s3 + $0xe8] sm:$0xff]  ;;  %v3651_v42 = vshll.u32 %v3563_v24, 16 }
 0x2b8   : > { %5281 = vmatpush.bf16.msrb.mxu0 %v7971_v45  ;;  %v3824_v23 = vpack.c.b16 %v3809_v62, %v3808_v10  ;;  %v7958_v45 = vld [vmem:[%s10314_s3 + $0x170] sm:$0xff]  ;;  %v3657_v50 = vshll.u32 %v9466_v25, 16  ;;  %v3636_v41 = vsel %vm8293_vm5, %v3631_v39, %v3635_v13  ;;  %v3661_v16 = vshrl.u32 %v9466_v25, 16  ;;  %v7957_v37 = vld [vmem:[%s10314_s3 + $0x168] sm:$0xff]  ;;  %v3565_v38 = vld [vmem:[#allocation2 + $0x24] sm:$0xf] }
 0x2b9   : > { %3893 = vmatpush.bf16.msra.mxu1 %v7914_v8  ;;  %v3648_v8 = vshrl.u32 %v3563_v24, 16  ;;  %v4116_v30 = vsel %vm8283_vm4, %v7313_v15, %v4115_v27  ;;  %v4119_v61 = vsel %vm8283_vm4, %v4117_v9, %v4118_v6  ;;  %v3653_v14 = vrot.slane %v3651_v42, 5  ;;  %v7897_v49 = vld [vmem:[#allocation2 + $0xc] sm:$0xff]  ;;  %v7948_v13 = vld [vmem:[%s10314_s3 + $0x120] sm:$0xff]  ;;  %v7898_v6 = vld [vmem:[#allocation2 + $0x18] sm:$0xff] }
 0x2ba   : > { %4038 = vmatpush.bf16.msra.mxu2 %v7906_v57  ;;  %v3646_v57 = vsel %vm8293_vm5, %v3641_v34, %v3645_v40  ;;  %v4181_v36 = vunpack.c.l.b16 %v4116_v30  ;;  %v4182_v55 = vunpack.c.l.b16 %v4119_v61  ;;  %v3659_v29 = vrot.slane %v3657_v50, 5  ;;  %v4085_v42 = vld [vmem:[#allocation2 + $0x24] sm:$0xe] }
 0x2bb   : > { %4264 = vmatpush.bf16.msra.mxu3 %v7922_v60  ;;  %v3810_v60 = vunpack.c.l.b16 %v3636_v41  ;;  %v3650_v1 = vrot.slane %v3648_v8, 4  ;;  %v4122_v62 = vrot.slane %v9466_v25, 5  ;;  %v7962_v8 = vld [vmem:[#allocation2 + $0x30] sm:$0xff]  ;;  %v7315_v30 = vrot.slane %v4085_v42, 9 }
 0x2bc   : > { %5282 = vmatpush.bf16.msrb.mxu0 %v7970_v2  ;;  %v3811_v2 = vunpack.c.l.b16 %v3646_v57  ;;  %v4196_v52 = vpack.c.b16 %v4182_v55, %v4181_v36  ;;  %v3567_v36 = vld [vmem:[#allocation2 + $0x30] sm:$0xf]  ;;  %v9527_v55 = vld [vmem:[%s10314_s3 + $0x1f8] sm:$0xff] }
 0x2bd   : > { %3894 = vmatpush.bf16.msra.mxu1 %v7913_v26  ;;  %v3663_v26 = vrot.slane %v3661_v16, 4  ;;  %v4124_v59 = vrot.slane %v4122_v62, 4 }
 0x2be   : > { %4039 = vmatpush.bf16.msra.mxu2 %v7905_v53  ;;  %v3593_v53 = vld [vmem:[#allocation2 + $0x20] sm:$0x1]  ;;  %v3825_v19 = vpack.c.b16 %v3811_v2, %v3810_v60  ;;  %v7939_v60 = vld [vmem:[%s10314_s3 + $0xd8] sm:$0xff] }
 0x2bf   : > { %4265 = vmatpush.bf16.msra.mxu3 %v7921_v5  ;;  %v3654_v5 = vor.u32 %v3653_v14, %v3650_v1  ;;  %v3667_v10 = vshll.u32 %v3593_v53, 16  ;;  %v7955_v2 = vld [vmem:[%s10314_s3 + $0x158] sm:$0xff]  ;;  %v9522_v1 = vld [vmem:[#allocation2 + $0x34] sm:$0xf] }
 0x2c0   : > { %5283 = vmatpush.bf16.msrb.mxu0 %v7969_v47  ;;  %v3664_v47 = vor.u32 %v3663_v26, %v3659_v29 }
 0x2c1   : > { %3895 = vmatpush.bf16.msra.mxu1 %v7912_v31  ;;  %v9491_v31 = vld [vmem:[#allocation2 + $0x28] sm:$0xf]  ;;  %v3669_v4 = vrot.slane %v3667_v10, 5 }
 0x2c2   : > { %4040 = vmatpush.bf16.msra.mxu2 %v7904_v63  ;;  %v3655_v63 = vrot.slane %v3654_v5, 4  ;;  %v3665_v35 = vrot.slane %v3664_v47, 4  ;;  %v3709_v5 = vshrl.u32 %v9522_v1, 16 }
 0x2c3   : > { %4266 = vmatpush.bf16.msra.mxu3 %v7920_v51  ;;  %v7956_v51 = vld [vmem:[%s10314_s3 + $0x160] sm:$0xff] }
 0x2c4   : > { %5284 = vmatpush.bf16.msrb.mxu0 %v7968_v12  ;;  %3896 = vmatmul.bf16.vlgmr.msra.gmra.mxu1 %v3824_v23  ;;  %v7314_v12 = vrot.slane %v4084_v20, 9  ;;  %v3675_v23 = vshll.u32 %v3565_v38, 16  ;;  %v3670_v44 = vsel %vm8293_vm5, %v3665_v35, %v3669_v4  ;;  %v3711_v4 = vrot.slane %v3709_v5, 4  ;;  %v4087_v5 = vld [vmem:[#allocation2 + $0x3c] sm:$0xe] }
 0x2c5   : > { %4454 = vmatpush.bf16.msrb.mxu1 %v7943_v22  ;;  %4041 = vmatmul.bf16.vlgmr.msra.gmra.mxu2 %v7896_v3  ;;  %v3672_v22 = vshrl.u32 %v3565_v38, 16  ;;  %v3681_v3 = vshll.u32 %v9491_v31, 16  ;;  %v9549_v38 = vld [vmem:[%s10314_s3 + $0x1e8] sm:$0xff] }
 0x2c6   : > { %4832 = vmatpush.bf16.msrb.mxu2 %v7951_v18  ;;  %4267 = vmatmul.bf16.vlgmr.msra.gmra.mxu3 %v4195_v7  ;;  %v4125_v18 = vrot.slane %v3593_v53, 5  ;;  %v3685_v7 = vshrl.u32 %v9491_v31, 16  ;;  %v4123_v58 = vsel %vm8283_vm4, %v7314_v12, %v4122_v62  ;;  %v3677_v48 = vrot.slane %v3675_v23, 5 }
 0x2c7   : > { %5285 = vmatmul.bf16.vlgmr.msrb.gmra.mxu0 %v7960_v56  ;;  %5082 = vmatpush.bf16.msrb.mxu3 %v7959_v54  ;;  %v3660_v56 = vsel %vm8293_vm5, %v3655_v63, %v3659_v29  ;;  %v3674_v54 = vrot.slane %v3672_v22, 4  ;;  %v3683_v24 = vrot.slane %v3681_v3, 5  ;;  %v4183_v34 = vunpack.c.l.b16 %v4123_v58 }
 0x2c8   : > { %v4126_v32 = vsel %vm8283_vm4, %v4124_v59, %v4125_v18  ;;  %v3812_v27 = vunpack.c.l.b16 %v3660_v56  ;;  %v3687_v39 = vrot.slane %v3685_v7, 4  ;;  %5655 = vmatpush.bf16.msra.mxu0 %v9527_v55  ;;  %v7963_v59 = vld [vmem:[#allocation2 + $0x3c] sm:$0xff]  ;;  %v4136_v3 = vrot.slane %v9522_v1, 5  ;;  %v4086_v7 = vld [vmem:[#allocation2 + $0x30] sm:$0xe] }
 0x2c9   : > { %4455 = vmatpush.bf16.msrb.mxu1 %v7942_v0  ;;  %v3594_v0 = vld [vmem:[#allocation2 + $0x2c] sm:$0x1]  ;;  %v4184_v40 = vunpack.c.l.b16 %v4126_v32  ;;  %v3678_v15 = vor.u32 %v3677_v48, %v3674_v54  ;;  %v3569_v56 = vld [vmem:[#allocation2 + $0x3c] sm:$0xf]  ;;  %v7946_v48 = vld [vmem:[%s10314_s3 + $0x110] sm:$0xff] }
 0x2ca   : > { %4833 = vmatpush.bf16.msrb.mxu2 %v7950_v28  ;;  %v3813_v28 = vunpack.c.l.b16 %v3670_v44  ;;  %v3691_v25 = vshll.u32 %v3594_v0, 16  ;;  %v4132_v61 = vrot.slane %v3594_v0, 5  ;;  %v9553_v44 = vld [vmem:[#allocation2 + $0x40] sm:$0xf]  ;;  %v7316_v0 = vrot.slane %v4086_v7, 9 }
 0x2cb   : > { %5083 = vmatpush.bf16.msrb.mxu3 %v7958_v45  ;;  %v3688_v45 = vor.u32 %v3687_v39, %v3683_v24  ;;  %v3679_v50 = vrot.slane %v3678_v15, 4  ;;  %v3723_v15 = vshll.u32 %v3569_v56, 16 }
 0x2cc   : > { %v3826_v9 = vpack.c.b16 %v3813_v28, %v3812_v27  ;;  %v3693_v41 = vrot.slane %v3691_v25, 5  ;;  %v9561_v27 = vld [vmem:[%s10314_s3 + $0x1e0] sm:$0xff]  ;;  %v7938_v28 = vld [vmem:[%s10314_s3 + $0xd0] sm:$0xff]  ;;  %v9573_v25 = vld [vmem:[%s10314_s3 + $0x1d8] sm:$0xff] }
 0x2cd   : > { %4456 = vmatpush.bf16.msrb.mxu1 %v7941_v33  ;;  %v4197_v33 = vpack.c.b16 %v4184_v40, %v4183_v34  ;;  %v3689_v57 = vrot.slane %v3688_v45, 4  ;;  %v3684_v14 = vsel %vm8293_vm5, %v3679_v50, %v3683_v24  ;;  %v4138_v24 = vrot.slane %v4136_v3, 4  ;;  %v7954_v34 = vld [vmem:[%s10314_s3 + $0x150] sm:$0xff] }
 0x2ce   : > { %4834 = vmatpush.bf16.msrb.mxu2 %v7949_v11  ;;  %v4129_v11 = vrot.slane %v9491_v31, 5  ;;  %v3814_v47 = vunpack.c.l.b16 %v3684_v14  ;;  %v3720_v40 = vshrl.u32 %v3569_v56, 16  ;;  %v3725_v50 = vrot.slane %v3723_v15, 5  ;;  %v9595_v14 = vld [vmem:[%s10314_s3 + $0x1c8] sm:$0xff] }
 0x2cf   : > { %5084 = vmatpush.bf16.msrb.mxu3 %v7957_v37  ;;  %v7947_v37 = vld [vmem:[%s10314_s3 + $0x118] sm:$0xff]  ;;  %v3694_v29 = vsel %vm8293_vm5, %v3689_v57, %v3693_v41  ;;  %v9589_v41 = vld [vmem:[%s10314_s3 + $0x1d0] sm:$0xff]  ;;  %v9635_v15 = vld [vmem:[%s10314_s3 + $0x228] sm:$0xff] }
 0x2d0   : > { %v4131_v16 = vrot.slane %v4129_v11, 4  ;;  %v4130_v26 = vsel %vm8283_vm4, %v7315_v30, %v4129_v11  ;;  %v3815_v10 = vunpack.c.l.b16 %v3694_v29  ;;  %v3722_v42 = vrot.slane %v3720_v40, 4 }
 0x2d1   : > { %4457 = vmatpush.bf16.msrb.mxu1 %v7940_v17  ;;  %v4185_v62 = vunpack.c.l.b16 %v4130_v26  ;;  %v7900_v26 = vld [vmem:[#allocation2 + $0x30] sm:$0xff] }
 0x2d2   : > { %4835 = vmatpush.bf16.msrb.mxu2 %v7948_v13  ;;  %v4133_v53 = vsel %vm8283_vm4, %v4131_v16, %v4132_v61  ;;  %v3595_v13 = vld [vmem:[#allocation2 + $0x38] sm:$0x1]  ;;  %v3827_v17 = vpack.c.b16 %v3815_v10, %v3814_v47  ;;  %v3596_v16 = vld [vmem:[#allocation2 + $0x44] sm:$0x1] }
 0x2d3   : > { %5085 = vmatpush.bf16.msrb.mxu3 %v7956_v51  ;;  %v4186_v20 = vunpack.c.l.b16 %v4133_v53  ;;  %v7899_v51 = vld [vmem:[#allocation2 + $0x24] sm:$0xff]  ;;  %v3715_v23 = vshll.u32 %v3595_v13, 16  ;;  %v4139_v39 = vrot.slane %v3595_v13, 5 }
 0x2d4   : > { %3901 = vmatmul.bf16.gmra.mxu1 %v3825_v19  ;;  %v9541_v19 = vld [vmem:[%s10314_s3 + $0x1f0] sm:$0xff]  ;;  %v9605_v13 = vld [vmem:[%s10314_s3 + $0x1c0] sm:$0xff] }
 0x2d5   : > { %4046 = vmatmul.bf16.gmra.mxu2 %v7897_v49  ;;  %4458 = vmatpush.bf16.msrb.mxu1 %v7939_v60  ;;  %v3696_v49 = vshrl.u32 %v3567_v36, 16  ;;  %v4198_v12 = vpack.c.b16 %v4186_v20, %v4185_v62  ;;  %v3717_v54 = vrot.slane %v3715_v23, 5  ;;  %v7317_v20 = vrot.slane %v4087_v5, 9 }
 0x2d6   : > { %4272 = vmatmul.bf16.gmra.mxu3 %v4196_v52  ;;  %4836 = vmatpush.bf16.msrb.mxu2 %v7947_v37  ;;  %v3699_v52 = vshll.u32 %v3567_v36, 16  ;;  %v3726_v36 = vor.u32 %v3725_v50, %v3722_v42 }
 0x2d7   : > { %5290 = vmatmul.bf16.gmra.mxu0 %v7961_v21  ;;  %5086 = vmatpush.bf16.msrb.mxu3 %v7955_v2  ;;  %v3705_v21 = vshll.u32 %v9522_v1, 16  ;;  %v3698_v31 = vrot.slane %v3696_v49, 4  ;;  %v3739_v1 = vshll.u32 %v3596_v16, 16  ;;  %v4143_v49 = vrot.slane %v9553_v44, 5 }
 0x2d8   : > { %5656 = vmatpush.bf16.msra.mxu0 %v9541_v19  ;;  %v3701_v63 = vrot.slane %v3699_v52, 5  ;;  %v3727_v47 = vrot.slane %v3726_v36, 4 }
 0x2d9   : > { %v3707_v35 = vrot.slane %v3705_v21, 5  ;;  %4459 = vmatpush.bf16.msrb.mxu1 %v7938_v28  ;;  %v7964_v21 = vld [vmem:[#allocation2 + $0x48] sm:$0xff]  ;;  %v3741_v10 = vrot.slane %v3739_v1, 5  ;;  %v4144_v23 = vsel %vm8283_vm4, %v7317_v20, %v4143_v49  ;;  %v7944_v1 = vld [vmem:[%s10314_s3 + $0x100] sm:$0xff] }
 0x2da   : > { %v3702_v18 = vor.u32 %v3701_v63, %v3698_v31  ;;  %4837 = vmatpush.bf16.msrb.mxu2 %v7946_v48  ;;  %v4145_v31 = vrot.slane %v4143_v49, 4  ;;  %v4146_v63 = vrot.slane %v3596_v16, 5  ;;  %v4189_v28 = vunpack.c.l.b16 %v4144_v23  ;;  %v9642_v16 = vld [vmem:[%s10314_s3 + $0x220] sm:$0xff] }
 0x2db   : > { %v3712_v22 = vor.u32 %v3711_v4, %v3707_v35  ;;  %5087 = vmatpush.bf16.msrb.mxu3 %v7954_v34  ;;  %v7945_v4 = vld [vmem:[%s10314_s3 + $0x108] sm:$0xff] }
 0x2dc   : > { %5657 = vmatpush.bf16.msra.mxu0 %v9549_v38  ;;  %v3703_v58 = vrot.slane %v3702_v18, 4 }
 0x2dd   : > { %v3713_v32 = vrot.slane %v3712_v22, 4 }
 0x2de   : > { %v3708_v45 = vsel %vm8293_vm5, %v3703_v58, %v3707_v35  ;;  %v3571_v35 = vld [vmem:[#allocation2 + $0x48] sm:$0xf]  ;;  %4838 = vmatpush.bf16.msrb.mxu2 %v7945_v4  ;;  %v9676_v4 = vld [vmem:[%s10314_s3 + $0x210] sm:$0xff] }
 0x2df   : > { %v3718_v11 = vsel %vm8293_vm5, %v3713_v32, %v3717_v54  ;;  %v3816_v57 = vunpack.c.l.b16 %v3708_v45  ;;  %v3744_v7 = vshrl.u32 %v3571_v35, 16  ;;  %v3747_v56 = vshll.u32 %v3571_v35, 16  ;;  %v7990_v32 = vld [vmem:[%s10314_s3 + $0x230] sm:$0xff]  ;;  %v7901_v45 = vld [vmem:[#allocation2 + $0x3c] sm:$0xff] }
 0x2e0   : > { %5658 = vmatpush.bf16.msra.mxu0 %v9561_v27  ;;  %v3817_v30 = vunpack.c.l.b16 %v3718_v11 }
 0x2e2   : > { %v3828_v29 = vpack.c.b16 %v3817_v30, %v3816_v57  ;;  %v4088_v30 = vld [vmem:[#allocation2 + $0x48] sm:$0xe]  ;;  %4839 = vmatpush.bf16.msrb.mxu2 %v7944_v1 }
 0x2e4   : > { %3906 = vmatmul.bf16.gmra.mxu1 %v3826_v9  ;;  %v3729_v9 = vshll.u32 %v9553_v44, 16  ;;  %5659 = vmatpush.bf16.msra.mxu0 %v9573_v25 }
 0x2e5   : > { %4051 = vmatmul.bf16.gmra.mxu2 %v7898_v6  ;;  %v3733_v6 = vshrl.u32 %v9553_v44, 16 }
 0x2e6   : > { %4277 = vmatmul.bf16.gmra.mxu3 %v4197_v33  ;;  %v4137_v33 = vsel %vm8283_vm4, %v7316_v0, %v4136_v3  ;;  %v3731_v61 = vrot.slane %v3729_v9, 5  ;;  %v4147_v3 = vsel %vm8283_vm4, %v4145_v31, %v4146_v63  ;;  %v3597_v9 = vld [vmem:[#allocation2 + $0x50] sm:$0x1] }
 0x2e7   : > { %5295 = vmatmul.bf16.gmra.mxu0 %v7962_v8  ;;  %v4140_v8 = vsel %vm8283_vm4, %v4138_v24, %v4139_v39  ;;  %v3735_v37 = vrot.slane %v3733_v6, 4  ;;  %v4187_v60 = vunpack.c.l.b16 %v4137_v33  ;;  %v4190_v0 = vunpack.c.l.b16 %v4147_v3  ;;  %v7965_v33 = vld [vmem:[#allocation2 + $0x54] sm:$0xff] }
 0x2e8   : > { %v4188_v2 = vunpack.c.l.b16 %v4140_v8  ;;  %5660 = vmatpush.bf16.msra.mxu0 %v9589_v41  ;;  %v3732_v18 = vsel %vm8293_vm5, %v3727_v47, %v3731_v61  ;;  %v3746_v24 = vrot.slane %v3744_v7, 4  ;;  %v3749_v39 = vrot.slane %v3747_v56, 5  ;;  %v9683_v7 = vld [vmem:[%s10314_s3 + $0x208] sm:$0xff] }
 0x2e9   : > { %v3736_v53 = vor.u32 %v3735_v37, %v3731_v61  ;;  %v3818_v54 = vunpack.c.l.b16 %v3732_v18  ;;  %v4200_v11 = vpack.c.b16 %v4190_v0, %v4189_v28  ;;  %v3763_v50 = vshll.u32 %v3597_v9, 16  ;;  %v3573_v61 = vld [vmem:[#allocation2 + $0x54] sm:$0xf]  ;;  %v9644_v37 = vld [vmem:[#allocation2 + $0x58] sm:$0xf]  ;;  %v7966_v0 = vld [vmem:[#allocation2 + $0x60] sm:$0xff] }
 0x2ea   : > { %v4199_v52 = vpack.c.b16 %v4188_v2, %v4187_v60  ;;  %v3750_v8 = vor.u32 %v3749_v39, %v3746_v24  ;;  %v3768_v5 = vshrl.u32 %v3573_v61, 16  ;;  %v3771_v47 = vshll.u32 %v3573_v61, 16  ;;  %v4089_v24 = vld [vmem:[#allocation2 + $0x54] sm:$0xe] }
 0x2eb   : > { %v3737_v62 = vrot.slane %v3736_v53, 4  ;;  %v3765_v36 = vrot.slane %v3763_v50, 5  ;;  %v7318_v53 = vrot.slane %v4088_v30, 9  ;;  %v4157_v28 = vrot.slane %v9644_v37, 5 }
 0x2ec   : > { %5661 = vmatpush.bf16.msra.mxu0 %v9595_v14  ;;  %v3751_v60 = vrot.slane %v3750_v8, 4  ;;  %v9701_v8 = vld [vmem:[#allocation2 + $0x1c] sm:$0xf] }
 0x2ed   : > { %v3742_v22 = vsel %vm8293_vm5, %v3737_v62, %v3741_v10  ;;  %v3777_v10 = vshll.u32 %v9644_v37, 16  ;;  %v3781_v62 = vshrl.u32 %v9644_v37, 16 }
 0x2ee   : > { %v3819_v48 = vunpack.c.l.b16 %v3742_v22 }
 0x2f0   : > { %5662 = vmatpush.bf16.msra.mxu0 %v9605_v13  ;;  %v3829_v6 = vpack.c.b16 %v3819_v48, %v3818_v54  ;;  %v7902_v48 = vld [vmem:[#allocation2 + $0x48] sm:$0xff] }
 0x2f4   : > { %3911 = vmatmul.bf16.gmra.mxu1 %v3827_v17  ;;  %v7937_v17 = vld [vmem:[%s10314_s3 + $0xc8] sm:$0xff] }
 0x2f5   : > { %4056 = vmatmul.bf16.gmra.mxu2 %v7899_v51  ;;  %v9610_v51 = vld [vmem:[#allocation2 + $0x4c] sm:$0xf]  ;;  %4460 = vmatpush.bf16.msrb.mxu1 %v7937_v17  ;;  %v3770_v17 = vrot.slane %v3768_v5, 4 }
 0x2f6   : > { %4282 = vmatmul.bf16.gmra.mxu3 %v4198_v12  ;;  %v7953_v12 = vld [vmem:[%s10314_s3 + $0x148] sm:$0xff]  ;;  %v3753_v44 = vshll.u32 %v9610_v51, 16  ;;  %v3757_v58 = vshrl.u32 %v9610_v51, 16  ;;  %v4150_v57 = vrot.slane %v9610_v51, 5  ;;  %v3773_v51 = vrot.slane %v3771_v47, 5 }
 0x2f7   : > { %5300 = vmatmul.bf16.gmra.mxu0 %v7963_v59  ;;  %v7991_v59 = vld [vmem:[%s10314_s3 + $0x238] sm:$0xff]  ;;  %5088 = vmatpush.bf16.msrb.mxu3 %v7953_v12  ;;  %v3779_v12 = vrot.slane %v3777_v10, 5 }
 0x2f8   : > { %5905 = vmatpush.bf16.msrb.mxu0 %v7991_v59  ;;  %v3755_v34 = vrot.slane %v3753_v44, 5  ;;  %v3759_v40 = vrot.slane %v3757_v58, 4  ;;  %v4152_v49 = vrot.slane %v4150_v57, 4  ;;  %8008 = vmatpush.bf16.msra.mxu2 %v7991_v59  ;;  %v4151_v63 = vsel %vm8283_vm4, %v7318_v53, %v4150_v57 }
 0x2f9   : > { %v3783_v59 = vrot.slane %v3781_v62, 4  ;;  %v4191_v23 = vunpack.c.l.b16 %v4151_v63  ;;  %v3774_v56 = vor.u32 %v3773_v51, %v3770_v17 }
 0x2fa   : > { %v3760_v42 = vor.u32 %v3759_v40, %v3755_v34  ;;  %v3756_v20 = vsel %vm8293_vm5, %v3751_v60, %v3755_v34  ;;  %v9692_v40 = vld [vmem:[%s10314_s3 + $0x200] sm:$0xff] }
 0x2fb   : > { %v3820_v18 = vunpack.c.l.b16 %v3756_v20  ;;  %v3784_v44 = vor.u32 %v3783_v59, %v3779_v12  ;;  %v9732_v20 = vld [vmem:[%s10316_s5 + $0x28] sm:$0xff]  ;;  %v7903_v59 = vld [vmem:[#allocation2 + $0x54] sm:$0xff] }
 0x2fc   : > { %5906 = vmatpush.bf16.msrb.mxu0 %v7990_v32  ;;  %v3761_v2 = vrot.slane %v3760_v42, 4  ;;  %8009 = vmatpush.bf16.msra.mxu2 %v7990_v32 }
 0x2fd   : > { %v3785_v39 = vrot.slane %v3784_v44, 4  ;;  %v4897_v44 = vld [vmem:[#allocation2 + $0xc] sm:$0xe] }
 0x2fe   : > { %v3766_v31 = vsel %vm8293_vm5, %v3761_v2, %v3765_v36  ;;  %v9720_v36 = vld [vmem:[%s10316_s5 + $0x30] sm:$0xff] }
 0x2ff   : > { %v3821_v22 = vunpack.c.l.b16 %v3766_v31  ;;  %v4521_v31 = vld [vmem:[#allocation2 + $0x14] sm:$0x1] }
 0x300   : > { %5907 = vmatpush.bf16.msrb.mxu0 %v9635_v15  ;;  %8010 = vmatpush.bf16.msra.mxu2 %v9635_v15 }
 0x301   : > { %v3830_v54 = vpack.c.b16 %v3821_v22, %v3820_v18  ;;  %v4563_v22 = vshll.u32 %v4521_v31, 16 }
 0x304   : > { %3916 = vmatmul.bf16.gmra.mxu1 %v3828_v29  ;;  %v7936_v29 = vld [vmem:[%s10314_s3 + $0xc0] sm:$0xff]  ;;  %5908 = vmatpush.bf16.msrb.mxu0 %v9642_v16 }
 0x305   : > { %4061 = vmatmul.bf16.gmra.mxu2 %v7900_v26  ;;  %v7952_v26 = vld [vmem:[%s10314_s3 + $0x140] sm:$0xff]  ;;  %4461 = vmatpush.bf16.msrb.mxu1 %v7936_v29 }
 0x306   : > { %4287 = vmatmul.bf16.gmra.mxu3 %v4199_v52  ;;  %v4153_v52 = vrot.slane %v3597_v9, 5  ;;  %v7319_v9 = vrot.slane %v4089_v24, 9  ;;  %8011 = vmatpush.bf16.msra.mxu2 %v9642_v16  ;;  %v5376_v16 = vshll.u32 %v9701_v8, 16  ;;  %v7496_v24 = vrot.slane %v4897_v44, 9 }
 0x307   : > { %5305 = vmatmul.bf16.gmra.mxu0 %v7964_v21  ;;  %v9659_v21 = vld [vmem:[%s10314_s3 + $0x218] sm:$0xff]  ;;  %5089 = vmatpush.bf16.msrb.mxu3 %v7952_v26 }
 0x308   : > { %v4154_v35 = vsel %vm8283_vm4, %v4152_v49, %v4153_v52  ;;  %5909 = vmatpush.bf16.msrb.mxu0 %v9659_v21  ;;  %v4158_v61 = vsel %vm8283_vm4, %v7319_v9, %v4157_v28  ;;  %v9734_v17 = vrot.slane %v5376_v16, 5  ;;  %v4524_v16 = vld [vmem:[#allocation2 + $0x20] sm:$0x1] }
 0x309   : > { %8000 = vmatpush.bf16.msra.mxu1 %v9527_v55  ;;  %v3598_v55 = vld [vmem:[#allocation2 + $0x5c] sm:$0x1]  ;;  %v4192_v3 = vunpack.c.l.b16 %v4154_v35  ;;  %v4193_v5 = vunpack.c.l.b16 %v4158_v61 }
 0x30a   : > { %v3787_v58 = vshll.u32 %v3598_v55, 16  ;;  %v4160_v15 = vrot.slane %v3598_v55, 5  ;;  %8012 = vmatpush.bf16.msra.mxu2 %v9659_v21 }
 0x30b   : > { %v4201_v32 = vpack.c.b16 %v4192_v3, %v4191_v23  ;;  %v9746_v23 = vld [vmem:[%s10316_s5 + $0x20] sm:$0xff] }
 0x30c   : > { %5910 = vmatpush.bf16.msrb.mxu0 %v9676_v4  ;;  %v3789_v34 = vrot.slane %v3787_v58, 5 }
 0x30d   : > { %8001 = vmatpush.bf16.msra.mxu1 %v9541_v19  ;;  %v3775_v19 = vrot.slane %v3774_v56, 4  ;;  %v7967_v56 = vld [vmem:[#allocation2 + $0x6c] sm:$0xff] }
 0x30e   : > { %v3790_v50 = vsel %vm8293_vm5, %v3785_v39, %v3789_v34  ;;  %8013 = vmatpush.bf16.msra.mxu2 %v9676_v4  ;;  %v9758_v39 = vld [vmem:[%s10316_s5 + $0x18] sm:$0xff]  ;;  %v4934_v34 = vrot.slane %v4521_v31, 5  ;;  %v7928_v31 = vld [vmem:[#allocation2 + $0xc] sm:$0xff] }
 0x30f   : > { %v3780_v42 = vsel %vm8293_vm5, %v3775_v19, %v3779_v12  ;;  %v3823_v53 = vunpack.c.l.b16 %v3790_v50  ;;  %v9736_v12 = vld [vmem:[#allocation2 + $0x20] sm:$0x1]  ;;  %v9773_v50 = vld [vmem:[%s10316_s5 + $0x10] sm:$0xff] }
 0x310   : > { %5911 = vmatpush.bf16.msrb.mxu0 %v9683_v7  ;;  %v3822_v26 = vunpack.c.l.b16 %v3780_v42 }
 0x311   : > { %8002 = vmatpush.bf16.msra.mxu1 %v9549_v38  ;;  %v9697_v38 = vld [vmem:[%s10316_s5 + $0x38] sm:$0xff] }
 0x312   : > { %8016 = vmatpush.bf16.msra.mxu3 %v9697_v38  ;;  %v3831_v21 = vpack.c.b16 %v3823_v53, %v3822_v26  ;;  %8014 = vmatpush.bf16.msra.mxu2 %v9683_v7 }
 0x314   : > { %3921 = vmatmul.bf16.gmra.mxu1 %v3829_v6  ;;  %v4159_v6 = vrot.slane %v4157_v28, 4  ;;  %5912 = vmatpush.bf16.msrb.mxu0 %v9692_v40  ;;  %v9751_v28 = vld [vmem:[#allocation2 + $0x1c] sm:$0xf] }
 0x315   : > { %4066 = vmatmul.bf16.gmra.mxu2 %v7901_v45  ;;  %v4519_v45 = vld [vmem:[#allocation2 + $0xc] sm:$0xf]  ;;  %8003 = vmatpush.bf16.msra.mxu1 %v9561_v27  ;;  %v5380_v27 = vshrl.u32 %v9701_v8, 16 }
 0x316   : > { %4292 = vmatmul.bf16.gmra.mxu3 %v4200_v11  ;;  %v9699_v11 = vld [vmem:[#allocation2 + $0x10] sm:$0xf]  ;;  %v4544_v57 = vshrl.u32 %v4519_v45, 16  ;;  %v4547_v30 = vshll.u32 %v4519_v45, 16  ;;  %v4161_v37 = vsel %vm8283_vm4, %v4159_v6, %v4160_v15  ;;  %8015 = vmatpush.bf16.msra.mxu2 %v9692_v40 }
 0x317   : > { %5310 = vmatmul.bf16.gmra.mxu0 %v7965_v33  ;;  %v5342_v33 = vld [vmem:[#allocation2 + $0x18] sm:$0xf]  ;;  %v4553_v60 = vshll.u32 %v9699_v11, 16  ;;  %v4557_v2 = vshrl.u32 %v9699_v11, 16  ;;  %8017 = vmatpush.bf16.msra.mxu3 %v9720_v36  ;;  %v4194_v47 = vunpack.c.l.b16 %v4161_v37  ;;  %v5382_v51 = vrot.slane %v5380_v27, 4  ;;  %v9790_v27 = vld [vmem:[%s10316_s5 + $0x8] sm:$0xff] }
 0x318   : > { %v5367_v1 = vshrl.u32 %v5342_v33, 16  ;;  %v5370_v29 = vshll.u32 %v5342_v33, 16  ;;  %v4546_v49 = vrot.slane %v4544_v57, 4  ;;  %v4549_v52 = vrot.slane %v4547_v30, 5 }
 0x319   : > { %8004 = vmatpush.bf16.msra.mxu1 %v9573_v25  ;;  %v9727_v10 = vrot.slane %v4553_v60, 5  ;;  %v4559_v62 = vrot.slane %v4557_v2, 4  ;;  %v4931_v55 = vrot.slane %v9699_v11, 5  ;;  %v4202_v3 = vpack.c.b16 %v4194_v47, %v4193_v5 }
 0x31a   : > { %v5369_v63 = vrot.slane %v5367_v1, 4  ;;  %v5372_v35 = vrot.slane %v5370_v29, 5  ;;  %v4550_v25 = vor.u32 %v4549_v52, %v4546_v49  ;;  %v5383_v4 = vor.u32 %v5382_v51, %v9734_v17 }
 0x31b   : > { %8018 = vmatpush.bf16.msra.mxu3 %v9732_v20  ;;  %v4560_v18 = vor.u32 %v4559_v62, %v9727_v10  ;;  %v4933_v19 = vrot.slane %v4931_v55, 4  ;;  %v4581_v11 = vshrl.u32 %v9751_v28, 16  ;;  %v4932_v57 = vsel %vm8283_vm4, %v7496_v24, %v4931_v55 }
 0x31c   : > { %v5373_v58 = vor.u32 %v5372_v35, %v5369_v63  ;;  %v5384_v6 = vrot.slane %v5383_v4, 4  ;;  %v5002_v26 = vunpack.c.l.b16 %v4932_v57  ;;  %v4938_v62 = vrot.slane %v9751_v28, 5  ;;  %v4898_v35 = vld [vmem:[#allocation2 + $0x18] sm:$0xe] }
 0x31d   : > { %8005 = vmatpush.bf16.msra.mxu1 %v9589_v41  ;;  %v5386_v41 = vshll.u32 %v9736_v12, 16  ;;  %v4935_v40 = vsel %vm8283_vm4, %v4933_v19, %v4934_v34  ;;  %v4583_v2 = vrot.slane %v4581_v11, 4  ;;  %v7497_v44 = vrot.slane %v4898_v35, 9  ;;  %v7738_v35 = vld [vmem:[%s8244_s18 + $0x20] sm:$0x1] }
 0x31e   : > { %v5374_v9 = vrot.slane %v5373_v58, 4  ;;  %v5003_v53 = vunpack.c.l.b16 %v4935_v40  ;;  %v4940_v58 = vrot.slane %v4938_v62, 4  ;;  %v4941_v4 = vrot.slane %v4524_v16, 5 }
 0x31f   : > { %8019 = vmatpush.bf16.msra.mxu3 %v9746_v23  ;;  %v5388_v15 = vrot.slane %v5386_v41, 5  ;;  %v4939_v34 = vsel %vm8283_vm4, %v7497_v44, %v4938_v62 }
 0x321   : > { %8006 = vmatpush.bf16.msra.mxu1 %v9595_v14  ;;  %v4577_v14 = vshll.u32 %v9751_v28, 16  ;;  %v5389_v30 = vsel %vm8293_vm5, %v5384_v6, %v5388_v15  ;;  %v9806_v28 = vld [vmem:[#allocation2 + $0x28] sm:$0xf] }
 0x322   : > { %v5576_v52 = vunpack.c.l.b16 %v5389_v30 }
 0x323   : > { %8020 = vmatpush.bf16.msra.mxu3 %v9758_v39  ;;  %v9784_v60 = vrot.slane %v4577_v14, 5 }
 0x324   : > { %3926 = vmatmul.bf16.gmra.mxu1 %v3830_v54  ;;  %v4551_v54 = vrot.slane %v4550_v25, 4  ;;  %v5018_v25 = vpack.c.b16 %v5003_v53, %v5002_v26 }
 0x325   : > { %4071 = vmatmul.bf16.gmra.mxu2 %v7902_v48  ;;  %v4522_v48 = vld [vmem:[#allocation2 + $0x18] sm:$0xf]  ;;  %8007 = vmatpush.bf16.msra.mxu1 %v9605_v13  ;;  %v5379_v13 = vsel %vm8293_vm5, %v5374_v9, %v9734_v17  ;;  %v4584_v47 = vor.u32 %v4583_v2, %v9784_v60  ;;  %v9798_v17 = vld [vmem:[%s10316_s5] sm:$0xff]  ;;  %v7737_v9 = vld [vmem:[%s8244_s18 + $0x1c] sm:$0xf] }
 0x326   : > { %4297 = vmatmul.bf16.gmra.mxu3 %v4201_v32  ;;  %v4561_v32 = vrot.slane %v4560_v18, 4  ;;  %v4568_v7 = vshrl.u32 %v4522_v48, 16  ;;  %v4571_v45 = vshll.u32 %v4522_v48, 16  ;;  %v4556_v33 = vsel %vm8293_vm5, %v4551_v54, %v9727_v10  ;;  %v4525_v48 = vld [vmem:[#allocation2 + $0x24] sm:$0xf] }
 0x327   : > { %5315 = vmatmul.bf16.gmra.mxu0 %v7966_v0  ;;  %v4565_v0 = vrot.slane %v4563_v22, 5  ;;  %8021 = vmatpush.bf16.msra.mxu3 %v9773_v50  ;;  %v4752_v1 = vunpack.c.l.b16 %v4556_v33  ;;  %v5575_v49 = vunpack.c.l.b16 %v5379_v13  ;;  %v4587_v10 = vshll.u32 %v4524_v16, 16 }
 0x328   : > { %v4570_v61 = vrot.slane %v4568_v7, 4  ;;  %v4573_v37 = vrot.slane %v4571_v45, 5  ;;  %v5754_v18 = vrot.slane %v9701_v8, 5  ;;  %v5757_v54 = vrot.slane %v9736_v12, 5 }
 0x329   : > { %v4566_v42 = vsel %vm8293_vm5, %v4561_v32, %v4565_v0  ;;  %v7736_v32 = vld [vmem:[%s8244_s18 + $0x18] sm:$0xf]  ;;  %v4942_v12 = vsel %vm8283_vm4, %v4940_v58, %v4941_v4  ;;  %v4592_v7 = vshrl.u32 %v4525_v48, 16  ;;  %v4595_v45 = vshll.u32 %v4525_v48, 16 }
 0x32a   : > { %v4753_v29 = vunpack.c.l.b16 %v4566_v42  ;;  %v4574_v5 = vor.u32 %v4573_v37, %v4570_v61  ;;  %v5756_v8 = vrot.slane %v5754_v18, 4  ;;  %v4601_v33 = vshll.u32 %v9806_v28, 16 }
 0x32b   : > { %8022 = vmatpush.bf16.msra.mxu3 %v9790_v27  ;;  %v4605_v42 = vshrl.u32 %v9806_v28, 16  ;;  %v6031_v57 = vshrl.u32 %v7736_v32, 16  ;;  %v6034_v30 = vshll.u32 %v7736_v32, 16  ;;  %v6040_v61 = vshll.u32 %v7737_v9, 16 }
 0x32c   : > { %v4768_v63 = vpack.c.b16 %v4753_v29, %v4752_v1  ;;  %v4575_v55 = vrot.slane %v4574_v5, 4  ;;  %v5758_v11 = vsel %vm8283_vm4, %v5756_v8, %v5757_v54  ;;  %v6044_v37 = vshrl.u32 %v7737_v9, 16  ;;  %v4899_v54 = vld [vmem:[#allocation2 + $0x24] sm:$0xe]  ;;  %v9844_v9 = vld [vmem:[#allocation2 + $0x34] sm:$0xf] }
 0x32d   : > { %v5004_v1 = vunpack.c.l.b16 %v4939_v34  ;;  %v5005_v29 = vunpack.c.l.b16 %v4942_v12  ;;  %v4594_v16 = vrot.slane %v4592_v7, 4  ;;  %v4597_v26 = vrot.slane %v4595_v45, 5 }
 0x32e   : > { %v4580_v24 = vsel %vm8293_vm5, %v4575_v55, %v9784_v60  ;;  %v4607_v5 = vrot.slane %v4605_v42, 4  ;;  %v9833_v62 = vrot.slane %v6040_v61, 5  ;;  %v6050_v32 = vshll.u32 %v7738_v35, 16 }
 0x32f   : > { %8023 = vmatpush.bf16.msra.mxu3 %v9798_v17  ;;  %v4754_v60 = vunpack.c.l.b16 %v4580_v24  ;;  %v4598_v55 = vor.u32 %v4597_v26, %v4594_v16  ;;  %v4528_v24 = vld [vmem:[#allocation2 + $0x30] sm:$0xf]  ;;  %v4625_v42 = vshll.u32 %v9844_v9, 16 }
 0x330   : > { %v4616_v45 = vshrl.u32 %v4528_v24, 16 }
 0x332   : > { %v4618_v26 = vrot.slane %v4616_v45, 4 }
 0x334   : > { %3931 = vmatmul.bf16.gmra.mxu1 %v3831_v21  ;;  %v5591_v21 = vpack.c.b16 %v5576_v52, %v5575_v49  ;;  %v5826_v49 = vunpack.c.l.b16 %v5758_v11  ;;  %v9830_v52 = vrot.slane %v4601_v33, 5 }
 0x335   : > { %4076 = vmatmul.bf16.gmra.mxu2 %v7903_v59  ;;  %v5720_v59 = vld [vmem:[#allocation2 + $0x18] sm:$0xe] }
 0x336   : > { %4302 = vmatmul.bf16.gmra.mxu3 %v4202_v3  ;;  %v4585_v3 = vrot.slane %v4584_v47, 4  ;;  %v7680_v41 = vrot.slane %v5720_v59, 9  ;;  %v4527_v47 = vld [vmem:[#allocation2 + $0x2c] sm:$0x1]  ;;  %v4608_v44 = vor.u32 %v4607_v5, %v9830_v52  ;;  %v4530_v5 = vld [vmem:[#allocation2 + $0x38] sm:$0x1] }
 0x337   : > { %5320 = vmatmul.bf16.gmra.mxu0 %v7967_v56  ;;  %v4589_v56 = vrot.slane %v4587_v10, 5  ;;  %v6033_v10 = vrot.slane %v6031_v57, 4  ;;  %v4611_v58 = vshll.u32 %v4527_v47, 16  ;;  %v4629_v57 = vshrl.u32 %v9844_v9, 16 }
 0x338   : > { %v5755_v15 = vsel %vm8283_vm4, %v7680_v41, %v5754_v18  ;;  %v5019_v18 = vpack.c.b16 %v5005_v29, %v5004_v1 }
 0x339   : > { %v4590_v19 = vsel %vm8293_vm5, %v4585_v3, %v4589_v56  ;;  %v5825_v53 = vunpack.c.l.b16 %v5755_v15  ;;  %v4613_v34 = vrot.slane %v4611_v58, 5  ;;  %v6052_v15 = vrot.slane %v6050_v32, 5 }
 0x33a   : > { %v4755_v2 = vunpack.c.l.b16 %v4590_v19  ;;  %v4609_v19 = vrot.slane %v4608_v44, 4 }
 0x33b   : > { %v5841_v56 = vpack.c.b16 %v5826_v49, %v5825_v53 }
 0x33c   : > { %v4769_v59 = vpack.c.b16 %v4755_v2, %v4754_v60 }
 0x341   : > { %v3897_v51 = vpop.f32.mrf.mxu1 }
 0x344   : > { %v9801_v22 = vpop.f32.mrf.mxu0  ;;  %4462 = vmatmul.bf16.vlgmr.msrb.gmra.mxu1 %v7928_v31  ;;  %v6046_v31 = vrot.slane %v6044_v37, 4 }
 0x345   : > { %4840 = vmatmul.bf16.vlgmr.msrb.gmra.mxu2 %v4768_v63 }
 0x346   : > { %5090 = vmatmul.bf16.vlgmr.msrb.gmra.mxu3 %v5018_v25  ;;  %v6047_v48 = vor.u32 %v6046_v31, %v9833_v62 }
 0x347   : > { %5663 = vmatmul.bf16.vlgmr.msra.gmra.mxu0 %v5591_v21  ;;  %v7929_v21 = vld [vmem:[#allocation2 + $0x18] sm:$0xff] }
 0x348   : > { %6322 = vmatpush.bf16.msra.mxu0 %v9697_v38  ;;  %v4042_v0 = vpop.f32.mrf.mxu2 }
 0x349   : > { %v4043_v6 = vadd.f32 %v4042_v0, %v3897_v51  ;;  %v4268_v38 = vpop.f32.mrf.mxu3  ;;  %v3899_v14 = vpop.f32.mrf.mxu1  ;;  %v4599_v0 = vrot.slane %v4598_v55, 4 }
 0x34b   : > { %v9825_v40 = vadd.f32 %v4268_v38, %v4043_v6  ;;  %v6048_v38 = vrot.slane %v6047_v48, 4  ;;  %v4604_v61 = vsel %vm8293_vm5, %v4599_v0, %v9830_v52 }
 0x34c   : > { %v9827_v13 = vpop.f32.mrf.mxu0  ;;  %6323 = vmatpush.bf16.msra.mxu0 %v9720_v36  ;;  %v6036_v36 = vrot.slane %v6034_v30, 5  ;;  %v4756_v49 = vunpack.c.l.b16 %v4604_v61 }
 0x34d   : > { %v6053_v16 = vsel %vm8293_vm5, %v6048_v38, %v6052_v15 }
 0x34e   : > { %v6037_v8 = vor.u32 %v6036_v36, %v6033_v10  ;;  %v4631_v10 = vrot.slane %v4629_v57, 4 }
 0x350   : > { %6324 = vmatpush.bf16.msra.mxu0 %v9732_v20  ;;  %v4044_v63 = vpop.f32.mrf.mxu2  ;;  %v4945_v20 = vrot.slane %v9806_v28, 5  ;;  %v7498_v28 = vrot.slane %v4899_v54, 9  ;;  %v6038_v6 = vrot.slane %v6037_v8, 4 }
 0x351   : > { %v4045_v51 = vadd.f32 %v4044_v63, %v3899_v14  ;;  %v4270_v25 = vpop.f32.mrf.mxu3  ;;  %v3902_v3 = vpop.f32.mrf.mxu1  ;;  %v4619_v14 = vshll.u32 %v4528_v24, 16  ;;  %v6243_v63 = vunpack.c.l.b16 %v6053_v16 }
 0x352   : > { %v4947_v12 = vrot.slane %v4945_v20, 4  ;;  %v4946_v37 = vsel %vm8283_vm4, %v7498_v28, %v4945_v20  ;;  %v6043_v29 = vsel %vm8293_vm5, %v6038_v6, %v9833_v62  ;;  %v4900_v20 = vld [vmem:[#allocation2 + $0x30] sm:$0xe]  ;;  %v9875_v28 = vld [vmem:[#allocation2 + $0x40] sm:$0xf] }
 0x353   : > { %v9838_v4 = vadd.f32 %v4270_v25, %v4045_v51  ;;  %v4621_v53 = vrot.slane %v4619_v14, 5  ;;  %v5006_v36 = vunpack.c.l.b16 %v4946_v37  ;;  %v4635_v25 = vshll.u32 %v4530_v5, 16 }
 0x354   : > { %v9840_v41 = vpop.f32.mrf.mxu0  ;;  %6325 = vmatpush.bf16.msra.mxu0 %v9746_v23  ;;  %4467 = vmatmul.bf16.gmra.mxu1 %v7929_v21  ;;  %v4948_v23 = vrot.slane %v4527_v47, 5  ;;  %v4627_v47 = vrot.slane %v4625_v42, 5  ;;  %v7499_v0 = vrot.slane %v4900_v20, 9 }
 0x355   : > { %4845 = vmatmul.bf16.gmra.mxu2 %v4769_v59  ;;  %v4622_v51 = vor.u32 %v4621_v53, %v4618_v26  ;;  %v7930_v59 = vld [vmem:[#allocation2 + $0x24] sm:$0xff]  ;;  %v4637_v48 = vrot.slane %v4635_v25, 5 }
 0x356   : > { %5095 = vmatmul.bf16.gmra.mxu3 %v5019_v18  ;;  %v4949_v1 = vsel %vm8283_vm4, %v4947_v12, %v4948_v23  ;;  %v4632_v55 = vor.u32 %v4631_v10, %v4627_v47  ;;  %v4533_v53 = vld [vmem:[#allocation2 + $0x44] sm:$0x1] }
 0x357   : > { %5913 = vmatmul.bf16.vlgmr.msrb.gmra.mxu0 %v5841_v56  ;;  %v5007_v31 = vunpack.c.l.b16 %v4949_v1  ;;  %v4962_v20 = vrot.slane %v4533_v53, 5 }
 0x358   : > { %6326 = vmatpush.bf16.msra.mxu0 %v9758_v39  ;;  %v4047_v7 = vpop.f32.mrf.mxu2  ;;  %v4614_v39 = vsel %vm8293_vm5, %v4609_v19, %v4613_v34  ;;  %v4633_v32 = vrot.slane %v4632_v55, 4  ;;  %v4955_v19 = vrot.slane %v4530_v5, 5  ;;  %v4531_v34 = vld [vmem:[#allocation2 + $0x3c] sm:$0xf] }
 0x359   : > { %v4048_v11 = vadd.f32 %v4047_v7, %v3902_v3  ;;  %v4273_v33 = vpop.f32.mrf.mxu3  ;;  %v3904_v30 = vpop.f32.mrf.mxu1  ;;  %v4757_v52 = vunpack.c.l.b16 %v4614_v39  ;;  %v4952_v3 = vrot.slane %v9844_v9, 5  ;;  %v5020_v44 = vpack.c.b16 %v5007_v31, %v5006_v36 }
 0x35a   : > { %v4640_v45 = vshrl.u32 %v4531_v34, 16  ;;  %v4643_v14 = vshll.u32 %v4531_v34, 16 }
 0x35b   : > { %v9856_v60 = vadd.f32 %v4273_v33, %v4048_v11  ;;  %v4770_v18 = vpack.c.b16 %v4757_v52, %v4756_v49  ;;  %v4954_v24 = vrot.slane %v4952_v3, 4  ;;  %v4953_v38 = vsel %vm8283_vm4, %v7499_v0, %v4952_v3 }
 0x35c   : > { %v9858_v2 = vpop.f32.mrf.mxu0  ;;  %6327 = vmatpush.bf16.msra.mxu0 %v9773_v50  ;;  %v6242_v50 = vunpack.c.l.b16 %v6043_v29  ;;  %v4649_v11 = vshll.u32 %v9875_v28, 16  ;;  %v4653_v33 = vshrl.u32 %v9875_v28, 16  ;;  %v5008_v39 = vunpack.c.l.b16 %v4953_v38 }
 0x35d   : > { %v4956_v15 = vsel %vm8283_vm4, %v4954_v24, %v4955_v19  ;;  %v4642_v1 = vrot.slane %v4640_v45, 4  ;;  %v4645_v29 = vrot.slane %v4643_v14, 5 }
 0x35e   : > { %v6258_v58 = vpack.c.b16 %v6243_v63, %v6242_v50  ;;  %v5009_v37 = vunpack.c.l.b16 %v4956_v15  ;;  %v4651_v16 = vrot.slane %v4649_v11, 5  ;;  %v4655_v26 = vrot.slane %v4653_v33, 4  ;;  %v4536_v11 = vld [vmem:[#allocation2 + $0x50] sm:$0x1] }
 0x35f   : > { %v4646_v50 = vor.u32 %v4645_v29, %v4642_v1  ;;  %v4683_v29 = vshll.u32 %v4536_v11, 16 }
 0x360   : > { %6328 = vmatpush.bf16.msra.mxu0 %v9790_v27  ;;  %v4049_v35 = vpop.f32.mrf.mxu2  ;;  %v4623_v27 = vrot.slane %v4622_v51, 4  ;;  %v5021_v31 = vpack.c.b16 %v5009_v37, %v5008_v39  ;;  %v4656_v63 = vor.u32 %v4655_v26, %v4651_v16 }
 0x361   : > { %v4050_v62 = vadd.f32 %v4049_v35, %v3904_v30  ;;  %v4275_v21 = vpop.f32.mrf.mxu3  ;;  %v3907_v56 = vpop.f32.mrf.mxu1  ;;  %v4659_v35 = vshll.u32 %v4533_v53, 16  ;;  %v7932_v53 = vld [vmem:[#allocation2 + $0x3c] sm:$0xff] }
 0x362   : > { %v4628_v9 = vsel %vm8293_vm5, %v4623_v27, %v4627_v47  ;;  %v7931_v47 = vld [vmem:[#allocation2 + $0x30] sm:$0xff]  ;;  %v4657_v55 = vrot.slane %v4656_v63, 4 }
 0x363   : > { %v9870_v54 = vadd.f32 %v4275_v21, %v4050_v62  ;;  %v4758_v30 = vunpack.c.l.b16 %v4628_v9  ;;  %v4959_v62 = vrot.slane %v9875_v28, 5  ;;  %v4901_v21 = vld [vmem:[#allocation2 + $0x3c] sm:$0xe]  ;;  %v4661_v3 = vrot.slane %v4659_v35, 5 }
 0x364   : > { %v9872_v8 = vpop.f32.mrf.mxu0  ;;  %6329 = vmatpush.bf16.msra.mxu0 %v9798_v17  ;;  %4472 = vmatmul.bf16.gmra.mxu1 %v7930_v59  ;;  %v4638_v17 = vsel %vm8293_vm5, %v4633_v32, %v4637_v48  ;;  %v4534_v59 = vld [vmem:[#allocation2 + $0x48] sm:$0xf]  ;;  %v4685_v35 = vrot.slane %v4683_v29, 5 }
 0x365   : > { %4850 = vmatmul.bf16.gmra.mxu2 %v4770_v18  ;;  %v4759_v61 = vunpack.c.l.b16 %v4638_v17  ;;  %v4647_v18 = vrot.slane %v4646_v50, 4  ;;  %v4664_v48 = vshrl.u32 %v4534_v59, 16  ;;  %v4667_v32 = vshll.u32 %v4534_v59, 16 }
 0x366   : > { %5100 = vmatmul.bf16.gmra.mxu3 %v5020_v44  ;;  %v7500_v44 = vrot.slane %v4901_v21, 9  ;;  %v4662_v9 = vsel %vm8293_vm5, %v4657_v55, %v4661_v3  ;;  %v4537_v55 = vld [vmem:[#allocation2 + $0x54] sm:$0xf]  ;;  %v9912_v3 = vld [vmem:[#allocation2 + $0x58] sm:$0xf] }
 0x367   : > { %6330 = vmatmul.bf16.vlgmr.msra.gmra.mxu0 %v6258_v58  ;;  %v4771_v10 = vpack.c.b16 %v4759_v61, %v4758_v30  ;;  %v4961_v58 = vrot.slane %v4959_v62, 4  ;;  %v4666_v15 = vrot.slane %v4664_v48, 4  ;;  %v4761_v14 = vunpack.c.l.b16 %v4662_v9 }
 0x368   : > { %v4052_v12 = vpop.f32.mrf.mxu2  ;;  %v4960_v17 = vsel %vm8283_vm4, %v7500_v44, %v4959_v62 }
 0x369   : > { %v4053_v23 = vadd.f32 %v4052_v12, %v3907_v56  ;;  %v4278_v6 = vpop.f32.mrf.mxu3  ;;  %v3909_v7 = vpop.f32.mrf.mxu1  ;;  %v4535_v56 = vld [vmem:[#allocation2 + $0x4c] sm:$0xf]  ;;  %v4652_v12 = vsel %vm8293_vm5, %v4647_v18, %v4651_v16  ;;  %v4963_v38 = vsel %vm8283_vm4, %v4961_v58, %v4962_v20  ;;  %v5010_v61 = vunpack.c.l.b16 %v4960_v17 }
 0x36a   : > { %v4673_v19 = vshll.u32 %v4535_v56, 16  ;;  %v4677_v34 = vshrl.u32 %v4535_v56, 16  ;;  %v4760_v45 = vunpack.c.l.b16 %v4652_v12  ;;  %v5011_v39 = vunpack.c.l.b16 %v4963_v38 }
 0x36b   : > { %v9887_v42 = vadd.f32 %v4278_v6, %v4053_v23  ;;  %v4969_v18 = vrot.slane %v4536_v11, 5 }
 0x36c   : > { %v9889_v57 = vpop.f32.mrf.mxu0  ;;  %v4675_v33 = vrot.slane %v4673_v19, 5  ;;  %v4679_v30 = vrot.slane %v4677_v34, 4  ;;  %v4691_v19 = vshll.u32 %v4537_v55, 16  ;;  %v4697_v34 = vshll.u32 %v9912_v3, 16 }
 0x36d   : > { %10337 = vst [vmem:[#allocation5_spill] sm:$0xff] %v9889_v57 }
 0x36e   : > { %v4699_v11 = vrot.slane %v4697_v34, 5 }
 0x370   : > { %v4054_v49 = vpop.f32.mrf.mxu2 }
 0x371   : > { %v4055_v52 = vadd.f32 %v4054_v49, %v3909_v7  ;;  %v4280_v5 = vpop.f32.mrf.mxu3  ;;  %v3912_v36 = vpop.f32.mrf.mxu1  ;;  %v4669_v7 = vrot.slane %v4667_v32, 5  ;;  %v4772_v49 = vpack.c.b16 %v4761_v14, %v4760_v45  ;;  %v4693_v14 = vrot.slane %v4691_v19, 5 }
 0x373   : > { %v9891_v51 = vadd.f32 %v4280_v5, %v4055_v52  ;;  %v4670_v1 = vor.u32 %v4669_v7, %v4666_v15  ;;  %v4680_v52 = vor.u32 %v4679_v30, %v4675_v33  ;;  %v4966_v5 = vrot.slane %v4535_v56, 5  ;;  %v4539_v30 = vld [vmem:[#allocation2 + $0x5c] sm:$0x1] }
 0x374   : > { %v9893_v25 = vpop.f32.mrf.mxu0  ;;  %4477 = vmatmul.bf16.gmra.mxu1 %v7931_v47 }
 0x375   : > { %10338 = vst [vmem:[#allocation3_spill] sm:$0xff] %v9893_v25  ;;  %4855 = vmatmul.bf16.gmra.mxu2 %v4771_v10  ;;  %v5022_v10 = vpack.c.b16 %v5011_v39, %v5010_v61  ;;  %v4671_v63 = vrot.slane %v4670_v1, 4  ;;  %v4681_v62 = vrot.slane %v4680_v52, 4  ;;  %v4968_v59 = vrot.slane %v4966_v5, 4  ;;  %v7933_v1 = vld [vmem:[#allocation2 + $0x48] sm:$0xff] }
 0x376   : > { %5105 = vmatmul.bf16.gmra.mxu3 %v5021_v31  ;;  %v4707_v52 = vshll.u32 %v4539_v30, 16 }
 0x377   : > { %v4676_v44 = vsel %vm8293_vm5, %v4671_v63, %v4675_v33  ;;  %v4970_v32 = vsel %vm8283_vm4, %v4968_v59, %v4969_v18 }
 0x378   : > { %v4057_v27 = vpop.f32.mrf.mxu2  ;;  %v4762_v17 = vunpack.c.l.b16 %v4676_v44  ;;  %v5013_v7 = vunpack.c.l.b16 %v4970_v32 }
 0x379   : > { %v4058_v0 = vadd.f32 %v4057_v27, %v3912_v36  ;;  %v4283_v24 = vpop.f32.mrf.mxu3  ;;  %v3914_v28 = vpop.f32.mrf.mxu1  ;;  %v4902_v36 = vld [vmem:[#allocation2 + $0x48] sm:$0xe]  ;;  %v4686_v27 = vsel %vm8293_vm5, %v4681_v62, %v4685_v35  ;;  %v4709_v62 = vrot.slane %v4707_v52, 5 }
 0x37a   : > { %v7501_v21 = vrot.slane %v4902_v36, 9  ;;  %v4763_v38 = vunpack.c.l.b16 %v4686_v27  ;;  %v4903_v36 = vld [vmem:[#allocation2 + $0x54] sm:$0xe] }
 0x37b   : > { %v9900_v23 = vadd.f32 %v4283_v24, %v4058_v0  ;;  %v4688_v24 = vshrl.u32 %v4537_v55, 16  ;;  %v7502_v59 = vrot.slane %v4903_v36, 9  ;;  %v4976_v55 = vrot.slane %v4539_v30, 5  ;;  %v4542_v30 = vld [vmem:[#allocation2 + $0x68] sm:$0x1] }
 0x37c   : > { %v9902_v6 = vpop.f32.mrf.mxu0  ;;  %v4967_v48 = vsel %vm8283_vm4, %v7501_v21, %v4966_v5  ;;  %v4773_v29 = vpack.c.b16 %v4763_v38, %v4762_v17  ;;  %v4540_v21 = vld [vmem:[#allocation2 + $0x60] sm:$0xf] }
 0x37d   : > { %10339 = vst [vmem:[#allocation4_spill] sm:$0xff] %v9902_v6  ;;  %v5012_v15 = vunpack.c.l.b16 %v4967_v48  ;;  %v4690_v45 = vrot.slane %v4688_v24, 4  ;;  %v4712_v27 = vshrl.u32 %v4540_v21, 16  ;;  %v4715_v48 = vshll.u32 %v4540_v21, 16 }
 0x380   : > { %v4059_v37 = vpop.f32.mrf.mxu2 }
 0x381   : > { %v4060_v16 = vadd.f32 %v4059_v37, %v3914_v28  ;;  %v4285_v26 = vpop.f32.mrf.mxu3  ;;  %v3917_v47 = vpop.f32.mrf.mxu1  ;;  %v4701_v28 = vshrl.u32 %v9912_v3, 16 }
 0x383   : > { %v9908_v31 = vadd.f32 %v4285_v26, %v4060_v16  ;;  %v4703_v33 = vrot.slane %v4701_v28, 4  ;;  %v5023_v26 = vpack.c.b16 %v5013_v7, %v5012_v15 }
 0x384   : > { %v9910_v50 = vpop.f32.mrf.mxu0  ;;  %4482 = vmatmul.bf16.gmra.mxu1 %v7932_v53  ;;  %v4694_v53 = vor.u32 %v4693_v14, %v4690_v45  ;;  %v4714_v45 = vrot.slane %v4712_v27, 4  ;;  %v4717_v14 = vrot.slane %v4715_v48, 5 }
 0x385   : > { %10340 = vst [vmem:[#allocation6_spill] sm:$0xff] %v9910_v50  ;;  %4860 = vmatmul.bf16.gmra.mxu2 %v4772_v49  ;;  %v4704_v49 = vor.u32 %v4703_v33, %v4699_v11 }
 0x386   : > { %5110 = vmatmul.bf16.gmra.mxu3 %v5022_v10  ;;  %v4973_v10 = vrot.slane %v9912_v3, 5  ;;  %v4695_v63 = vrot.slane %v4694_v53, 4  ;;  %v4718_v53 = vor.u32 %v4717_v14, %v4714_v45 }
 0x387   : > { %v4705_v35 = vrot.slane %v4704_v49, 4  ;;  %v4731_v49 = vshll.u32 %v4542_v30, 16 }
 0x388   : > { %v4062_v56 = vpop.f32.mrf.mxu2  ;;  %v4975_v18 = vrot.slane %v4973_v10, 4  ;;  %v4700_v3 = vsel %vm8293_vm5, %v4695_v63, %v4699_v11  ;;  %v4974_v17 = vsel %vm8283_vm4, %v7502_v59, %v4973_v10  ;;  %v5345_v59 = vld [vmem:[#allocation2 + $0x24] sm:$0xf] }
 0x389   : > { %v4063_v58 = vadd.f32 %v4062_v56, %v3917_v47  ;;  %v4288_v20 = vpop.f32.mrf.mxu3  ;;  %v3919_v0 = vpop.f32.mrf.mxu1  ;;  %v9933_v56 = vld [vmem:[#allocation2 + $0x64] sm:$0xf]  ;;  %v4764_v15 = vunpack.c.l.b16 %v4700_v3  ;;  %v5014_v11 = vunpack.c.l.b16 %v4974_v17  ;;  %v5394_v3 = vshll.u32 %v5345_v59, 16 }
 0x38a   : > { %v4721_v24 = vshll.u32 %v9933_v56, 16  ;;  %v4725_v19 = vshrl.u32 %v9933_v56, 16  ;;  %v4977_v38 = vsel %vm8283_vm4, %v4975_v18, %v4976_v55  ;;  %v4980_v21 = vrot.slane %v9933_v56, 5  ;;  %v9954_v18 = vld [vmem:[#allocation2 + $0x28] sm:$0xf] }
 0x38b   : > { %v9924_v12 = vadd.f32 %v4288_v20, %v4063_v58  ;;  %v5015_v33 = vunpack.c.l.b16 %v4977_v38  ;;  %v4719_v55 = vrot.slane %v4718_v53, 4  ;;  %v5404_v56 = vshrl.u32 %v9954_v18, 16 }
 0x38c   : > { %v9926_v9 = vpop.f32.mrf.mxu0 }
 0x38d   : > { %10341 = vst [vmem:[#allocation7_spill] sm:$0xff] %v9926_v9  ;;  %v5024_v10 = vpack.c.b16 %v5015_v33, %v5014_v11 }
 0x390   : > { %v4064_v61 = vpop.f32.mrf.mxu2 }
 0x391   : > { %v4065_v39 = vadd.f32 %v4064_v61, %v3919_v0  ;;  %v4290_v37 = vpop.f32.mrf.mxu3  ;;  %v3922_v16 = vpop.f32.mrf.mxu1  ;;  %v4710_v0 = vsel %vm8293_vm5, %v4705_v35, %v4709_v62  ;;  %v4723_v61 = vrot.slane %v4721_v24, 5  ;;  %v4904_v62 = vld [vmem:[#allocation2 + $0x60] sm:$0xe]  ;;  %v4983_v24 = vrot.slane %v4542_v30, 5 }
 0x392   : > { %v4765_v7 = vunpack.c.l.b16 %v4710_v0  ;;  %v7503_v48 = vrot.slane %v4904_v62, 9  ;;  %v4982_v0 = vrot.slane %v4980_v21, 4 }
 0x393   : > { %v9928_v5 = vadd.f32 %v4290_v37, %v4065_v39  ;;  %v4727_v39 = vrot.slane %v4725_v19, 4  ;;  %v5400_v19 = vshll.u32 %v9954_v18, 16  ;;  %v4724_v33 = vsel %vm8293_vm5, %v4719_v55, %v4723_v61 }
 0x394   : > { %v9930_v47 = vpop.f32.mrf.mxu0  ;;  %4487 = vmatmul.bf16.gmra.mxu1 %v7933_v1  ;;  %v4981_v30 = vsel %vm8283_vm4, %v7503_v48, %v4980_v21  ;;  %v4984_v53 = vsel %vm8283_vm4, %v4982_v0, %v4983_v24  ;;  %v4766_v55 = vunpack.c.l.b16 %v4724_v33  ;;  %v5721_v24 = vld [vmem:[#allocation2 + $0x24] sm:$0xe] }
 0x395   : > { %10342 = vst [vmem:[#allocation8_spill] sm:$0xff] %v9930_v47  ;;  %4865 = vmatmul.bf16.gmra.mxu2 %v4773_v29  ;;  %v4728_v36 = vor.u32 %v4727_v39, %v4723_v61  ;;  %v5406_v61 = vrot.slane %v5404_v56, 4 }
 0x396   : > { %5115 = vmatmul.bf16.gmra.mxu3 %v5023_v26  ;;  %v4774_v26 = vpack.c.b16 %v4765_v7, %v4764_v15 }
 0x397   : > { %v4729_v27 = vrot.slane %v4728_v36, 4 }
 0x398   : > { %v4067_v44 = vpop.f32.mrf.mxu2 }
 0x399   : > { %v4068_v58 = vadd.f32 %v4067_v44, %v3922_v16  ;;  %v4293_v20 = vpop.f32.mrf.mxu3  ;;  %v3924_v32 = vpop.f32.mrf.mxu1  ;;  %v7934_v16 = vld [vmem:[#allocation2 + $0x54] sm:$0xff]  ;;  %v4733_v44 = vrot.slane %v4731_v49, 5  ;;  %v5347_v49 = vld [vmem:[#allocation2 + $0x2c] sm:$0x1] }
 0x39a   : > { %v5410_v48 = vshll.u32 %v5347_v49, 16 }
 0x39b   : > { %v9941_v34 = vadd.f32 %v4293_v20, %v4068_v58  ;;  %v7739_v58 = vld [vmem:[%s8244_s18 + $0x24] sm:$0xf]  ;;  %v7740_v20 = vld [vmem:[%s8244_s18 + $0x28] sm:$0xf] }
 0x39c   : > { %v9943_v28 = vpop.f32.mrf.mxu0  ;;  %v6055_v38 = vshrl.u32 %v7739_v58, 16  ;;  %v6058_v15 = vshll.u32 %v7739_v58, 16  ;;  %v6064_v7 = vshll.u32 %v7740_v20, 16  ;;  %v6068_v45 = vshrl.u32 %v7740_v20, 16 }
 0x39d   : > { %10343 = vst [vmem:[#allocation9_spill] sm:$0xff] %v9943_v28  ;;  %v5016_v58 = vunpack.c.l.b16 %v4981_v30  ;;  %v5017_v20 = vunpack.c.l.b16 %v4984_v53  ;;  %v5348_v30 = vld [vmem:[#allocation2 + $0x30] sm:$0xf]  ;;  %v7681_v53 = vrot.slane %v5721_v24, 9 }
 0x39e   : > { %v6060_v36 = vrot.slane %v6058_v15, 5  ;;  %v9974_v62 = vrot.slane %v6064_v7, 5  ;;  %v7935_v7 = vld [vmem:[#allocation2 + $0x60] sm:$0xff] }
 0x3a0   : > { %v4069_v37 = vpop.f32.mrf.mxu2 }
 0x3a1   : > { %v4070_v1 = vadd.f32 %v4069_v37, %v3924_v32  ;;  %v4295_v29 = vpop.f32.mrf.mxu3  ;;  %v3927_v52 = vpop.f32.mrf.mxu1  ;;  %v5391_v32 = vshrl.u32 %v5345_v59, 16  ;;  %v4734_v37 = vsel %vm8293_vm5, %v4729_v27, %v4733_v44  ;;  %v6070_v59 = vrot.slane %v6068_v45, 4  ;;  %v7741_v44 = vld [vmem:[%s8244_s18 + $0x2c] sm:$0x1] }
 0x3a2   : > { %v4767_v21 = vunpack.c.l.b16 %v4734_v37  ;;  %v5412_v37 = vrot.slane %v5410_v48, 5  ;;  %v7743_v48 = vld [vmem:[%s8244_s18 + $0x34] sm:$0xf] }
 0x3a3   : > { %v9949_v63 = vadd.f32 %v4295_v29, %v4070_v1  ;;  %v5393_v1 = vrot.slane %v5391_v32, 4  ;;  %v5396_v29 = vrot.slane %v5394_v3, 5  ;;  %v5761_v3 = vrot.slane %v9954_v18, 5 }
 0x3a4   : > { %v9951_v35 = vpop.f32.mrf.mxu0  ;;  %4492 = vmatmul.bf16.gmra.mxu1 %v7934_v16  ;;  %v6071_v56 = vor.u32 %v6070_v59, %v9974_v62  ;;  %v4775_v45 = vpack.c.b16 %v4767_v21, %v4766_v55  ;;  %v9984_v55 = vld [vmem:[#allocation2 + $0x34] sm:$0xf]  ;;  %v5415_v21 = vshrl.u32 %v5348_v30, 16 }
 0x3a5   : > { %10344 = vst [vmem:[#allocation10_spill] sm:$0xff] %v9951_v35  ;;  %4870 = vmatmul.bf16.gmra.mxu2 %v4774_v26  ;;  %v5397_v27 = vor.u32 %v5396_v29, %v5393_v1 }
 0x3a6   : > { %5120 = vmatmul.bf16.gmra.mxu3 %v5024_v10  ;;  %v6057_v10 = vrot.slane %v6055_v38, 4 }
 0x3a7   : > { %v5398_v33 = vrot.slane %v5397_v27, 4  ;;  %v7742_v27 = vld [vmem:[%s8244_s18 + $0x30] sm:$0xf] }
 0x3a8   : > { %v4072_v17 = vpop.f32.mrf.mxu2 }
 0x3a9   : > { %v4073_v14 = vadd.f32 %v4072_v17, %v3927_v52  ;;  %v4298_v11 = vpop.f32.mrf.mxu3  ;;  %v3929_v39 = vpop.f32.mrf.mxu1  ;;  %v9972_v52 = vrot.slane %v5400_v19, 5  ;;  %v6061_v19 = vor.u32 %v6060_v36, %v6057_v10  ;;  %v6074_v17 = vshll.u32 %v7741_v44, 16 }
 0x3aa   : > { %v5764_v10 = vrot.slane %v5347_v49, 5  ;;  %v5418_v44 = vshll.u32 %v5348_v30, 16  ;;  %v5762_v49 = vsel %vm8283_vm4, %v7681_v53, %v5761_v3 }
 0x3ab   : > { %v9966_v16 = vadd.f32 %v4298_v11, %v4073_v14  ;;  %v5407_v32 = vor.u32 %v5406_v61, %v9972_v52  ;;  %v5025_v11 = vpack.c.b16 %v5017_v20, %v5016_v58  ;;  %v5763_v61 = vrot.slane %v5761_v3, 4 }
 0x3ac   : > { %v9968_v26 = vpop.f32.mrf.mxu0  ;;  %v6062_v36 = vrot.slane %v6061_v19, 4  ;;  %v6076_v59 = vrot.slane %v6074_v17, 5  ;;  %v5403_v58 = vsel %vm8293_vm5, %v5398_v33, %v9972_v52  ;;  %v5424_v52 = vshll.u32 %v9984_v55, 16 }
 0x3ad   : > { %10345 = vst [vmem:[#allocation11_spill] sm:$0xff] %v9968_v26  ;;  %v5408_v18 = vrot.slane %v5407_v32, 4  ;;  %v5428_v3 = vshrl.u32 %v9984_v55, 16  ;;  %v6088_v33 = vshll.u32 %v7743_v48, 16 }
 0x3ae   : > { %v6067_v24 = vsel %vm8293_vm5, %v6062_v36, %v9974_v62 }
 0x3af   : > { %v5413_v20 = vsel %vm8293_vm5, %v5408_v18, %v5412_v37  ;;  %v6092_v37 = vshrl.u32 %v7743_v48, 16  ;;  %v5577_v18 = vunpack.c.l.b16 %v5403_v58  ;;  %v5768_v58 = vrot.slane %v9984_v55, 5 }
 0x3b0   : > { %v4074_v0 = vpop.f32.mrf.mxu2  ;;  %v5578_v53 = vunpack.c.l.b16 %v5413_v20  ;;  %v5351_v20 = vld [vmem:[#allocation2 + $0x3c] sm:$0xf] }
 0x3b1   : > { %v4075_v38 = vadd.f32 %v4074_v0, %v3929_v39  ;;  %v4300_v15 = vpop.f32.mrf.mxu3  ;;  %v3932_v14 = vpop.f32.mrf.mxu1  ;;  %v6072_v39 = vrot.slane %v6071_v56, 4  ;;  %v5765_v0 = vsel %vm8283_vm4, %v5763_v61, %v5764_v10  ;;  %v5827_v61 = vunpack.c.l.b16 %v5762_v49 }
 0x3b2   : > { %v5828_v10 = vunpack.c.l.b16 %v5765_v0  ;;  %v6094_v48 = vrot.slane %v6092_v37, 4  ;;  %v5592_v26 = vpack.c.b16 %v5578_v53, %v5577_v18  ;;  %v10013_v37 = vld [vmem:[#allocation2 + $0x40] sm:$0xf]  ;;  %v5442_v53 = vshll.u32 %v5351_v20, 16 }
 0x3b3   : > { %v9980_v1 = vadd.f32 %v4300_v15, %v4075_v38  ;;  %v6077_v19 = vsel %vm8293_vm5, %v6072_v39, %v6076_v59  ;;  %v5417_v38 = vrot.slane %v5415_v21, 4  ;;  %v5420_v15 = vrot.slane %v5418_v44, 5  ;;  %v5350_v39 = vld [vmem:[#allocation2 + $0x38] sm:$0x1] }
 0x3b4   : > { %v9982_v29 = vpop.f32.mrf.mxu0  ;;  %4497 = vmatmul.bf16.gmra.mxu1 %v7935_v7  ;;  %v6245_v36 = vunpack.c.l.b16 %v6077_v19  ;;  %v5426_v21 = vrot.slane %v5424_v52, 5  ;;  %v5430_v44 = vrot.slane %v5428_v3, 4  ;;  %v5434_v35 = vshll.u32 %v5350_v39, 16  ;;  %v5722_v52 = vld [vmem:[#allocation2 + $0x30] sm:$0xe] }
 0x3b5   : > { %10346 = vst [vmem:[#allocation12_spill] sm:$0xff] %v9982_v29  ;;  %4875 = vmatmul.bf16.gmra.mxu2 %v4775_v45  ;;  %v6079_v45 = vshrl.u32 %v7742_v27, 16  ;;  %v5421_v59 = vor.u32 %v5420_v15, %v5417_v38 }
 0x3b6   : > { %5125 = vmatmul.bf16.gmra.mxu3 %v5025_v11  ;;  %v6082_v11 = vshll.u32 %v7742_v27, 16  ;;  %v10008_v27 = vrot.slane %v6088_v33, 5  ;;  %v5431_v38 = vor.u32 %v5430_v44, %v5426_v21  ;;  %v5448_v44 = vshll.u32 %v10013_v37, 16 }
 0x3b7   : > { %v5422_v3 = vrot.slane %v5421_v59, 4 }
 0x3b8   : > { %v4077_v32 = vpop.f32.mrf.mxu2  ;;  %v6084_v29 = vrot.slane %v6082_v11, 5  ;;  %v6095_v11 = vor.u32 %v6094_v48, %v10008_v27  ;;  %v5432_v59 = vrot.slane %v5431_v38, 4  ;;  %v7746_v48 = vld [vmem:[%s8244_s18 + $0x40] sm:$0xf]  ;;  %v5450_v47 = vrot.slane %v5448_v44, 5 }
 0x3b9   : > { %v4078_v56 = vadd.f32 %v4077_v32, %v3932_v14  ;;  %v4303_v17 = vpop.f32.mrf.mxu3  ;;  %v3934_v7 = vpop.f32.mrf.mxu1  ;;  %v6244_v14 = vunpack.c.l.b16 %v6067_v24  ;;  %v6081_v32 = vrot.slane %v6079_v45, 4  ;;  %v5842_v24 = vpack.c.b16 %v5828_v10, %v5827_v61  ;;  %v5723_v44 = vld [vmem:[#allocation2 + $0x3c] sm:$0xe] }
 0x3ba   : > { %v5436_v61 = vrot.slane %v5434_v35, 5  ;;  %v7682_v10 = vrot.slane %v5722_v52, 9  ;;  %v6116_v38 = vshrl.u32 %v7746_v48, 16 }
 0x3bb   : > { %v10004_v30 = vadd.f32 %v4303_v17, %v4078_v56  ;;  %v7744_v56 = vld [vmem:[%s8244_s18 + $0x38] sm:$0x1]  ;;  %v6259_v19 = vpack.c.b16 %v6245_v36, %v6244_v14  ;;  %v6085_v45 = vor.u32 %v6084_v29, %v6081_v32  ;;  %v5770_v14 = vrot.slane %v5768_v58, 4  ;;  %v7745_v36 = vld [vmem:[%s8244_s18 + $0x3c] sm:$0xf] }
 0x3bc   : > { %v10006_v62 = vpop.f32.mrf.mxu0  ;;  %v6098_v33 = vshll.u32 %v7744_v56, 16  ;;  %v5771_v29 = vrot.slane %v5350_v39, 5  ;;  %v5452_v32 = vshrl.u32 %v10013_v37, 16  ;;  %v5427_v56 = vsel %vm8293_vm5, %v5422_v3, %v5426_v21 }
 0x3bd   : > { %10347 = vst [vmem:[#allocation13_spill] sm:$0xff] %v10006_v62  ;;  %v6103_v52 = vshrl.u32 %v7745_v36, 16  ;;  %v6106_v62 = vshll.u32 %v7745_v36, 16  ;;  %v5769_v28 = vsel %vm8283_vm4, %v7682_v10, %v5768_v58  ;;  %v5437_v21 = vsel %vm8293_vm5, %v5432_v59, %v5436_v61 }
 0x3be   : > { %v5454_v9 = vrot.slane %v5452_v32, 4  ;;  %v5579_v3 = vunpack.c.l.b16 %v5427_v56  ;;  %v5829_v59 = vunpack.c.l.b16 %v5769_v28 }
 0x3bf   : > { %v6105_v10 = vrot.slane %v6103_v52, 4  ;;  %v6108_v36 = vrot.slane %v6106_v62, 5 }
 0x3c0   : > { %v4079_v17 = vpop.f32.mrf.mxu2 }
 0x3c1   : > { %v4080_v49 = vadd.f32 %v4079_v17, %v3934_v7  ;;  %v4305_v0 = vpop.f32.mrf.mxu3  ;;  %v4463_v15 = vpop.f32.mrf.mxu1  ;;  %v5439_v7 = vshrl.u32 %v5351_v20, 16  ;;  %v6086_v17 = vrot.slane %v6085_v45, 4  ;;  %v6100_v20 = vrot.slane %v6098_v33, 5  ;;  %v5353_v33 = vld [vmem:[#allocation2 + $0x44] sm:$0x1] }
 0x3c2   : > { %v5772_v45 = vsel %vm8283_vm4, %v5770_v14, %v5771_v29  ;;  %v4503_v61 = vadd.f32 %v4463_v15, %v9825_v40  ;;  %v6118_v14 = vrot.slane %v6116_v38, 4  ;;  %v5580_v29 = vunpack.c.l.b16 %v5437_v21 }
 0x3c3   : > { %v10015_v18 = vadd.f32 %v4305_v0, %v4080_v49  ;;  %v6096_v49 = vrot.slane %v6095_v11, 4  ;;  %v5441_v35 = vrot.slane %v5439_v7, 4  ;;  %v5444_v0 = vrot.slane %v5442_v53, 5 }
 0x3c4   : > { %v10017_v55 = vpop.f32.mrf.mxu0  ;;  %5668 = vmatmul.bf16.vlgmr.msra.gmra.mxu1 %v5592_v26  ;;  %v6091_v11 = vsel %vm8293_vm5, %v6086_v17, %v10008_v27  ;;  %v5455_v27 = vor.u32 %v5454_v9, %v5450_v47  ;;  %v5458_v56 = vshll.u32 %v5353_v33, 16  ;;  %v7747_v17 = vld [vmem:[%s8244_s18 + $0x44] sm:$0x1]  ;;  %v6109_v62 = vor.u32 %v6108_v36, %v6105_v10  ;;  %v5354_v9 = vld [vmem:[#allocation2 + $0x48] sm:$0xf] }
 0x3c5   : > { %5918 = vmatmul.bf16.vlgmr.msra.gmra.mxu2 %v5842_v24  ;;  %v6112_v24 = vshll.u32 %v7746_v48, 16  ;;  %v6101_v58 = vsel %vm8293_vm5, %v6096_v49, %v6100_v20  ;;  %v5445_v53 = vor.u32 %v5444_v0, %v5441_v35  ;;  %v5830_v48 = vunpack.c.l.b16 %v5772_v45 }
 0x3c6   : > { %6335 = vmatmul.bf16.vlgmr.msra.gmra.mxu3 %v6259_v19  ;;  %v6246_v6 = vunpack.c.l.b16 %v6091_v11  ;;  %v6247_v25 = vunpack.c.l.b16 %v6101_v58  ;;  %v5775_v49 = vrot.slane %v10013_v37, 5  ;;  %v7683_v35 = vrot.slane %v5723_v44, 9 }
 0x3c7   : > { %v10039_v32 = vrot.slane %v6112_v24, 5  ;;  %v5446_v20 = vrot.slane %v5445_v53, 4  ;;  %v6122_v28 = vshll.u32 %v7747_v17, 16  ;;  %v5593_v52 = vpack.c.b16 %v5580_v29, %v5579_v3 }
 0x3c8   : > { %v4841_v26 = vpop.f32.mrf.mxu2  ;;  %v5843_v24 = vpack.c.b16 %v5830_v48, %v5829_v59  ;;  %v5456_v38 = vrot.slane %v5455_v27, 4  ;;  %v5460_v21 = vrot.slane %v5458_v56, 5  ;;  %v5777_v11 = vrot.slane %v5775_v49, 4 }
 0x3c9   : > { %v5091_v39 = vpop.f32.mrf.mxu3  ;;  %v4465_v19 = vpop.f32.mrf.mxu1  ;;  %v4881_v50 = vadd.f32 %v4841_v26, %v4503_v61  ;;  %v6119_v40 = vor.u32 %v6118_v14, %v10039_v32  ;;  %v6260_v26 = vpack.c.b16 %v6247_v25, %v6246_v6  ;;  %v5778_v58 = vrot.slane %v5353_v33, 5  ;;  %v10052_v25 = vld [vmem:[#allocation2 + $0x4c] sm:$0xf] }
 0x3ca   : > { %v5451_v10 = vsel %vm8293_vm5, %v5446_v20, %v5450_v47  ;;  %v10049_v36 = vsel %vm8283_vm4, %v7683_v35, %v5775_v49  ;;  %v6110_v3 = vrot.slane %v6109_v62, 4  ;;  %v4504_v61 = vadd.f32 %v4465_v19, %v9838_v4  ;;  %v7748_v47 = vld [vmem:[%s8244_s18 + $0x48] sm:$0xf]  ;;  %v7749_v19 = vld [vmem:[%s8244_s18 + $0x4c] sm:$0xf] }
 0x3cb   : > { %v5131_v45 = vadd.f32 %v5091_v39, %v4881_v50  ;;  %v6120_v50 = vrot.slane %v6119_v40, 4  ;;  %v6124_v39 = vrot.slane %v6122_v28, 5  ;;  %v5463_v6 = vshrl.u32 %v5354_v9, 16 }
 0x3cc   : > { %v10034_v7 = vpop.f32.mrf.mxu0  ;;  %v10058_v44 = vunpack.c.l.b16 %v5451_v10  ;;  %v5779_v4 = vsel %vm8283_vm4, %v5777_v11, %v5778_v58  ;;  %v5831_v14 = vunpack.c.l.b16 %v10049_v36  ;;  %v6115_v29 = vsel %vm8293_vm5, %v6110_v3, %v10039_v32  ;;  %v5356_v11 = vld [vmem:[#allocation2 + $0x50] sm:$0x1] }
 0x3cd   : > { %v5326_v33 = vadd.f32 %v9801_v22, %v5131_v45  ;;  %v5472_v48 = vshll.u32 %v10052_v25, 16  ;;  %v5476_v27 = vshrl.u32 %v10052_v25, 16  ;;  %v6125_v22 = vsel %vm8293_vm5, %v6120_v50, %v6124_v39  ;;  %v5724_v50 = vld [vmem:[#allocation2 + $0x48] sm:$0xe] }
 0x3ce   : > { %v5465_v17 = vrot.slane %v5463_v6, 4  ;;  %v6127_v49 = vshrl.u32 %v7748_v47, 16  ;;  %v6130_v20 = vshll.u32 %v7748_v47, 16  ;;  %v6136_v40 = vshll.u32 %v7749_v19, 16 }
 0x3cf   : > { %v6140_v28 = vshrl.u32 %v7749_v19, 16  ;;  %v10075_v58 = vrot.slane %v5472_v48, 5  ;;  %v5478_v10 = vrot.slane %v5476_v27, 4  ;;  %v6249_v36 = vunpack.c.l.b16 %v6125_v22 }
 0x3d0   : > { %v4843_v0 = vpop.f32.mrf.mxu2  ;;  %v6129_v3 = vrot.slane %v6127_v49, 4  ;;  %v6132_v39 = vrot.slane %v6130_v20, 5  ;;  %v10082_v6 = vrot.slane %v6136_v40, 5  ;;  %v5782_v47 = vrot.slane %v10052_v25, 5 }
 0x3d1   : > { %v5093_v15 = vpop.f32.mrf.mxu3  ;;  %v4468_v57 = vpop.f32.mrf.mxu1  ;;  %v4882_v59 = vadd.f32 %v4843_v0, %v4504_v61 }
 0x3d2   : > { %v4505_v37 = vadd.f32 %v4468_v57, %v9856_v60  ;;  %v5461_v60 = vsel %vm8293_vm5, %v5456_v38, %v5460_v21  ;;  %v5466_v57 = vshll.u32 %v5354_v9, 16  ;;  %v5832_v21 = vunpack.c.l.b16 %v5779_v4 }
 0x3d3   : > { %v5582_v38 = vunpack.c.l.b16 %v5461_v60  ;;  %v6133_v25 = vor.u32 %v6132_v39, %v6129_v3 }
 0x3d4   : > { %v5914_v53 = vpop.f32.mrf.mxu0  ;;  %5673 = vmatmul.bf16.gmra.mxu1 %v5593_v52  ;;  %v5468_v0 = vrot.slane %v5466_v57, 5  ;;  %v5132_v52 = vadd.f32 %v5093_v15, %v4882_v59  ;;  %v10080_v15 = vld [vmem:[%s10315_s4] ss:$0 sm:$0xff]  ;;  %v5482_v57 = vshll.u32 %v5356_v11, 16  ;;  %v7750_v59 = vld [vmem:[%s8244_s18 + $0x50] sm:$0x1]  ;;  %v5844_v48 = vpack.c.b16 %v5832_v21, %v5831_v14 }
 0x3d5   : > { %5923 = vmatmul.bf16.gmra.mxu2 %v5843_v24  ;;  %v5704_v24 = vadd.f32 %v10017_v55, %v5326_v33  ;;  %v6248_v55 = vunpack.c.l.b16 %v6115_v29  ;;  %v5479_v33 = vor.u32 %v5478_v10, %v10075_v58  ;;  %v10093_v29 = vld [vmem:[%s10317_s6] ss:$0 sm:$0xff] }
 0x3d6   : > { %6340 = vmatmul.bf16.gmra.mxu3 %v6260_v26  ;;  %v5469_v61 = vor.u32 %v5468_v0, %v5465_v17  ;;  %v5327_v60 = vadd.f32 %v9827_v13, %v5132_v52  ;;  %v6146_v0 = vshll.u32 %v7750_v59, 16 }
 0x3d7   : > { %v6261_v27 = vpack.c.b16 %v6249_v36, %v6248_v55  ;;  %v5480_v14 = vrot.slane %v5479_v33, 4 }
 0x3d8   : > { %v4846_v56 = vpop.f32.mrf.mxu2  ;;  %v5470_v17 = vrot.slane %v5469_v61, 4  ;;  %v5705_v49 = vadd.f32 %v10034_v7, %v5327_v60  ;;  %v7751_v61 = vld [vmem:[%s8244_s18 + $0x54] sm:$0xf] }
 0x3d9   : > { %v4883_v35 = vadd.f32 %v4846_v56, %v4505_v37  ;;  %v5096_v62 = vpop.f32.mrf.mxu3  ;;  %v4470_v32 = vpop.f32.mrf.mxu1  ;;  %v5954_v37 = vadd.f32 %v5914_v53, %v5704_v24  ;;  %v5594_v53 = vpack.c.b16 %v5582_v38, %v10058_v44  ;;  %v7684_v56 = vrot.slane %v5724_v50, 9 }
 0x3da   : > { %v4506_v45 = vadd.f32 %v4470_v32, %v9870_v54  ;;  %v6142_v54 = vrot.slane %v6140_v28, 4  ;;  %v5785_v24 = vrot.slane %v5356_v11, 5  ;;  %v5357_v32 = vld [vmem:[#allocation2 + $0x54] sm:$0xf]  ;;  %v5475_v7 = vsel %vm8293_vm5, %v5470_v17, %v10075_v58  ;;  %v10106_v11 = vld [vmem:[#allocation2 + $0x58] sm:$0xf] }
 0x3db   : > { %v10072_v9 = vadd.f32 %v5096_v62, %v4883_v35  ;;  %v5974_v4 = vadd.f32 %v10080_v15, %v5954_v37  ;;  %v5484_v35 = vrot.slane %v5482_v57, 5  ;;  %v5784_v62 = vrot.slane %v5782_v47, 4 }
 0x3dc   : > { %v5916_v26 = vpop.f32.mrf.mxu0  ;;  %v6143_v44 = vor.u32 %v6142_v54, %v10082_v6  ;;  %v5783_v10 = vsel %vm8283_vm4, %v7684_v56, %v5782_v47  ;;  %v5487_v36 = vshrl.u32 %v5357_v32, 16  ;;  %v5490_v3 = vshll.u32 %v5357_v32, 16 }
 0x3dd   : > { %v5990_v38 = vmax.f32 %v5974_v4, 0.0  ;;  %v5955_v21 = vadd.f32 %v5916_v26, %v5705_v49  ;;  %v6148_v26 = vrot.slane %v6146_v0, 5  ;;  %v5485_v50 = vsel %vm8293_vm5, %v5480_v14, %v5484_v35 }
 0x3de   : > { %v6144_v37 = vrot.slane %v6143_v44, 4  ;;  %v5786_v58 = vsel %vm8283_vm4, %v5784_v62, %v5785_v24  ;;  %v5833_v60 = vunpack.c.l.b16 %v5783_v10  ;;  %v5496_v57 = vshll.u32 %v10106_v11, 16  ;;  %v5359_v24 = vld [vmem:[#allocation2 + $0x5c] sm:$0x1]  ;;  %v5725_v10 = vld [vmem:[#allocation2 + $0x54] sm:$0xe] }
 0x3df   : > { %v5975_v39 = vadd.f32 %v10080_v15, %v5955_v21  ;;  %v5500_v47 = vshrl.u32 %v10106_v11, 16  ;;  %v5583_v4 = vunpack.c.l.b16 %v5475_v7  ;;  %v5492_v17 = vrot.slane %v5490_v3, 5 }
 0x3e0   : > { %v4848_v19 = vpop.f32.mrf.mxu2  ;;  %v5834_v14 = vunpack.c.l.b16 %v5786_v58  ;;  %v5789_v3 = vrot.slane %v10106_v11, 5 }
 0x3e1   : > { %v4884_v13 = vadd.f32 %v4848_v19, %v4506_v45  ;;  %v5098_v22 = vpop.f32.mrf.mxu3  ;;  %v4473_v20 = vpop.f32.mrf.mxu1  ;;  %v6151_v19 = vshrl.u32 %v7751_v61, 16  ;;  %v5991_v62 = vmax.f32 %v5975_v39, 0.0 }
 0x3e2   : > { %v4507_v28 = vadd.f32 %v4473_v20, %v9887_v42  ;;  %v6134_v42 = vrot.slane %v6133_v25, 4 }
 0x3e3   : > { %v10097_v40 = vadd.f32 %v5098_v22, %v4884_v13  ;;  %v6149_v13 = vsel %vm8293_vm5, %v6144_v37, %v6148_v26  ;;  %v5489_v22 = vrot.slane %v5487_v36, 4  ;;  %v6153_v32 = vrot.slane %v6151_v19, 4 }
 0x3e4   : > { %v6331_v52 = vpop.f32.mrf.mxu0  ;;  %5678 = vmatmul.bf16.gmra.mxu1 %v5594_v53  ;;  %v7752_v53 = vld [vmem:[%s8244_s18 + $0x58] sm:$0xf]  ;;  %v6139_v56 = vsel %vm8293_vm5, %v6134_v42, %v10082_v6  ;;  %v5584_v6 = vunpack.c.l.b16 %v5485_v50  ;;  %v6251_v7 = vunpack.c.l.b16 %v6149_v13  ;;  %v5506_v36 = vshll.u32 %v5359_v24, 16  ;;  %v5360_v13 = vld [vmem:[#allocation2 + $0x60] sm:$0xf] }
 0x3e5   : > { %v6332_v45 = vadd.f32 %v10093_v29, %v6331_v52  ;;  %5928 = vmatmul.bf16.gmra.mxu2 %v5844_v48  ;;  %v6154_v48 = vshll.u32 %v7751_v61, 16  ;;  %v6160_v20 = vshll.u32 %v7752_v53, 16  ;;  %v6164_v35 = vshrl.u32 %v7752_v53, 16  ;;  %v7753_v61 = vld [vmem:[%s8244_s18 + $0x5c] sm:$0x1] }
 0x3e6   : > { %6345 = vmatmul.bf16.gmra.mxu3 %v6261_v27  ;;  %v5502_v52 = vrot.slane %v5500_v47, 4  ;;  %v5595_v39 = vpack.c.b16 %v5584_v6, %v5583_v4  ;;  %v7755_v6 = vld [vmem:[%s8244_s18 + $0x64] sm:$0xf] }
 0x3e7   : > { %v6371_v55 = vadd.f32 %v6332_v45, %v5990_v38  ;;  %v6156_v38 = vrot.slane %v6154_v48, 5  ;;  %v6250_v45 = vunpack.c.l.b16 %v6139_v56  ;;  %v10129_v42 = vrot.slane %v6160_v20, 5 }
 0x3e8   : > { %v4851_v54 = vpop.f32.mrf.mxu2  ;;  %v6166_v37 = vrot.slane %v6164_v35, 4  ;;  %v6170_v56 = vshll.u32 %v7753_v61, 16  ;;  %v5511_v20 = vshrl.u32 %v5360_v13, 16  ;;  %v5514_v35 = vshll.u32 %v5360_v13, 16 }
 0x3e9   : > { %6387 = vst [vmem:[%s8256_s8] sm:$0xff] %v6371_v55  ;;  %v4885_v33 = vadd.f32 %v4851_v54, %v4507_v28  ;;  %v5101_v59 = vpop.f32.mrf.mxu3  ;;  %v4475_v27 = vpop.f32.mrf.mxu1  ;;  %v10127_v28 = vrot.slane %v5496_v57, 5  ;;  %v5845_v54 = vpack.c.b16 %v5834_v14, %v5833_v60  ;;  %v6157_v57 = vor.u32 %v6156_v38, %v6153_v32 }
 0x3ea   : > { %v4508_v44 = vadd.f32 %v4475_v27, %v9891_v51  ;;  %v5493_v51 = vor.u32 %v5492_v17, %v5489_v22  ;;  %v6262_v53 = vpack.c.b16 %v6251_v7, %v6250_v45  ;;  %v6167_v27 = vor.u32 %v6166_v37, %v10129_v42 }
 0x3eb   : > { %v10123_v25 = vadd.f32 %v5101_v59, %v4885_v33  ;;  %v5503_v26 = vor.u32 %v5502_v52, %v10127_v28  ;;  %v7685_v59 = vrot.slane %v5725_v10, 9  ;;  %v5508_v22 = vrot.slane %v5506_v36, 5 }
 0x3ec   : > { %v6333_v49 = vpop.f32.mrf.mxu0  ;;  %v5494_v33 = vrot.slane %v5493_v51, 4  ;;  %v5791_v17 = vrot.slane %v5789_v3, 4  ;;  %v5792_v60 = vrot.slane %v5359_v24, 5  ;;  %v6158_v4 = vrot.slane %v6157_v57, 4 }
 0x3ed   : > { %v6334_v0 = vadd.f32 %v10093_v29, %v6333_v49  ;;  %v5504_v11 = vrot.slane %v5503_v26, 4  ;;  %v7754_v49 = vld [vmem:[%s8244_s18 + $0x60] sm:$0xf]  ;;  %v6172_v52 = vrot.slane %v6170_v56, 5  ;;  %v5516_v26 = vrot.slane %v5514_v35, 5 }
 0x3ee   : > { %v6175_v38 = vshrl.u32 %v7754_v49, 16  ;;  %v6163_v10 = vsel %vm8293_vm5, %v6158_v4, %v10129_v42  ;;  %v6184_v36 = vshll.u32 %v7755_v6, 16 }
 0x3ef   : > { %v6372_v21 = vadd.f32 %v6334_v0, %v5991_v62  ;;  %v5790_v62 = vsel %vm8283_vm4, %v7685_v59, %v5789_v3  ;;  %v6168_v0 = vrot.slane %v6167_v27, 4  ;;  %v5509_v51 = vsel %vm8293_vm5, %v5504_v11, %v5508_v22 }
 0x3f0   : > { %v4853_v55 = vpop.f32.mrf.mxu2  ;;  %v6188_v3 = vshrl.u32 %v7755_v6, 16  ;;  %v5835_v59 = vunpack.c.l.b16 %v5790_v62  ;;  %v6252_v27 = vunpack.c.l.b16 %v6163_v10  ;;  %v6186_v11 = vrot.slane %v6184_v36, 5  ;;  %v5363_v36 = vld [vmem:[#allocation2 + $0x6c] sm:$0xf] }
 0x3f1   : > { %6388 = vst [vmem:[%s8256_s8 + $0x8] sm:$0xff] %v6372_v21  ;;  %v4886_v50 = vadd.f32 %v4853_v55, %v4508_v44  ;;  %v5103_v58 = vpop.f32.mrf.mxu3  ;;  %v4478_v47 = vpop.f32.mrf.mxu1  ;;  %v10139_v44 = vld [vmem:[#allocation2 + $0x64] sm:$0xf]  ;;  %v6178_v21 = vshll.u32 %v7754_v49, 16  ;;  %v5513_v55 = vrot.slane %v5511_v20, 4 }
 0x3f2   : > { %v4509_v48 = vadd.f32 %v4478_v47, %v9900_v23  ;;  %v5499_v23 = vsel %vm8293_vm5, %v5494_v33, %v10127_v28  ;;  %v5520_v24 = vshll.u32 %v10139_v44, 16  ;;  %v5524_v32 = vshrl.u32 %v10139_v44, 16  ;;  %v5726_v49 = vld [vmem:[#allocation2 + $0x60] sm:$0xe] }
 0x3f3   : > { %v10135_v19 = vadd.f32 %v5103_v58, %v4886_v50  ;;  %v5793_v28 = vsel %vm8283_vm4, %v5791_v17, %v5792_v60  ;;  %v5585_v58 = vunpack.c.l.b16 %v5499_v23  ;;  %v6180_v42 = vrot.slane %v6178_v21, 5  ;;  %v7756_v17 = vld [vmem:[%s8244_s18 + $0x68] sm:$0x1] }
 0x3f4   : > { %5683 = vmatmul.bf16.gmra.mxu1 %v5595_v39  ;;  %v6173_v39 = vsel %vm8293_vm5, %v6168_v0, %v6172_v52  ;;  %v10162_v57 = vrot.slane %v5520_v24, 5  ;;  %v5526_v47 = vrot.slane %v5524_v32, 4  ;;  %v5586_v33 = vunpack.c.l.b16 %v5509_v51 }
 0x3f5   : > { %5933 = vmatmul.bf16.gmra.mxu2 %v5845_v54  ;;  %v5362_v54 = vld [vmem:[#allocation2 + $0x68] sm:$0x1]  ;;  %v6253_v56 = vunpack.c.l.b16 %v6173_v39  ;;  %v5517_v13 = vor.u32 %v5516_v26, %v5513_v55  ;;  %v6190_v22 = vrot.slane %v6188_v3, 4  ;;  %v5796_v20 = vrot.slane %v10139_v44, 5  ;;  %v10170_v3 = vld [vmem:[#allocation2 + $0x70] sm:$0xf] }
 0x3f6   : > { %6350 = vmatmul.bf16.gmra.mxu3 %v6262_v53  ;;  %v6177_v53 = vrot.slane %v6175_v38, 4  ;;  %v5527_v4 = vor.u32 %v5526_v47, %v10162_v57  ;;  %v5596_v52 = vpack.c.b16 %v5586_v33, %v5585_v58  ;;  %v6194_v38 = vshll.u32 %v7756_v17, 16 }
 0x3f7   : > { %v5518_v24 = vrot.slane %v5517_v13, 4  ;;  %v6191_v32 = vor.u32 %v6190_v22, %v6186_v11  ;;  %v7686_v51 = vrot.slane %v5726_v49, 9  ;;  %v5798_v10 = vrot.slane %v5796_v20, 4 }
 0x3f8   : > { %v4856_v14 = vpop.f32.mrf.mxu2  ;;  %v6181_v35 = vor.u32 %v6180_v42, %v6177_v53  ;;  %v5799_v44 = vrot.slane %v5362_v54, 5  ;;  %v6196_v26 = vrot.slane %v6194_v38, 5  ;;  %v7758_v42 = vld [vmem:[%s8244_s18 + $0x70] sm:$0xf]  ;;  %v5548_v22 = vshrl.u32 %v10170_v3, 16 }
 0x3f9   : > { %v4887_v45 = vadd.f32 %v4856_v14, %v4509_v48  ;;  %v5106_v7 = vpop.f32.mrf.mxu3  ;;  %v4480_v37 = vpop.f32.mrf.mxu1  ;;  %v5836_v48 = vunpack.c.l.b16 %v5793_v28  ;;  %v6263_v14 = vpack.c.b16 %v6253_v56, %v6252_v27  ;;  %v5528_v28 = vrot.slane %v5527_v4, 4 }
 0x3fa   : > { %v4510_v50 = vadd.f32 %v4480_v37, %v9908_v31  ;;  %v5530_v31 = vshll.u32 %v5362_v54, 16  ;;  %v6182_v37 = vrot.slane %v6181_v35, 4  ;;  %v6192_v55 = vrot.slane %v6191_v32, 4  ;;  %v5365_v32 = vld [vmem:[#allocation2 + $0x74] sm:$0x1] }
 0x3fb   : > { %v10157_v61 = vadd.f32 %v5106_v7, %v4887_v45  ;;  %v5846_v6 = vpack.c.b16 %v5836_v48, %v5835_v59  ;;  %v5797_v54 = vsel %vm8283_vm4, %v7686_v51, %v5796_v20  ;;  %v5800_v47 = vsel %vm8283_vm4, %v5798_v10, %v5799_v44  ;;  %v7759_v44 = vld [vmem:[%s8244_s18 + $0x74] sm:$0x1] }
 0x3fc   : > { %v5532_v7 = vrot.slane %v5530_v31, 5  ;;  %v6187_v53 = vsel %vm8293_vm5, %v6182_v37, %v6186_v11  ;;  %v5535_v48 = vshrl.u32 %v5363_v36, 16  ;;  %v5538_v27 = vshll.u32 %v5363_v36, 16 }
 0x3fd   : > { %v6197_v13 = vsel %vm8293_vm5, %v6192_v55, %v6196_v26  ;;  %v6208_v11 = vshll.u32 %v7758_v42, 16  ;;  %v6212_v49 = vshrl.u32 %v7758_v42, 16  ;;  %v5550_v38 = vrot.slane %v5548_v22, 4 }
 0x3fe   : > { %v5533_v39 = vsel %vm8293_vm5, %v5528_v28, %v5532_v7 }
 0x3ff   : > { %v5588_v35 = vunpack.c.l.b16 %v5533_v39  ;;  %v6210_v51 = vrot.slane %v6208_v11, 5  ;;  %v6214_v28 = vrot.slane %v6212_v49, 4 }
 0x400   : > { %v4858_v60 = vpop.f32.mrf.mxu2 }
 0x401   : > { %v4888_v23 = vadd.f32 %v4858_v60, %v4510_v50  ;;  %v5108_v0 = vpop.f32.mrf.mxu3  ;;  %v4483_v62 = vpop.f32.mrf.mxu1  ;;  %v5523_v50 = vsel %vm8293_vm5, %v5518_v24, %v10162_v57  ;;  %v5544_v57 = vshll.u32 %v10170_v3, 16  ;;  %v6255_v24 = vunpack.c.l.b16 %v6197_v13 }
 0x402   : > { %v4511_v45 = vadd.f32 %v4483_v62, %v9924_v12  ;;  %v7757_v12 = vld [vmem:[%s8244_s18 + $0x6c] sm:$0xf]  ;;  %v5587_v20 = vunpack.c.l.b16 %v5523_v50  ;;  %v5540_v62 = vrot.slane %v5538_v27, 5  ;;  %v5554_v50 = vshll.u32 %v5365_v32, 16 }
 0x403   : > { %v10167_v21 = vadd.f32 %v5108_v0, %v4888_v23  ;;  %v6199_v31 = vshrl.u32 %v7757_v12, 16  ;;  %v6202_v17 = vshll.u32 %v7757_v12, 16  ;;  %v5837_v23 = vunpack.c.l.b16 %v5797_v54 }
 0x404   : > { %5688 = vmatmul.bf16.gmra.mxu1 %v5596_v52  ;;  %v5838_v0 = vunpack.c.l.b16 %v5800_v47  ;;  %v6254_v52 = vunpack.c.l.b16 %v6187_v53  ;;  %v5803_v54 = vrot.slane %v10170_v3, 5 }
 0x405   : > { %5938 = vmatmul.bf16.gmra.mxu2 %v5846_v6  ;;  %v5537_v6 = vrot.slane %v5535_v48, 4  ;;  %v6204_v7 = vrot.slane %v6202_v17, 5  ;;  %v6218_v48 = vshll.u32 %v7759_v44, 16 }
 0x406   : > { %6355 = vmatmul.bf16.gmra.mxu3 %v6263_v14  ;;  %v5546_v14 = vrot.slane %v5544_v57, 5  ;;  %v5847_v26 = vpack.c.b16 %v5838_v0, %v5837_v23  ;;  %v5556_v57 = vrot.slane %v5554_v50, 5  ;;  %v5805_v22 = vrot.slane %v5803_v54, 4 }
 0x407   : > { %v5541_v36 = vor.u32 %v5540_v62, %v5537_v6  ;;  %v6220_v3 = vrot.slane %v6218_v48, 5 }
 0x408   : > { %v4861_v58 = vpop.f32.mrf.mxu2  ;;  %v5551_v39 = vor.u32 %v5550_v38, %v5546_v14 }
 0x409   : > { %v4889_v33 = vadd.f32 %v4861_v58, %v4511_v45  ;;  %v5111_v59 = vpop.f32.mrf.mxu3  ;;  %v4485_v56 = vpop.f32.mrf.mxu1  ;;  %v6201_v45 = vrot.slane %v6199_v31, 4  ;;  %v6264_v58 = vpack.c.b16 %v6255_v24, %v6254_v52  ;;  %v5542_v27 = vrot.slane %v5541_v36, 4 }
 0x40a   : > { %v4512_v4 = vadd.f32 %v4485_v56, %v9928_v5  ;;  %v5597_v5 = vpack.c.b16 %v5588_v35, %v5587_v20  ;;  %v5552_v56 = vrot.slane %v5551_v39, 4  ;;  %v5806_v31 = vrot.slane %v5365_v32, 5 }
 0x40b   : > { %v10189_v60 = vadd.f32 %v5111_v59, %v4889_v33  ;;  %v6205_v47 = vor.u32 %v6204_v7, %v6201_v45  ;;  %v5727_v33 = vld [vmem:[#allocation2 + $0x6c] sm:$0xe]  ;;  %v6215_v59 = vor.u32 %v6214_v28, %v6210_v51 }
 0x40c   : > { %v7687_v13 = vrot.slane %v5727_v33, 9  ;;  %v5557_v23 = vsel %vm8293_vm5, %v5552_v56, %v5556_v57  ;;  %v5807_v52 = vsel %vm8283_vm4, %v5805_v22, %v5806_v31 }
 0x40d   : > { %v6206_v17 = vrot.slane %v6205_v47, 4  ;;  %v5590_v38 = vunpack.c.l.b16 %v5557_v23  ;;  %v5840_v7 = vunpack.c.l.b16 %v5807_v52 }
 0x40e   : > { %v5804_v0 = vsel %vm8283_vm4, %v7687_v13, %v5803_v54 }
 0x40f   : > { %v6211_v24 = vsel %vm8293_vm5, %v6206_v17, %v6210_v51  ;;  %v5839_v45 = vunpack.c.l.b16 %v5804_v0 }
 0x410   : > { %v4863_v10 = vpop.f32.mrf.mxu2  ;;  %v6256_v28 = vunpack.c.l.b16 %v6211_v24 }
 0x411   : > { %v4890_v37 = vadd.f32 %v4863_v10, %v4512_v4  ;;  %v5113_v55 = vpop.f32.mrf.mxu3  ;;  %v4488_v12 = vpop.f32.mrf.mxu1  ;;  %v6216_v4 = vrot.slane %v6215_v59, 4 }
 0x412   : > { %v4513_v42 = vadd.f32 %v4488_v12, %v9941_v34  ;;  %v5547_v34 = vsel %vm8293_vm5, %v5542_v27, %v5546_v14 }
 0x413   : > { %v10194_v53 = vadd.f32 %v5113_v55, %v4890_v37  ;;  %v6221_v32 = vsel %vm8293_vm5, %v6216_v4, %v6220_v3  ;;  %v5589_v14 = vunpack.c.l.b16 %v5547_v34  ;;  %v5848_v55 = vpack.c.b16 %v5840_v7, %v5839_v45 }
 0x414   : > { %5693 = vmatmul.bf16.gmra.mxu1 %v5597_v5  ;;  %v6257_v10 = vunpack.c.l.b16 %v6221_v32 }
 0x415   : > { %5943 = vmatmul.bf16.gmra.mxu2 %v5847_v26  ;;  %v5598_v37 = vpack.c.b16 %v5590_v38, %v5589_v14 }
 0x416   : > { %6360 = vmatmul.bf16.gmra.mxu3 %v6264_v58  ;;  %v6265_v36 = vpack.c.b16 %v6257_v10, %v6256_v28  ;;  %v5330_v10 = vadd.f32 %v9872_v8, %v10123_v25 }
 0x418   : > { %v4866_v11 = vpop.f32.mrf.mxu2 }
 0x419   : > { %v4891_v49 = vadd.f32 %v4866_v11, %v4513_v42  ;;  %v5116_v20 = vpop.f32.mrf.mxu3  ;;  %v4490_v35 = vpop.f32.mrf.mxu1 }
 0x41a   : > { %v4514_v62 = vadd.f32 %v4490_v35, %v9949_v63 }
 0x41b   : > { %v10205_v6 = vadd.f32 %v5116_v20, %v4891_v49  ;;  %v5328_v49 = vadd.f32 %v9840_v41, %v10072_v9 }
 0x420   : > { %v4868_v5 = vpop.f32.mrf.mxu2 }
 0x421   : > { %v4892_v44 = vadd.f32 %v4868_v5, %v4514_v62  ;;  %v5118_v43 = vpop.f32.mrf.mxu3  ;;  %v4493_v26 = vpop.f32.mrf.mxu1  ;;  %v5329_v62 = vadd.f32 %v9858_v2, %v10097_v40 }
 0x422   : > { %v4515_v51 = vadd.f32 %v4493_v26, %v9966_v16 }
 0x423   : > { %v10212_v63 = vadd.f32 %v5118_v43, %v4892_v44 }
 0x424   : > { %5698 = vmatmul.bf16.gmra.mxu1 %v5598_v37 }
 0x425   : > { %5948 = vmatmul.bf16.gmra.mxu2 %v5848_v55 }
 0x426   : > { %6365 = vmatmul.bf16.gmra.mxu3 %v6265_v36 }
 0x428   : > { %v4871_v46 = vpop.f32.mrf.mxu2 }
 0x429   : > { %v4893_v50 = vadd.f32 %v4871_v46, %v4515_v51  ;;  %v5121_v12 = vpop.f32.mrf.mxu3  ;;  %v4495_v58 = vpop.f32.mrf.mxu1  ;;  %v10348_v51 = vld [vmem:[#allocation5_spill] sm:$0xff] }
 0x42a   : > { %v4516_v54 = vadd.f32 %v4495_v58, %v9980_v1  ;;  %v5331_v46 = vadd.f32 %v10348_v51, %v10135_v19  ;;  %v10353_v51 = vld [vmem:[#allocation8_spill] sm:$0xff] }
 0x42b   : > { %v10215_v39 = vadd.f32 %v5121_v12, %v4893_v50 }
 0x430   : > { %v4873_v47 = vpop.f32.mrf.mxu2 }
 0x431   : > { %v4894_v42 = vadd.f32 %v4873_v47, %v4516_v54  ;;  %v5123_v33 = vpop.f32.mrf.mxu3  ;;  %v4498_v59 = vpop.f32.mrf.mxu1 }
 0x432   : > { %v4517_v27 = vadd.f32 %v4498_v59, %v10004_v30  ;;  %v10349_v59 = vld [vmem:[#allocation3_spill] sm:$0xff] }
 0x433   : > { %v10218_v48 = vadd.f32 %v5123_v33, %v4894_v42 }
 0x438   : > { %v4876_v16 = vpop.f32.mrf.mxu2 }
 0x439   : > { %v4895_v57 = vadd.f32 %v4876_v16, %v4517_v27  ;;  %v5126_v56 = vpop.f32.mrf.mxu3  ;;  %v4500_v13 = vpop.f32.mrf.mxu1  ;;  %v5332_v27 = vadd.f32 %v10349_v59, %v10157_v61 }
 0x43a   : > { %v4518_v31 = vadd.f32 %v4500_v13, %v10015_v18 }
 0x43b   : > { %v10221_v22 = vadd.f32 %v5126_v56, %v4895_v57 }
 0x440   : > { %v4878_v17 = vpop.f32.mrf.mxu2 }
 0x441   : > { %v4896_v4 = vadd.f32 %v4878_v17, %v4518_v31  ;;  %v5128_v3 = vpop.f32.mrf.mxu3  ;;  %v5669_v1 = vpop.f32.mrf.mxu1 }
 0x442   : > { %v5706_v20 = vadd.f32 %v5669_v1, %v5328_v49  ;;  %v10350_v1 = vld [vmem:[#allocation4_spill] sm:$0xff] }
 0x443   : > { %v10224_v11 = vadd.f32 %v5128_v3, %v4896_v4  ;;  %v5333_v49 = vadd.f32 %v10350_v1, %v10167_v21 }
 0x448   : > { %v5919_v30 = vpop.f32.mrf.mxu2 }
 0x449   : > { %v5956_v35 = vadd.f32 %v5919_v30, %v5706_v20  ;;  %v6336_v34 = vpop.f32.mrf.mxu3  ;;  %v5671_v23 = vpop.f32.mrf.mxu1 }
 0x44a   : > { %v6337_v52 = vadd.f32 %v10093_v29, %v6336_v34  ;;  %v5707_v32 = vadd.f32 %v5671_v23, %v5329_v62  ;;  %v10351_v62 = vld [vmem:[#allocation6_spill] sm:$0xff] }
 0x44b   : > { %v5976_v0 = vadd.f32 %v10080_v15, %v5956_v35 }
 0x44d   : > { %v5992_v18 = vmax.f32 %v5976_v0, 0.0 }
 0x44f   : > { %v6373_v24 = vadd.f32 %v6337_v52, %v5992_v18 }
 0x450   : > { %v5921_v14 = vpop.f32.mrf.mxu2 }
 0x451   : > { %6389 = vst [vmem:[%s8256_s8 + $0x10] sm:$0xff] %v6373_v24  ;;  %v5957_v38 = vadd.f32 %v5921_v14, %v5707_v32  ;;  %v6338_v41 = vpop.f32.mrf.mxu3  ;;  %v5674_v9 = vpop.f32.mrf.mxu1  ;;  %v5334_v24 = vadd.f32 %v10351_v62, %v10189_v60 }
 0x452   : > { %v6339_v28 = vadd.f32 %v10093_v29, %v6338_v41  ;;  %v5708_v44 = vadd.f32 %v5674_v9, %v5330_v10  ;;  %v10352_v10 = vld [vmem:[#allocation7_spill] sm:$0xff] }
 0x453   : > { %v5977_v45 = vadd.f32 %v10080_v15, %v5957_v38 }
 0x455   : > { %v5993_v7 = vmax.f32 %v5977_v45, 0.0 }
 0x457   : > { %v6374_v5 = vadd.f32 %v6339_v28, %v5993_v7 }
 0x458   : > { %v5924_v43 = vpop.f32.mrf.mxu2 }
 0x459   : > { %6390 = vst [vmem:[%s8256_s8 + $0x18] sm:$0xff] %v6374_v5  ;;  %v5958_v2 = vadd.f32 %v5924_v43, %v5708_v44  ;;  %v6341_v40 = vpop.f32.mrf.mxu3  ;;  %v5676_v37 = vpop.f32.mrf.mxu1  ;;  %v5335_v5 = vadd.f32 %v10352_v10, %v10194_v53 }
 0x45a   : > { %v6342_v26 = vadd.f32 %v10093_v29, %v6341_v40  ;;  %v5709_v12 = vadd.f32 %v5676_v37, %v5331_v46  ;;  %v5336_v46 = vadd.f32 %v10353_v51, %v10205_v6 }
 0x45b   : > { %v5978_v55 = vadd.f32 %v10080_v15, %v5958_v2 }
 0x45d   : > { %v5994_v36 = vmax.f32 %v5978_v55, 0.0 }
 0x45f   : > { %v6375_v50 = vadd.f32 %v6342_v26, %v5994_v36 }
 0x460   : > { %v5926_v58 = vpop.f32.mrf.mxu2 }
 0x461   : > { %6391 = vst [vmem:[%s8256_s8 + $0x20] sm:$0xff] %v6375_v50  ;;  %v5959_v8 = vadd.f32 %v5926_v58, %v5709_v12  ;;  %v6343_v25 = vpop.f32.mrf.mxu3  ;;  %v5679_v54 = vpop.f32.mrf.mxu1 }
 0x462   : > { %v6344_v33 = vadd.f32 %v10093_v29, %v6343_v25  ;;  %v5710_v57 = vadd.f32 %v5679_v54, %v5332_v27 }
 0x463   : > { %v5979_v47 = vadd.f32 %v10080_v15, %v5959_v8 }
 0x465   : > { %v5995_v42 = vmax.f32 %v5979_v47, 0.0 }
 0x467   : > { %v6376_v16 = vadd.f32 %v6344_v33, %v5995_v42  ;;  %v10354_v33 = vld [vmem:[#allocation9_spill] sm:$0xff] }
 0x468   : > { %v5929_v56 = vpop.f32.mrf.mxu2  ;;  %v5337_v59 = vadd.f32 %v10354_v33, %v10212_v63 }
 0x469   : > { %6392 = vst [vmem:[%s8256_s8 + $0x28] sm:$0xff] %v6376_v16  ;;  %v5960_v19 = vadd.f32 %v5929_v56, %v5710_v57  ;;  %v6346_v13 = vpop.f32.mrf.mxu3  ;;  %v5681_v31 = vpop.f32.mrf.mxu1 }
 0x46a   : > { %v6347_v4 = vadd.f32 %v10093_v29, %v6346_v13  ;;  %v5711_v30 = vadd.f32 %v5681_v31, %v5333_v49 }
 0x46b   : > { %v5980_v17 = vadd.f32 %v10080_v15, %v5960_v19 }
 0x46d   : > { %v5996_v3 = vmax.f32 %v5980_v17, 0.0 }
 0x46f   : > { %v6377_v20 = vadd.f32 %v6347_v4, %v5996_v3  ;;  %v10355_v4 = vld [vmem:[#allocation10_spill] sm:$0xff] }
 0x470   : > { %v5931_v35 = vpop.f32.mrf.mxu2  ;;  %v5338_v3 = vadd.f32 %v10355_v4, %v10215_v39 }
 0x471   : > { %6393 = vst [vmem:[%s8256_s8 + $0x30] sm:$0xff] %v6377_v20  ;;  %v5961_v61 = vadd.f32 %v5931_v35, %v5711_v30  ;;  %v6348_v34 = vpop.f32.mrf.mxu3  ;;  %v5684_v23 = vpop.f32.mrf.mxu1 }
 0x472   : > { %v6349_v18 = vadd.f32 %v10093_v29, %v6348_v34  ;;  %v5712_v14 = vadd.f32 %v5684_v23, %v5334_v24 }
 0x473   : > { %v5981_v0 = vadd.f32 %v10080_v15, %v5961_v61 }
 0x475   : > { %v5997_v52 = vmax.f32 %v5981_v0, 0.0  ;;  %v10356_v0 = vld [vmem:[#allocation11_spill] sm:$0xff] }
 0x477   : > { %v6378_v32 = vadd.f32 %v6349_v18, %v5997_v52  ;;  %v5339_v52 = vadd.f32 %v10356_v0, %v10218_v48 }
 0x478   : > { %v5934_v38 = vpop.f32.mrf.mxu2 }
 0x479   : > { %6394 = vst [vmem:[%s8256_s8 + $0x38] sm:$0xff] %v6378_v32  ;;  %v5962_v21 = vadd.f32 %v5934_v38, %v5712_v14  ;;  %v6351_v41 = vpop.f32.mrf.mxu3  ;;  %v5686_v9 = vpop.f32.mrf.mxu1 }
 0x47a   : > { %v6352_v7 = vadd.f32 %v10093_v29, %v6351_v41  ;;  %v5713_v43 = vadd.f32 %v5686_v9, %v5335_v5  ;;  %v10357_v9 = vld [vmem:[#allocation12_spill] sm:$0xff] }
 0x47b   : > { %v5982_v45 = vadd.f32 %v10080_v15, %v5962_v21 }
 0x47d   : > { %v5998_v28 = vmax.f32 %v5982_v45, 0.0  ;;  %v5340_v45 = vadd.f32 %v10357_v9, %v10221_v22 }
 0x47f   : > { %v6379_v44 = vadd.f32 %v6352_v7, %v5998_v28 }
 0x480   : > { %v5936_v2 = vpop.f32.mrf.mxu2 }
 0x481   : > { %6395 = vst [vmem:[%s8256_s8 + $0x40] sm:$0xff] %v6379_v44  ;;  %v5963_v60 = vadd.f32 %v5936_v2, %v5713_v43  ;;  %v6353_v40 = vpop.f32.mrf.mxu3  ;;  %v5689_v37 = vpop.f32.mrf.mxu1 }
 0x482   : > { %v6354_v36 = vadd.f32 %v10093_v29, %v6353_v40  ;;  %v5714_v12 = vadd.f32 %v5689_v37, %v5336_v46  ;;  %v10358_v40 = vld [vmem:[#allocation13_spill] sm:$0xff] }
 0x483   : > { %v5983_v55 = vadd.f32 %v10080_v15, %v5963_v60  ;;  %v5341_v37 = vadd.f32 %v10358_v40, %v10224_v11 }
 0x485   : > { %v5999_v26 = vmax.f32 %v5983_v55, 0.0 }
 0x487   : > { %v6380_v50 = vadd.f32 %v6354_v36, %v5999_v26 }
 0x488   : > { %v5939_v58 = vpop.f32.mrf.mxu2 }
 0x489   : > { %6396 = vst [vmem:[%s8256_s8 + $0x48] sm:$0xff] %v6380_v50  ;;  %v5964_v53 = vadd.f32 %v5939_v58, %v5714_v12  ;;  %v6356_v8 = vpop.f32.mrf.mxu3  ;;  %v5691_v25 = vpop.f32.mrf.mxu1 }
 0x48a   : > { %v6357_v47 = vadd.f32 %v10093_v29, %v6356_v8  ;;  %v5715_v16 = vadd.f32 %v5691_v25, %v5337_v59 }
 0x48b   : > { %v5984_v54 = vadd.f32 %v10080_v15, %v5964_v53 }
 0x48d   : > { %v6000_v42 = vmax.f32 %v5984_v54, 0.0 }
 0x48f   : > { %v6381_v27 = vadd.f32 %v6357_v47, %v6000_v42 }
 0x490   : > { %v5941_v57 = vpop.f32.mrf.mxu2 }
 0x491   : > { %6397 = vst [vmem:[%s8256_s8 + $0x50] sm:$0xff] %v6381_v27  ;;  %v5965_v6 = vadd.f32 %v5941_v57, %v5715_v16  ;;  %v6358_v56 = vpop.f32.mrf.mxu3  ;;  %v5694_v19 = vpop.f32.mrf.mxu1 }
 0x492   : > { %v6359_v17 = vadd.f32 %v10093_v29, %v6358_v56  ;;  %v5716_v49 = vadd.f32 %v5694_v19, %v5338_v3 }
 0x493   : > { %v5985_v13 = vadd.f32 %v10080_v15, %v5965_v6 }
 0x495   : > { %v6001_v31 = vmax.f32 %v5985_v13, 0.0 }
 0x497   : > { %v6382_v1 = vadd.f32 %v6359_v17, %v6001_v31 }
 0x498   : > { %v5944_v20 = vpop.f32.mrf.mxu2 }
 0x499   : > { %6398 = vst [vmem:[%s8256_s8 + $0x58] sm:$0xff] %v6382_v1  ;;  %v5966_v63 = vadd.f32 %v5944_v20, %v5716_v49  ;;  %v6361_v30 = vpop.f32.mrf.mxu3  ;;  %v5696_v35 = vpop.f32.mrf.mxu1 }
 0x49a   : > { %v6362_v34 = vadd.f32 %v10093_v29, %v6361_v30  ;;  %v5717_v62 = vadd.f32 %v5696_v35, %v5339_v52 }
 0x49b   : > { %v5986_v61 = vadd.f32 %v10080_v15, %v5966_v63 }
 0x49d   : > { %v6002_v23 = vmax.f32 %v5986_v61, 0.0 }
 0x49f   : > { %v6383_v18 = vadd.f32 %v6362_v34, %v6002_v23 }
 0x4a0   : > { %v5946_v24 = vpop.f32.mrf.mxu2 }
 0x4a1   : > { %6399 = vst [vmem:[%s8256_s8 + $0x60] sm:$0xff] %v6383_v18  ;;  %v5967_v39 = vadd.f32 %v5946_v24, %v5717_v62  ;;  %v6363_v32 = vpop.f32.mrf.mxu3  ;;  %v5699_v14 = vpop.f32.mrf.mxu1 }
 0x4a2   : > { %v6364_v41 = vadd.f32 %v10093_v29, %v6363_v32  ;;  %v5718_v28 = vadd.f32 %v5699_v14, %v5340_v45 }
 0x4a3   : > { %v5987_v38 = vadd.f32 %v10080_v15, %v5967_v39 }
 0x4a5   : > { %v6003_v21 = vmax.f32 %v5987_v38, 0.0 }
 0x4a7   : > { %v6384_v7 = vadd.f32 %v6364_v41, %v6003_v21 }
 0x4a8   : > { %v5949_v10 = vpop.f32.mrf.mxu2 }
 0x4a9   : > { %6400 = vst [vmem:[%s8256_s8 + $0x68] sm:$0xff] %v6384_v7  ;;  %v5968_v48 = vadd.f32 %v5949_v10, %v5718_v28  ;;  %v6366_v5 = vpop.f32.mrf.mxu3  ;;  %v5701_v2 = vpop.f32.mrf.mxu1 }
 0x4aa   : > { %v6367_v43 = vadd.f32 %v10093_v29, %v6366_v5  ;;  %v5719_v26 = vadd.f32 %v5701_v2, %v5341_v37 }
 0x4ab   : > { %v5988_v44 = vadd.f32 %v10080_v15, %v5968_v48 }
 0x4ad   : > { %v6004_v60 = vmax.f32 %v5988_v44, 0.0 }
 0x4af   : > { %v6385_v55 = vadd.f32 %v6367_v43, %v6004_v60 }
 0x4b0   : > { %v5951_v36 = vpop.f32.mrf.mxu2 }
 0x4b1   : > { %6401 = vst [vmem:[%s8256_s8 + $0x70] sm:$0xff] %v6385_v55  ;;  %v5969_v22 = vadd.f32 %v5951_v36, %v5719_v26  ;;  %v6368_v51 = vpop.f32.mrf.mxu3 }
 0x4b2   : > { %v6369_v12 = vadd.f32 %v10093_v29, %v6368_v51 }
 0x4b3   : > { %v5989_v46 = vadd.f32 %v10080_v15, %v5969_v22 }
 0x4b5   : > { %v6005_v50 = vmax.f32 %v5989_v46, 0.0 }
 0x4b7   : > { %v6386_v58 = vadd.f32 %v6369_v12, %v6005_v50 }
 0x4b9   : > { %6402 = vst [vmem:[%s8256_s8 + $0x78] sm:$0xff] %v6386_v58 }
 0x4ba PF: > { %s17_s28 = sadd.s32 1, %s8119_s28   ;;  %s10359_s24 = smov %s8111_s26 }
 0x4bb   : > { %p14_p10 = scmp.ge.s32.totalorder %s17_s28, 6   ;;  %s10360_s25 = smov %s8115_s27 }
 0x4bc   : > { %s10361_s26 = smov %s10364_s29  ;;  %s10362_s27 = smov %s10368_s30 }
 0x4bd   :  { %16 = sbr.rel (!%p14_p10) target bundleno = 3 (0x3), region = 107 }

</bundles_post_ra>
